<compile_context>
chip_gen: v7x
topology: tpu7x:2x2x1
jax: 0.10.0
libtpu: 0.0.40
codegen_flags: <defaults>
</compile_context>

<pallas_src>
import functools

import jax
import jax.numpy as jnp
from jax import lax
from jax.experimental import pallas as pl
from jax.experimental.pallas import tpu as pltpu

K = 7      # conv kernel size
PAD = 3    # "same" padding for k=7


def spatial_attn_kernel(x_ref, w_ref, b_ref, o_ref, *, H, W, gate_f32):
    # x_ref: (nb, C, H*W) VMEM block (lane-dense)
    # w_ref: (98,) SMEM folded taps (first 49 = avg taps already / C, next 49 = max taps)
    # b_ref: (1,) SMEM folded BN bias
    nb, C, HW = x_ref.shape

    # Flattened, vertically zero-fenced conv buffer layout:
    #   [ (PAD+1) zero rows | H data rows | (PAD+1) zero rows ] -> lane-pad to 128x
    front = (PAD + 1) * W                     # flat offset of the first data element
    LF = (H + 2 * (PAD + 1)) * W              # payload length (all tap reads land inside)
    LP = ((LF + 127) // 128) * 128            # lane-padded buffer length (vreg multiple)
    R = 2 * nb                                # stacked rows: nb sum-rows then nb max-rows

    # ---- channel reductions (transient; NOT kept live across the conv) ----
    xi = x_ref[...]
    s = jnp.sum(xi, axis=1, dtype=jnp.float32)       # (nb, HW) channel sum (1/C in taps)
    m = jnp.max(xi, axis=1).astype(jnp.float32)      # (nb, HW) channel max
    stacked = jnp.concatenate([s, m], axis=0)        # (R, HW)
    buf = jnp.pad(stacked, ((0, 0), (front, LP - front - HW)))   # (R, LP)

    # ---- hoisted constants ----
    # f32 column-validity masks at full LP width (horizontal zero padding), one per kw,
    # shared by every row of the stacked buffer. Lanes >= HW are sliced away later.
    col = lax.broadcasted_iota(jnp.int32, (1, LP), 1) % W
    masks = {}
    for kw in range(K):
        if kw != PAD:
            c2 = col + (kw - PAD)
            masks[kw] = ((c2 >= 0) & (c2 < W)).astype(jnp.float32)
    # avg-row selector: 1.0 for the first nb (sum) rows, 0.0 for the max rows.
    sel_avg = jnp.concatenate(
        [jnp.ones((nb, 1), jnp.float32), jnp.zeros((nb, 1), jnp.float32)], axis=0)
    bias = b_ref[0]

    # ---- 7x7 "same" conv as 49 shared lane-rolls on the stacked buffer ----
    acc = None
    for kw in range(K):
        grp = None
        for kh in range(K):
            wa = w_ref[kh * K + kw]                    # avg tap (already / C, BN-folded)
            wm = w_ref[K * K + kh * K + kw]            # max tap (BN-folded)
            w_row = wm + (wa - wm) * sel_avg           # (R, 1) per-row tap weight
            # Tap (kh, kw) reads flat position p + d; realized as one lane roll
            # (jnp.roll semantics): rolled[p] = buf[(p + d) mod LP] = buf[p + d].
            d = (kh + 1) * W + (kw - PAD)              # always > 0 for W > PAD
            rolled = pltpu.roll(buf, shift=LP - d, axis=1)   # (R, LP), one roll per tap
            term = w_row * rolled
            grp = term if grp is None else grp + term
        if kw != PAD:                                  # center column never needs masking
            grp = grp * masks[kw]
        acc = grp if acc is None else acc + grp

    comb = acc[:nb] + acc[nb:]                         # combine sum/max partials (nb, LP)
    attn = jax.nn.sigmoid(comb[:, :HW] + bias)         # single slice, then sigmoid (nb, HW)

    # ---- gate multiply: re-read x in native dtype (no f32 copy held over the conv) ----
    x2 = x_ref[...]
    if gate_f32:
        out = x2.astype(jnp.float32) * attn[:, None, :]
    else:
        out = x2 * attn.astype(x2.dtype)[:, None, :]
    o_ref[...] = out.astype(o_ref.dtype)


def _device_kind():
    try:
        return jax.devices()[0].device_kind.lower()
    except Exception:
        return ""


def spatial_attn(x, conv_w, bn_gamma, bn_beta, bn_mean, bn_var, eps=1e-5):
    """x: (N, C, H, W); conv_w: (1, 2, 7, 7); BN params: (1,) each."""
    N, C, H, W = x.shape
    HW = H * W
    assert W > PAD, "kernel assumes W > conv padding"

    # Fold inference-mode BatchNorm into the conv (conv has bias=False), and fold
    # 1/C into the avg-channel taps so the kernel computes a channel sum.
    scale = bn_gamma / jnp.sqrt(bn_var + eps)                  # (1,)
    w_eff = conv_w * scale[:, None, None, None]                # (1, 2, 7, 7)
    b_eff = (bn_beta - bn_mean * scale).astype(jnp.float32)    # (1,)
    w_flat = jnp.concatenate(
        [(w_eff[0, 0] / C).reshape(-1), w_eff[0, 1].reshape(-1)]
    ).astype(jnp.float32)                                      # (98,)

    x_flat = x.reshape(N, C, HW)                               # lane-dense layout

    # Generation-aware VMEM budgets: v7x has 64 MiB physical + 2 TCs, v5e/v6e 128 MiB.
    kind = _device_kind()
    is_v7 = "v7" in kind
    is_old = any(t in kind for t in ("v5 lite", "v5e", "v4", "v3", "v2"))
    if is_v7:
        budget, vmem_limit = 24 << 20, 48 << 20
    else:
        budget, vmem_limit = 40 << 20, 64 << 20

    # Per-batch-element VMEM estimate: double-buffered in+out blocks, transient f32
    # reduction source, and the f32 LP-wide gate buffers (stacked/rolled/acc, 2 rows/elem).
    LF = (H + 2 * (PAD + 1)) * W
    LP = ((LF + 127) // 128) * 128
    per_elem = (4 * C * HW * x.dtype.itemsize) + (C * HW * 4) + (8 * LP * 4) + (4 * HW * 4)

    # On v7x keep the grid >= 2 steps so ("parallel",) shards across both TensorCores.
    max_nb = N // 2 if (is_v7 and N >= 2) else N
    nb = 1
    for d in range(1, max_nb + 1):
        if N % d == 0 and d * per_elem <= budget:
            nb = d
    if per_elem > budget:
        # TODO(synk): very large C*H*W (esp. on v7x's 64 MiB VMEM) should tile H with a
        # PAD-row halo instead of relying on nb=1 with a raised VMEM limit.
        vmem_limit = max(vmem_limit, min(2 * per_elem, (56 if is_v7 else 112) << 20))

    # bf16 gate multiply only where the VPU has bf16 lanes (v6e/v7x); f32 otherwise.
    gate_f32 = (x.dtype != jnp.bfloat16) or is_old

    kernel = functools.partial(spatial_attn_kernel, H=H, W=W, gate_f32=gate_f32)
    out = pl.pallas_call(
        kernel,
        out_shape=jax.ShapeDtypeStruct((N, C, HW), x.dtype),
        grid=(N // nb,),
        in_specs=[
            pl.BlockSpec((nb, C, HW), lambda n: (n, 0, 0)),
            pl.BlockSpec(memory_space=pltpu.SMEM),
            pl.BlockSpec(memory_space=pltpu.SMEM),
        ],
        out_specs=pl.BlockSpec((nb, C, HW), lambda n: (n, 0, 0)),
        compiler_params=pltpu.CompilerParams(
            dimension_semantics=("parallel",),
            vmem_limit_bytes=vmem_limit,
        ),
    )(x_flat, w_flat, b_eff)
    return out.reshape(N, C, H, W)


def spatial_attn_ref(x, conv_w, bn_gamma, bn_beta, bn_mean, bn_var, eps=1e-5):
    """Pure-JAX reference (mirrors the PyTorch forward in eval mode)."""
    avg = jnp.mean(x, axis=1, keepdims=True)
    mx = jnp.max(x, axis=1, keepdims=True)
    xa = jnp.concatenate([avg, mx], axis=1)
    y = lax.conv_general_dilated(
        xa, conv_w, window_strides=(1, 1), padding=[(PAD, PAD), (PAD, PAD)],
        dimension_numbers=("NCHW", "OIHW", "NCHW"))
    scale = bn_gamma / jnp.sqrt(bn_var + eps)
    y = y * scale[None, :, None, None] + (bn_beta - bn_mean * scale)[None, :, None, None]
    return x * jax.nn.sigmoid(y)


if __name__ == "__main__":
    key = jax.random.PRNGKey(0)
    kx, kw_ = jax.random.split(key)

    # small shapes consistent with the module: N=2, C=4, H=W=16
    x = jax.random.normal(kx, (2, 4, 16, 16), dtype=jnp.float32)

    # deterministic parameters (non-trivial BN stats to exercise the folding)
    conv_w = jax.random.normal(kw_, (1, 2, K, K), dtype=jnp.float32) * 0.1
    bn_gamma = jnp.full((1,), 1.1, jnp.float32)
    bn_beta = jnp.full((1,), 0.05, jnp.float32)
    bn_mean = jnp.full((1,), 0.02, jnp.float32)
    bn_var = jnp.full((1,), 0.9, jnp.float32)

    out = spatial_attn(x, conv_w, bn_gamma, bn_beta, bn_mean, bn_var)
    jax.block_until_ready(out)

    ref = spatial_attn_ref(x, conv_w, bn_gamma, bn_beta, bn_mean, bn_var)
    assert out.shape == ref.shape
    assert jnp.allclose(out, ref, atol=1e-5, rtol=1e-5), "mismatch vs JAX reference"

    print("KERNEL_OK")
</pallas_src>

<mosaic_0001>
module attributes {stable_mosaic.version = 11 : i64} {
  func.func @spatial_attn_kernel(%arg0: i32, %arg1: memref<2x4x256xf32, #tpu.memory_space<vmem>>, %arg2: memref<98xf32, #tpu.memory_space<smem>>, %arg3: memref<1xf32, #tpu.memory_space<smem>>, %arg4: memref<2x4x256xf32, #tpu.memory_space<vmem>>) attributes {dimension_semantics = [#tpu.dimension_semantics<parallel>], iteration_bounds = array<i64: 1>, scalar_prefetch = 0 : i64, scratch_operands = 0 : i64, tpu.core_type = #tpu.core_type<tc>, window_params = [{transform_indices = @transform_0, window_bounds = array<i64: 2, 4, 256>}, {transform_indices = @transform_1, window_bounds = array<i64: 98>}, {transform_indices = @transform_2, window_bounds = array<i64: 1>}, {transform_indices = @transform_3, window_bounds = array<i64: 2, 4, 256>}]} {
    %c0 = arith.constant 0 : index
    %c0_0 = arith.constant 0 : index
    %c0_1 = arith.constant 0 : index
    %0 = vector.load %arg1[%c0, %c0_0, %c0_1] : memref<2x4x256xf32, #tpu.memory_space<vmem>>, vector<2x4x256xf32>
    %cst = arith.constant dense<0.000000e+00> : vector<2x256xf32>
    %1 = vector.multi_reduction <add>, %0, %cst [1] : vector<2x4x256xf32> to vector<2x256xf32>
    %cst_2 = arith.constant dense<0xFF800000> : vector<2x256xf32>
    %2 = vector.multi_reduction <maximumf>, %0, %cst_2 [1] : vector<2x4x256xf32> to vector<2x256xf32>
    %3 = tpu.concatenate %1, %2 in 0 : vector<2x256xf32>, vector<2x256xf32> -> vector<4x256xf32>
    %c0_i32 = arith.constant 0 : i32
    %4 = arith.sitofp %c0_i32 : i32 to f32
    %5 = vector.broadcast %4 : f32 to vector<4x64xf32>
    %6 = tpu.concatenate %5, %3 in 1 : vector<4x64xf32>, vector<4x256xf32> -> vector<4x320xf32>
    %7 = vector.broadcast %4 : f32 to vector<4x64xf32>
    %8 = tpu.concatenate %6, %7 in 1 : vector<4x320xf32>, vector<4x64xf32> -> vector<4x384xf32>
    %9 = tpu.iota {dimensions = array<i32: 1>} : vector<1x384xi32>
    %c16_i32 = arith.constant 16 : i32
    %c0_i32_3 = arith.constant 0 : i32
    %10 = arith.cmpi eq, %c16_i32, %c0_i32_3 : i32
    %c1_i32 = arith.constant 1 : i32
    %11 = arith.select %10, %c1_i32, %c16_i32 : i32
    %12 = vector.broadcast %11 : i32 to vector<1x384xi32>
    %13 = arith.remsi %9, %12 : vector<1x384xi32>
    %c0_i32_4 = arith.constant 0 : i32
    %14 = vector.broadcast %c0_i32_4 : i32 to vector<1x384xi32>
    %15 = arith.cmpi ne, %13, %14 : vector<1x384xi32>
    %c0_i32_5 = arith.constant 0 : i32
    %16 = vector.broadcast %c0_i32_5 : i32 to vector<1x384xi32>
    %17 = arith.cmpi slt, %13, %16 : vector<1x384xi32>
    %c0_i32_6 = arith.constant 0 : i32
    %18 = arith.cmpi slt, %11, %c0_i32_6 : i32
    %19 = vector.broadcast %18 : i1 to vector<1x384xi1>
    %20 = vector.broadcast %19 : vector<1x384xi1> to vector<1x384xi1>
    %21 = arith.xori %17, %20 : vector<1x384xi1>
    %22 = arith.andi %21, %15 : vector<1x384xi1>
    %23 = vector.broadcast %11 : i32 to vector<1x384xi32>
    %24 = arith.addi %13, %23 : vector<1x384xi32>
    %25 = arith.select %22, %24, %13 : vector<1x384xi1>, vector<1x384xi32>
    %c-3_i32 = arith.constant -3 : i32
    %26 = vector.broadcast %c-3_i32 : i32 to vector<1x384xi32>
    %27 = arith.addi %25, %26 : vector<1x384xi32>
    %c0_i32_7 = arith.constant 0 : i32
    %28 = vector.broadcast %c0_i32_7 : i32 to vector<1x384xi32>
    %29 = arith.cmpi sge, %27, %28 : vector<1x384xi32>
    %c16_i32_8 = arith.constant 16 : i32
    %30 = vector.broadcast %c16_i32_8 : i32 to vector<1x384xi32>
    %31 = arith.cmpi slt, %27, %30 : vector<1x384xi32>
    %32 = arith.andi %29, %31 : vector<1x384xi1>
    %33 = arith.extui %32 : vector<1x384xi1> to vector<1x384xi32>
    %34 = arith.sitofp %33 : vector<1x384xi32> to vector<1x384xf32>
    %c-2_i32 = arith.constant -2 : i32
    %35 = vector.broadcast %c-2_i32 : i32 to vector<1x384xi32>
    %36 = arith.addi %25, %35 : vector<1x384xi32>
    %c0_i32_9 = arith.constant 0 : i32
    %37 = vector.broadcast %c0_i32_9 : i32 to vector<1x384xi32>
    %38 = arith.cmpi sge, %36, %37 : vector<1x384xi32>
    %c16_i32_10 = arith.constant 16 : i32
    %39 = vector.broadcast %c16_i32_10 : i32 to vector<1x384xi32>
    %40 = arith.cmpi slt, %36, %39 : vector<1x384xi32>
    %41 = arith.andi %38, %40 : vector<1x384xi1>
    %42 = arith.extui %41 : vector<1x384xi1> to vector<1x384xi32>
    %43 = arith.sitofp %42 : vector<1x384xi32> to vector<1x384xf32>
    %c-1_i32 = arith.constant -1 : i32
    %44 = vector.broadcast %c-1_i32 : i32 to vector<1x384xi32>
    %45 = arith.addi %25, %44 : vector<1x384xi32>
    %c0_i32_11 = arith.constant 0 : i32
    %46 = vector.broadcast %c0_i32_11 : i32 to vector<1x384xi32>
    %47 = arith.cmpi sge, %45, %46 : vector<1x384xi32>
    %c16_i32_12 = arith.constant 16 : i32
    %48 = vector.broadcast %c16_i32_12 : i32 to vector<1x384xi32>
    %49 = arith.cmpi slt, %45, %48 : vector<1x384xi32>
    %50 = arith.andi %47, %49 : vector<1x384xi1>
    %51 = arith.extui %50 : vector<1x384xi1> to vector<1x384xi32>
    %52 = arith.sitofp %51 : vector<1x384xi32> to vector<1x384xf32>
    %c1_i32_13 = arith.constant 1 : i32
    %53 = vector.broadcast %c1_i32_13 : i32 to vector<1x384xi32>
    %54 = arith.addi %25, %53 : vector<1x384xi32>
    %c0_i32_14 = arith.constant 0 : i32
    %55 = vector.broadcast %c0_i32_14 : i32 to vector<1x384xi32>
    %56 = arith.cmpi sge, %54, %55 : vector<1x384xi32>
    %c16_i32_15 = arith.constant 16 : i32
    %57 = vector.broadcast %c16_i32_15 : i32 to vector<1x384xi32>
    %58 = arith.cmpi slt, %54, %57 : vector<1x384xi32>
    %59 = arith.andi %56, %58 : vector<1x384xi1>
    %60 = arith.extui %59 : vector<1x384xi1> to vector<1x384xi32>
    %61 = arith.sitofp %60 : vector<1x384xi32> to vector<1x384xf32>
    %c2_i32 = arith.constant 2 : i32
    %62 = vector.broadcast %c2_i32 : i32 to vector<1x384xi32>
    %63 = arith.addi %25, %62 : vector<1x384xi32>
    %c0_i32_16 = arith.constant 0 : i32
    %64 = vector.broadcast %c0_i32_16 : i32 to vector<1x384xi32>
    %65 = arith.cmpi sge, %63, %64 : vector<1x384xi32>
    %c16_i32_17 = arith.constant 16 : i32
    %66 = vector.broadcast %c16_i32_17 : i32 to vector<1x384xi32>
    %67 = arith.cmpi slt, %63, %66 : vector<1x384xi32>
    %68 = arith.andi %65, %67 : vector<1x384xi1>
    %69 = arith.extui %68 : vector<1x384xi1> to vector<1x384xi32>
    %70 = arith.sitofp %69 : vector<1x384xi32> to vector<1x384xf32>
    %c3_i32 = arith.constant 3 : i32
    %71 = vector.broadcast %c3_i32 : i32 to vector<1x384xi32>
    %72 = arith.addi %25, %71 : vector<1x384xi32>
    %c0_i32_18 = arith.constant 0 : i32
    %73 = vector.broadcast %c0_i32_18 : i32 to vector<1x384xi32>
    %74 = arith.cmpi sge, %72, %73 : vector<1x384xi32>
    %c16_i32_19 = arith.constant 16 : i32
    %75 = vector.broadcast %c16_i32_19 : i32 to vector<1x384xi32>
    %76 = arith.cmpi slt, %72, %75 : vector<1x384xi32>
    %77 = arith.andi %74, %76 : vector<1x384xi1>
    %78 = arith.extui %77 : vector<1x384xi1> to vector<1x384xi32>
    %79 = arith.sitofp %78 : vector<1x384xi32> to vector<1x384xf32>
    %cst_20 = arith.constant 1.000000e+00 : f32
    %80 = vector.broadcast %cst_20 : f32 to vector<2x1xf32>
    %cst_21 = arith.constant 0.000000e+00 : f32
    %81 = vector.broadcast %cst_21 : f32 to vector<2x1xf32>
    %82 = tpu.concatenate %80, %81 in 0 : vector<2x1xf32>, vector<2x1xf32> -> vector<4x1xf32>
    %c0_22 = arith.constant 0 : index
    %83 = memref.load %arg3[%c0_22] : memref<1xf32, #tpu.memory_space<smem>>
    %c0_23 = arith.constant 0 : index
    %84 = memref.load %arg2[%c0_23] : memref<98xf32, #tpu.memory_space<smem>>
    %c49 = arith.constant 49 : index
    %85 = memref.load %arg2[%c49] : memref<98xf32, #tpu.memory_space<smem>>
    %86 = arith.subf %84, %85 : f32
    %87 = vector.broadcast %86 : f32 to vector<4x1xf32>
    %88 = arith.mulf %87, %82 : vector<4x1xf32>
    %89 = vector.broadcast %85 : f32 to vector<4x1xf32>
    %90 = arith.addf %89, %88 : vector<4x1xf32>
    %c371_i32 = arith.constant 371 : i32
    %91 = tpu.dynamic_rotate %8 by %c371_i32 dim 1 : vector<4x384xf32>, i32 -> vector<4x384xf32>
    %92 = vector.broadcast %90 : vector<4x1xf32> to vector<4x384xf32>
    %93 = arith.mulf %92, %91 : vector<4x384xf32>
    %c7 = arith.constant 7 : index
    %94 = memref.load %arg2[%c7] : memref<98xf32, #tpu.memory_space<smem>>
    %c56 = arith.constant 56 : index
    %95 = memref.load %arg2[%c56] : memref<98xf32, #tpu.memory_space<smem>>
    %96 = arith.subf %94, %95 : f32
    %97 = vector.broadcast %96 : f32 to vector<4x1xf32>
    %98 = arith.mulf %97, %82 : vector<4x1xf32>
    %99 = vector.broadcast %95 : f32 to vector<4x1xf32>
    %100 = arith.addf %99, %98 : vector<4x1xf32>
    %c355_i32 = arith.constant 355 : i32
    %101 = tpu.dynamic_rotate %8 by %c355_i32 dim 1 : vector<4x384xf32>, i32 -> vector<4x384xf32>
    %102 = vector.broadcast %100 : vector<4x1xf32> to vector<4x384xf32>
    %103 = arith.mulf %102, %101 : vector<4x384xf32>
    %104 = arith.addf %93, %103 : vector<4x384xf32>
    %c14 = arith.constant 14 : index
    %105 = memref.load %arg2[%c14] : memref<98xf32, #tpu.memory_space<smem>>
    %c63 = arith.constant 63 : index
    %106 = memref.load %arg2[%c63] : memref<98xf32, #tpu.memory_space<smem>>
    %107 = arith.subf %105, %106 : f32
    %108 = vector.broadcast %107 : f32 to vector<4x1xf32>
    %109 = arith.mulf %108, %82 : vector<4x1xf32>
    %110 = vector.broadcast %106 : f32 to vector<4x1xf32>
    %111 = arith.addf %110, %109 : vector<4x1xf32>
    %c339_i32 = arith.constant 339 : i32
    %112 = tpu.dynamic_rotate %8 by %c339_i32 dim 1 : vector<4x384xf32>, i32 -> vector<4x384xf32>
    %113 = vector.broadcast %111 : vector<4x1xf32> to vector<4x384xf32>
    %114 = arith.mulf %113, %112 : vector<4x384xf32>
    %115 = arith.addf %104, %114 : vector<4x384xf32>
    %c21 = arith.constant 21 : index
    %116 = memref.load %arg2[%c21] : memref<98xf32, #tpu.memory_space<smem>>
    %c70 = arith.constant 70 : index
    %117 = memref.load %arg2[%c70] : memref<98xf32, #tpu.memory_space<smem>>
    %118 = arith.subf %116, %117 : f32
    %119 = vector.broadcast %118 : f32 to vector<4x1xf32>
    %120 = arith.mulf %119, %82 : vector<4x1xf32>
    %121 = vector.broadcast %117 : f32 to vector<4x1xf32>
    %122 = arith.addf %121, %120 : vector<4x1xf32>
    %c323_i32 = arith.constant 323 : i32
    %123 = tpu.dynamic_rotate %8 by %c323_i32 dim 1 : vector<4x384xf32>, i32 -> vector<4x384xf32>
    %124 = vector.broadcast %122 : vector<4x1xf32> to vector<4x384xf32>
    %125 = arith.mulf %124, %123 : vector<4x384xf32>
    %126 = arith.addf %115, %125 : vector<4x384xf32>
    %c28 = arith.constant 28 : index
    %127 = memref.load %arg2[%c28] : memref<98xf32, #tpu.memory_space<smem>>
    %c77 = arith.constant 77 : index
    %128 = memref.load %arg2[%c77] : memref<98xf32, #tpu.memory_space<smem>>
    %129 = arith.subf %127, %128 : f32
    %130 = vector.broadcast %129 : f32 to vector<4x1xf32>
    %131 = arith.mulf %130, %82 : vector<4x1xf32>
    %132 = vector.broadcast %128 : f32 to vector<4x1xf32>
    %133 = arith.addf %132, %131 : vector<4x1xf32>
    %c307_i32 = arith.constant 307 : i32
    %134 = tpu.dynamic_rotate %8 by %c307_i32 dim 1 : vector<4x384xf32>, i32 -> vector<4x384xf32>
    %135 = vector.broadcast %133 : vector<4x1xf32> to vector<4x384xf32>
    %136 = arith.mulf %135, %134 : vector<4x384xf32>
    %137 = arith.addf %126, %136 : vector<4x384xf32>
    %c35 = arith.constant 35 : index
    %138 = memref.load %arg2[%c35] : memref<98xf32, #tpu.memory_space<smem>>
    %c84 = arith.constant 84 : index
    %139 = memref.load %arg2[%c84] : memref<98xf32, #tpu.memory_space<smem>>
    %140 = arith.subf %138, %139 : f32
    %141 = vector.broadcast %140 : f32 to vector<4x1xf32>
    %142 = arith.mulf %141, %82 : vector<4x1xf32>
    %143 = vector.broadcast %139 : f32 to vector<4x1xf32>
    %144 = arith.addf %143, %142 : vector<4x1xf32>
    %c291_i32 = arith.constant 291 : i32
    %145 = tpu.dynamic_rotate %8 by %c291_i32 dim 1 : vector<4x384xf32>, i32 -> vector<4x384xf32>
    %146 = vector.broadcast %144 : vector<4x1xf32> to vector<4x384xf32>
    %147 = arith.mulf %146, %145 : vector<4x384xf32>
    %148 = arith.addf %137, %147 : vector<4x384xf32>
    %c42 = arith.constant 42 : index
    %149 = memref.load %arg2[%c42] : memref<98xf32, #tpu.memory_space<smem>>
    %c91 = arith.constant 91 : index
    %150 = memref.load %arg2[%c91] : memref<98xf32, #tpu.memory_space<smem>>
    %151 = arith.subf %149, %150 : f32
    %152 = vector.broadcast %151 : f32 to vector<4x1xf32>
    %153 = arith.mulf %152, %82 : vector<4x1xf32>
    %154 = vector.broadcast %150 : f32 to vector<4x1xf32>
    %155 = arith.addf %154, %153 : vector<4x1xf32>
    %c275_i32 = arith.constant 275 : i32
    %156 = tpu.dynamic_rotate %8 by %c275_i32 dim 1 : vector<4x384xf32>, i32 -> vector<4x384xf32>
    %157 = vector.broadcast %155 : vector<4x1xf32> to vector<4x384xf32>
    %158 = arith.mulf %157, %156 : vector<4x384xf32>
    %159 = arith.addf %148, %158 : vector<4x384xf32>
    %160 = vector.broadcast %34 : vector<1x384xf32> to vector<4x384xf32>
    %161 = arith.mulf %159, %160 : vector<4x384xf32>
    %c1 = arith.constant 1 : index
    %162 = memref.load %arg2[%c1] : memref<98xf32, #tpu.memory_space<smem>>
    %c50 = arith.constant 50 : index
    %163 = memref.load %arg2[%c50] : memref<98xf32, #tpu.memory_space<smem>>
    %164 = arith.subf %162, %163 : f32
    %165 = vector.broadcast %164 : f32 to vector<4x1xf32>
    %166 = arith.mulf %165, %82 : vector<4x1xf32>
    %167 = vector.broadcast %163 : f32 to vector<4x1xf32>
    %168 = arith.addf %167, %166 : vector<4x1xf32>
    %c370_i32 = arith.constant 370 : i32
    %169 = tpu.dynamic_rotate %8 by %c370_i32 dim 1 : vector<4x384xf32>, i32 -> vector<4x384xf32>
    %170 = vector.broadcast %168 : vector<4x1xf32> to vector<4x384xf32>
    %171 = arith.mulf %170, %169 : vector<4x384xf32>
    %c8 = arith.constant 8 : index
    %172 = memref.load %arg2[%c8] : memref<98xf32, #tpu.memory_space<smem>>
    %c57 = arith.constant 57 : index
    %173 = memref.load %arg2[%c57] : memref<98xf32, #tpu.memory_space<smem>>
    %174 = arith.subf %172, %173 : f32
    %175 = vector.broadcast %174 : f32 to vector<4x1xf32>
    %176 = arith.mulf %175, %82 : vector<4x1xf32>
    %177 = vector.broadcast %173 : f32 to vector<4x1xf32>
    %178 = arith.addf %177, %176 : vector<4x1xf32>
    %c354_i32 = arith.constant 354 : i32
    %179 = tpu.dynamic_rotate %8 by %c354_i32 dim 1 : vector<4x384xf32>, i32 -> vector<4x384xf32>
    %180 = vector.broadcast %178 : vector<4x1xf32> to vector<4x384xf32>
    %181 = arith.mulf %180, %179 : vector<4x384xf32>
    %182 = arith.addf %171, %181 : vector<4x384xf32>
    %c15 = arith.constant 15 : index
    %183 = memref.load %arg2[%c15] : memref<98xf32, #tpu.memory_space<smem>>
    %c64 = arith.constant 64 : index
    %184 = memref.load %arg2[%c64] : memref<98xf32, #tpu.memory_space<smem>>
    %185 = arith.subf %183, %184 : f32
    %186 = vector.broadcast %185 : f32 to vector<4x1xf32>
    %187 = arith.mulf %186, %82 : vector<4x1xf32>
    %188 = vector.broadcast %184 : f32 to vector<4x1xf32>
    %189 = arith.addf %188, %187 : vector<4x1xf32>
    %c338_i32 = arith.constant 338 : i32
    %190 = tpu.dynamic_rotate %8 by %c338_i32 dim 1 : vector<4x384xf32>, i32 -> vector<4x384xf32>
    %191 = vector.broadcast %189 : vector<4x1xf32> to vector<4x384xf32>
    %192 = arith.mulf %191, %190 : vector<4x384xf32>
    %193 = arith.addf %182, %192 : vector<4x384xf32>
    %c22 = arith.constant 22 : index
    %194 = memref.load %arg2[%c22] : memref<98xf32, #tpu.memory_space<smem>>
    %c71 = arith.constant 71 : index
    %195 = memref.load %arg2[%c71] : memref<98xf32, #tpu.memory_space<smem>>
    %196 = arith.subf %194, %195 : f32
    %197 = vector.broadcast %196 : f32 to vector<4x1xf32>
    %198 = arith.mulf %197, %82 : vector<4x1xf32>
    %199 = vector.broadcast %195 : f32 to vector<4x1xf32>
    %200 = arith.addf %199, %198 : vector<4x1xf32>
    %c322_i32 = arith.constant 322 : i32
    %201 = tpu.dynamic_rotate %8 by %c322_i32 dim 1 : vector<4x384xf32>, i32 -> vector<4x384xf32>
    %202 = vector.broadcast %200 : vector<4x1xf32> to vector<4x384xf32>
    %203 = arith.mulf %202, %201 : vector<4x384xf32>
    %204 = arith.addf %193, %203 : vector<4x384xf32>
    %c29 = arith.constant 29 : index
    %205 = memref.load %arg2[%c29] : memref<98xf32, #tpu.memory_space<smem>>
    %c78 = arith.constant 78 : index
    %206 = memref.load %arg2[%c78] : memref<98xf32, #tpu.memory_space<smem>>
    %207 = arith.subf %205, %206 : f32
    %208 = vector.broadcast %207 : f32 to vector<4x1xf32>
    %209 = arith.mulf %208, %82 : vector<4x1xf32>
    %210 = vector.broadcast %206 : f32 to vector<4x1xf32>
    %211 = arith.addf %210, %209 : vector<4x1xf32>
    %c306_i32 = arith.constant 306 : i32
    %212 = tpu.dynamic_rotate %8 by %c306_i32 dim 1 : vector<4x384xf32>, i32 -> vector<4x384xf32>
    %213 = vector.broadcast %211 : vector<4x1xf32> to vector<4x384xf32>
    %214 = arith.mulf %213, %212 : vector<4x384xf32>
    %215 = arith.addf %204, %214 : vector<4x384xf32>
    %c36 = arith.constant 36 : index
    %216 = memref.load %arg2[%c36] : memref<98xf32, #tpu.memory_space<smem>>
    %c85 = arith.constant 85 : index
    %217 = memref.load %arg2[%c85] : memref<98xf32, #tpu.memory_space<smem>>
    %218 = arith.subf %216, %217 : f32
    %219 = vector.broadcast %218 : f32 to vector<4x1xf32>
    %220 = arith.mulf %219, %82 : vector<4x1xf32>
    %221 = vector.broadcast %217 : f32 to vector<4x1xf32>
    %222 = arith.addf %221, %220 : vector<4x1xf32>
    %c290_i32 = arith.constant 290 : i32
    %223 = tpu.dynamic_rotate %8 by %c290_i32 dim 1 : vector<4x384xf32>, i32 -> vector<4x384xf32>
    %224 = vector.broadcast %222 : vector<4x1xf32> to vector<4x384xf32>
    %225 = arith.mulf %224, %223 : vector<4x384xf32>
    %226 = arith.addf %215, %225 : vector<4x384xf32>
    %c43 = arith.constant 43 : index
    %227 = memref.load %arg2[%c43] : memref<98xf32, #tpu.memory_space<smem>>
    %c92 = arith.constant 92 : index
    %228 = memref.load %arg2[%c92] : memref<98xf32, #tpu.memory_space<smem>>
    %229 = arith.subf %227, %228 : f32
    %230 = vector.broadcast %229 : f32 to vector<4x1xf32>
    %231 = arith.mulf %230, %82 : vector<4x1xf32>
    %232 = vector.broadcast %228 : f32 to vector<4x1xf32>
    %233 = arith.addf %232, %231 : vector<4x1xf32>
    %c274_i32 = arith.constant 274 : i32
    %234 = tpu.dynamic_rotate %8 by %c274_i32 dim 1 : vector<4x384xf32>, i32 -> vector<4x384xf32>
    %235 = vector.broadcast %233 : vector<4x1xf32> to vector<4x384xf32>
    %236 = arith.mulf %235, %234 : vector<4x384xf32>
    %237 = arith.addf %226, %236 : vector<4x384xf32>
    %238 = vector.broadcast %43 : vector<1x384xf32> to vector<4x384xf32>
    %239 = arith.mulf %237, %238 : vector<4x384xf32>
    %240 = arith.addf %161, %239 : vector<4x384xf32>
    %c2 = arith.constant 2 : index
    %241 = memref.load %arg2[%c2] : memref<98xf32, #tpu.memory_space<smem>>
    %c51 = arith.constant 51 : index
    %242 = memref.load %arg2[%c51] : memref<98xf32, #tpu.memory_space<smem>>
    %243 = arith.subf %241, %242 : f32
    %244 = vector.broadcast %243 : f32 to vector<4x1xf32>
    %245 = arith.mulf %244, %82 : vector<4x1xf32>
    %246 = vector.broadcast %242 : f32 to vector<4x1xf32>
    %247 = arith.addf %246, %245 : vector<4x1xf32>
    %c369_i32 = arith.constant 369 : i32
    %248 = tpu.dynamic_rotate %8 by %c369_i32 dim 1 : vector<4x384xf32>, i32 -> vector<4x384xf32>
    %249 = vector.broadcast %247 : vector<4x1xf32> to vector<4x384xf32>
    %250 = arith.mulf %249, %248 : vector<4x384xf32>
    %c9 = arith.constant 9 : index
    %251 = memref.load %arg2[%c9] : memref<98xf32, #tpu.memory_space<smem>>
    %c58 = arith.constant 58 : index
    %252 = memref.load %arg2[%c58] : memref<98xf32, #tpu.memory_space<smem>>
    %253 = arith.subf %251, %252 : f32
    %254 = vector.broadcast %253 : f32 to vector<4x1xf32>
    %255 = arith.mulf %254, %82 : vector<4x1xf32>
    %256 = vector.broadcast %252 : f32 to vector<4x1xf32>
    %257 = arith.addf %256, %255 : vector<4x1xf32>
    %c353_i32 = arith.constant 353 : i32
    %258 = tpu.dynamic_rotate %8 by %c353_i32 dim 1 : vector<4x384xf32>, i32 -> vector<4x384xf32>
    %259 = vector.broadcast %257 : vector<4x1xf32> to vector<4x384xf32>
    %260 = arith.mulf %259, %258 : vector<4x384xf32>
    %261 = arith.addf %250, %260 : vector<4x384xf32>
    %c16 = arith.constant 16 : index
    %262 = memref.load %arg2[%c16] : memref<98xf32, #tpu.memory_space<smem>>
    %c65 = arith.constant 65 : index
    %263 = memref.load %arg2[%c65] : memref<98xf32, #tpu.memory_space<smem>>
    %264 = arith.subf %262, %263 : f32
    %265 = vector.broadcast %264 : f32 to vector<4x1xf32>
    %266 = arith.mulf %265, %82 : vector<4x1xf32>
    %267 = vector.broadcast %263 : f32 to vector<4x1xf32>
    %268 = arith.addf %267, %266 : vector<4x1xf32>
    %c337_i32 = arith.constant 337 : i32
    %269 = tpu.dynamic_rotate %8 by %c337_i32 dim 1 : vector<4x384xf32>, i32 -> vector<4x384xf32>
    %270 = vector.broadcast %268 : vector<4x1xf32> to vector<4x384xf32>
    %271 = arith.mulf %270, %269 : vector<4x384xf32>
    %272 = arith.addf %261, %271 : vector<4x384xf32>
    %c23 = arith.constant 23 : index
    %273 = memref.load %arg2[%c23] : memref<98xf32, #tpu.memory_space<smem>>
    %c72 = arith.constant 72 : index
    %274 = memref.load %arg2[%c72] : memref<98xf32, #tpu.memory_space<smem>>
    %275 = arith.subf %273, %274 : f32
    %276 = vector.broadcast %275 : f32 to vector<4x1xf32>
    %277 = arith.mulf %276, %82 : vector<4x1xf32>
    %278 = vector.broadcast %274 : f32 to vector<4x1xf32>
    %279 = arith.addf %278, %277 : vector<4x1xf32>
    %c321_i32 = arith.constant 321 : i32
    %280 = tpu.dynamic_rotate %8 by %c321_i32 dim 1 : vector<4x384xf32>, i32 -> vector<4x384xf32>
    %281 = vector.broadcast %279 : vector<4x1xf32> to vector<4x384xf32>
    %282 = arith.mulf %281, %280 : vector<4x384xf32>
    %283 = arith.addf %272, %282 : vector<4x384xf32>
    %c30 = arith.constant 30 : index
    %284 = memref.load %arg2[%c30] : memref<98xf32, #tpu.memory_space<smem>>
    %c79 = arith.constant 79 : index
    %285 = memref.load %arg2[%c79] : memref<98xf32, #tpu.memory_space<smem>>
    %286 = arith.subf %284, %285 : f32
    %287 = vector.broadcast %286 : f32 to vector<4x1xf32>
    %288 = arith.mulf %287, %82 : vector<4x1xf32>
    %289 = vector.broadcast %285 : f32 to vector<4x1xf32>
    %290 = arith.addf %289, %288 : vector<4x1xf32>
    %c305_i32 = arith.constant 305 : i32
    %291 = tpu.dynamic_rotate %8 by %c305_i32 dim 1 : vector<4x384xf32>, i32 -> vector<4x384xf32>
    %292 = vector.broadcast %290 : vector<4x1xf32> to vector<4x384xf32>
    %293 = arith.mulf %292, %291 : vector<4x384xf32>
    %294 = arith.addf %283, %293 : vector<4x384xf32>
    %c37 = arith.constant 37 : index
    %295 = memref.load %arg2[%c37] : memref<98xf32, #tpu.memory_space<smem>>
    %c86 = arith.constant 86 : index
    %296 = memref.load %arg2[%c86] : memref<98xf32, #tpu.memory_space<smem>>
    %297 = arith.subf %295, %296 : f32
    %298 = vector.broadcast %297 : f32 to vector<4x1xf32>
    %299 = arith.mulf %298, %82 : vector<4x1xf32>
    %300 = vector.broadcast %296 : f32 to vector<4x1xf32>
    %301 = arith.addf %300, %299 : vector<4x1xf32>
    %c289_i32 = arith.constant 289 : i32
    %302 = tpu.dynamic_rotate %8 by %c289_i32 dim 1 : vector<4x384xf32>, i32 -> vector<4x384xf32>
    %303 = vector.broadcast %301 : vector<4x1xf32> to vector<4x384xf32>
    %304 = arith.mulf %303, %302 : vector<4x384xf32>
    %305 = arith.addf %294, %304 : vector<4x384xf32>
    %c44 = arith.constant 44 : index
    %306 = memref.load %arg2[%c44] : memref<98xf32, #tpu.memory_space<smem>>
    %c93 = arith.constant 93 : index
    %307 = memref.load %arg2[%c93] : memref<98xf32, #tpu.memory_space<smem>>
    %308 = arith.subf %306, %307 : f32
    %309 = vector.broadcast %308 : f32 to vector<4x1xf32>
    %310 = arith.mulf %309, %82 : vector<4x1xf32>
    %311 = vector.broadcast %307 : f32 to vector<4x1xf32>
    %312 = arith.addf %311, %310 : vector<4x1xf32>
    %c273_i32 = arith.constant 273 : i32
    %313 = tpu.dynamic_rotate %8 by %c273_i32 dim 1 : vector<4x384xf32>, i32 -> vector<4x384xf32>
    %314 = vector.broadcast %312 : vector<4x1xf32> to vector<4x384xf32>
    %315 = arith.mulf %314, %313 : vector<4x384xf32>
    %316 = arith.addf %305, %315 : vector<4x384xf32>
    %317 = vector.broadcast %52 : vector<1x384xf32> to vector<4x384xf32>
    %318 = arith.mulf %316, %317 : vector<4x384xf32>
    %319 = arith.addf %240, %318 : vector<4x384xf32>
    %c3 = arith.constant 3 : index
    %320 = memref.load %arg2[%c3] : memref<98xf32, #tpu.memory_space<smem>>
    %c52 = arith.constant 52 : index
    %321 = memref.load %arg2[%c52] : memref<98xf32, #tpu.memory_space<smem>>
    %322 = arith.subf %320, %321 : f32
    %323 = vector.broadcast %322 : f32 to vector<4x1xf32>
    %324 = arith.mulf %323, %82 : vector<4x1xf32>
    %325 = vector.broadcast %321 : f32 to vector<4x1xf32>
    %326 = arith.addf %325, %324 : vector<4x1xf32>
    %c368_i32 = arith.constant 368 : i32
    %327 = tpu.dynamic_rotate %8 by %c368_i32 dim 1 : vector<4x384xf32>, i32 -> vector<4x384xf32>
    %328 = vector.broadcast %326 : vector<4x1xf32> to vector<4x384xf32>
    %329 = arith.mulf %328, %327 : vector<4x384xf32>
    %c10 = arith.constant 10 : index
    %330 = memref.load %arg2[%c10] : memref<98xf32, #tpu.memory_space<smem>>
    %c59 = arith.constant 59 : index
    %331 = memref.load %arg2[%c59] : memref<98xf32, #tpu.memory_space<smem>>
    %332 = arith.subf %330, %331 : f32
    %333 = vector.broadcast %332 : f32 to vector<4x1xf32>
    %334 = arith.mulf %333, %82 : vector<4x1xf32>
    %335 = vector.broadcast %331 : f32 to vector<4x1xf32>
    %336 = arith.addf %335, %334 : vector<4x1xf32>
    %c352_i32 = arith.constant 352 : i32
    %337 = tpu.dynamic_rotate %8 by %c352_i32 dim 1 : vector<4x384xf32>, i32 -> vector<4x384xf32>
    %338 = vector.broadcast %336 : vector<4x1xf32> to vector<4x384xf32>
    %339 = arith.mulf %338, %337 : vector<4x384xf32>
    %340 = arith.addf %329, %339 : vector<4x384xf32>
    %c17 = arith.constant 17 : index
    %341 = memref.load %arg2[%c17] : memref<98xf32, #tpu.memory_space<smem>>
    %c66 = arith.constant 66 : index
    %342 = memref.load %arg2[%c66] : memref<98xf32, #tpu.memory_space<smem>>
    %343 = arith.subf %341, %342 : f32
    %344 = vector.broadcast %343 : f32 to vector<4x1xf32>
    %345 = arith.mulf %344, %82 : vector<4x1xf32>
    %346 = vector.broadcast %342 : f32 to vector<4x1xf32>
    %347 = arith.addf %346, %345 : vector<4x1xf32>
    %c336_i32 = arith.constant 336 : i32
    %348 = tpu.dynamic_rotate %8 by %c336_i32 dim 1 : vector<4x384xf32>, i32 -> vector<4x384xf32>
    %349 = vector.broadcast %347 : vector<4x1xf32> to vector<4x384xf32>
    %350 = arith.mulf %349, %348 : vector<4x384xf32>
    %351 = arith.addf %340, %350 : vector<4x384xf32>
    %c24 = arith.constant 24 : index
    %352 = memref.load %arg2[%c24] : memref<98xf32, #tpu.memory_space<smem>>
    %c73 = arith.constant 73 : index
    %353 = memref.load %arg2[%c73] : memref<98xf32, #tpu.memory_space<smem>>
    %354 = arith.subf %352, %353 : f32
    %355 = vector.broadcast %354 : f32 to vector<4x1xf32>
    %356 = arith.mulf %355, %82 : vector<4x1xf32>
    %357 = vector.broadcast %353 : f32 to vector<4x1xf32>
    %358 = arith.addf %357, %356 : vector<4x1xf32>
    %c320_i32 = arith.constant 320 : i32
    %359 = tpu.dynamic_rotate %8 by %c320_i32 dim 1 : vector<4x384xf32>, i32 -> vector<4x384xf32>
    %360 = vector.broadcast %358 : vector<4x1xf32> to vector<4x384xf32>
    %361 = arith.mulf %360, %359 : vector<4x384xf32>
    %362 = arith.addf %351, %361 : vector<4x384xf32>
    %c31 = arith.constant 31 : index
    %363 = memref.load %arg2[%c31] : memref<98xf32, #tpu.memory_space<smem>>
    %c80 = arith.constant 80 : index
    %364 = memref.load %arg2[%c80] : memref<98xf32, #tpu.memory_space<smem>>
    %365 = arith.subf %363, %364 : f32
    %366 = vector.broadcast %365 : f32 to vector<4x1xf32>
    %367 = arith.mulf %366, %82 : vector<4x1xf32>
    %368 = vector.broadcast %364 : f32 to vector<4x1xf32>
    %369 = arith.addf %368, %367 : vector<4x1xf32>
    %c304_i32 = arith.constant 304 : i32
    %370 = tpu.dynamic_rotate %8 by %c304_i32 dim 1 : vector<4x384xf32>, i32 -> vector<4x384xf32>
    %371 = vector.broadcast %369 : vector<4x1xf32> to vector<4x384xf32>
    %372 = arith.mulf %371, %370 : vector<4x384xf32>
    %373 = arith.addf %362, %372 : vector<4x384xf32>
    %c38 = arith.constant 38 : index
    %374 = memref.load %arg2[%c38] : memref<98xf32, #tpu.memory_space<smem>>
    %c87 = arith.constant 87 : index
    %375 = memref.load %arg2[%c87] : memref<98xf32, #tpu.memory_space<smem>>
    %376 = arith.subf %374, %375 : f32
    %377 = vector.broadcast %376 : f32 to vector<4x1xf32>
    %378 = arith.mulf %377, %82 : vector<4x1xf32>
    %379 = vector.broadcast %375 : f32 to vector<4x1xf32>
    %380 = arith.addf %379, %378 : vector<4x1xf32>
    %c288_i32 = arith.constant 288 : i32
    %381 = tpu.dynamic_rotate %8 by %c288_i32 dim 1 : vector<4x384xf32>, i32 -> vector<4x384xf32>
    %382 = vector.broadcast %380 : vector<4x1xf32> to vector<4x384xf32>
    %383 = arith.mulf %382, %381 : vector<4x384xf32>
    %384 = arith.addf %373, %383 : vector<4x384xf32>
    %c45 = arith.constant 45 : index
    %385 = memref.load %arg2[%c45] : memref<98xf32, #tpu.memory_space<smem>>
    %c94 = arith.constant 94 : index
    %386 = memref.load %arg2[%c94] : memref<98xf32, #tpu.memory_space<smem>>
    %387 = arith.subf %385, %386 : f32
    %388 = vector.broadcast %387 : f32 to vector<4x1xf32>
    %389 = arith.mulf %388, %82 : vector<4x1xf32>
    %390 = vector.broadcast %386 : f32 to vector<4x1xf32>
    %391 = arith.addf %390, %389 : vector<4x1xf32>
    %c272_i32 = arith.constant 272 : i32
    %392 = tpu.dynamic_rotate %8 by %c272_i32 dim 1 : vector<4x384xf32>, i32 -> vector<4x384xf32>
    %393 = vector.broadcast %391 : vector<4x1xf32> to vector<4x384xf32>
    %394 = arith.mulf %393, %392 : vector<4x384xf32>
    %395 = arith.addf %384, %394 : vector<4x384xf32>
    %396 = arith.addf %319, %395 : vector<4x384xf32>
    %c4 = arith.constant 4 : index
    %397 = memref.load %arg2[%c4] : memref<98xf32, #tpu.memory_space<smem>>
    %c53 = arith.constant 53 : index
    %398 = memref.load %arg2[%c53] : memref<98xf32, #tpu.memory_space<smem>>
    %399 = arith.subf %397, %398 : f32
    %400 = vector.broadcast %399 : f32 to vector<4x1xf32>
    %401 = arith.mulf %400, %82 : vector<4x1xf32>
    %402 = vector.broadcast %398 : f32 to vector<4x1xf32>
    %403 = arith.addf %402, %401 : vector<4x1xf32>
    %c367_i32 = arith.constant 367 : i32
    %404 = tpu.dynamic_rotate %8 by %c367_i32 dim 1 : vector<4x384xf32>, i32 -> vector<4x384xf32>
    %405 = vector.broadcast %403 : vector<4x1xf32> to vector<4x384xf32>
    %406 = arith.mulf %405, %404 : vector<4x384xf32>
    %c11 = arith.constant 11 : index
    %407 = memref.load %arg2[%c11] : memref<98xf32, #tpu.memory_space<smem>>
    %c60 = arith.constant 60 : index
    %408 = memref.load %arg2[%c60] : memref<98xf32, #tpu.memory_space<smem>>
    %409 = arith.subf %407, %408 : f32
    %410 = vector.broadcast %409 : f32 to vector<4x1xf32>
    %411 = arith.mulf %410, %82 : vector<4x1xf32>
    %412 = vector.broadcast %408 : f32 to vector<4x1xf32>
    %413 = arith.addf %412, %411 : vector<4x1xf32>
    %c351_i32 = arith.constant 351 : i32
    %414 = tpu.dynamic_rotate %8 by %c351_i32 dim 1 : vector<4x384xf32>, i32 -> vector<4x384xf32>
    %415 = vector.broadcast %413 : vector<4x1xf32> to vector<4x384xf32>
    %416 = arith.mulf %415, %414 : vector<4x384xf32>
    %417 = arith.addf %406, %416 : vector<4x384xf32>
    %c18 = arith.constant 18 : index
    %418 = memref.load %arg2[%c18] : memref<98xf32, #tpu.memory_space<smem>>
    %c67 = arith.constant 67 : index
    %419 = memref.load %arg2[%c67] : memref<98xf32, #tpu.memory_space<smem>>
    %420 = arith.subf %418, %419 : f32
    %421 = vector.broadcast %420 : f32 to vector<4x1xf32>
    %422 = arith.mulf %421, %82 : vector<4x1xf32>
    %423 = vector.broadcast %419 : f32 to vector<4x1xf32>
    %424 = arith.addf %423, %422 : vector<4x1xf32>
    %c335_i32 = arith.constant 335 : i32
    %425 = tpu.dynamic_rotate %8 by %c335_i32 dim 1 : vector<4x384xf32>, i32 -> vector<4x384xf32>
    %426 = vector.broadcast %424 : vector<4x1xf32> to vector<4x384xf32>
    %427 = arith.mulf %426, %425 : vector<4x384xf32>
    %428 = arith.addf %417, %427 : vector<4x384xf32>
    %c25 = arith.constant 25 : index
    %429 = memref.load %arg2[%c25] : memref<98xf32, #tpu.memory_space<smem>>
    %c74 = arith.constant 74 : index
    %430 = memref.load %arg2[%c74] : memref<98xf32, #tpu.memory_space<smem>>
    %431 = arith.subf %429, %430 : f32
    %432 = vector.broadcast %431 : f32 to vector<4x1xf32>
    %433 = arith.mulf %432, %82 : vector<4x1xf32>
    %434 = vector.broadcast %430 : f32 to vector<4x1xf32>
    %435 = arith.addf %434, %433 : vector<4x1xf32>
    %c319_i32 = arith.constant 319 : i32
    %436 = tpu.dynamic_rotate %8 by %c319_i32 dim 1 : vector<4x384xf32>, i32 -> vector<4x384xf32>
    %437 = vector.broadcast %435 : vector<4x1xf32> to vector<4x384xf32>
    %438 = arith.mulf %437, %436 : vector<4x384xf32>
    %439 = arith.addf %428, %438 : vector<4x384xf32>
    %c32 = arith.constant 32 : index
    %440 = memref.load %arg2[%c32] : memref<98xf32, #tpu.memory_space<smem>>
    %c81 = arith.constant 81 : index
    %441 = memref.load %arg2[%c81] : memref<98xf32, #tpu.memory_space<smem>>
    %442 = arith.subf %440, %441 : f32
    %443 = vector.broadcast %442 : f32 to vector<4x1xf32>
    %444 = arith.mulf %443, %82 : vector<4x1xf32>
    %445 = vector.broadcast %441 : f32 to vector<4x1xf32>
    %446 = arith.addf %445, %444 : vector<4x1xf32>
    %c303_i32 = arith.constant 303 : i32
    %447 = tpu.dynamic_rotate %8 by %c303_i32 dim 1 : vector<4x384xf32>, i32 -> vector<4x384xf32>
    %448 = vector.broadcast %446 : vector<4x1xf32> to vector<4x384xf32>
    %449 = arith.mulf %448, %447 : vector<4x384xf32>
    %450 = arith.addf %439, %449 : vector<4x384xf32>
    %c39 = arith.constant 39 : index
    %451 = memref.load %arg2[%c39] : memref<98xf32, #tpu.memory_space<smem>>
    %c88 = arith.constant 88 : index
    %452 = memref.load %arg2[%c88] : memref<98xf32, #tpu.memory_space<smem>>
    %453 = arith.subf %451, %452 : f32
    %454 = vector.broadcast %453 : f32 to vector<4x1xf32>
    %455 = arith.mulf %454, %82 : vector<4x1xf32>
    %456 = vector.broadcast %452 : f32 to vector<4x1xf32>
    %457 = arith.addf %456, %455 : vector<4x1xf32>
    %c287_i32 = arith.constant 287 : i32
    %458 = tpu.dynamic_rotate %8 by %c287_i32 dim 1 : vector<4x384xf32>, i32 -> vector<4x384xf32>
    %459 = vector.broadcast %457 : vector<4x1xf32> to vector<4x384xf32>
    %460 = arith.mulf %459, %458 : vector<4x384xf32>
    %461 = arith.addf %450, %460 : vector<4x384xf32>
    %c46 = arith.constant 46 : index
    %462 = memref.load %arg2[%c46] : memref<98xf32, #tpu.memory_space<smem>>
    %c95 = arith.constant 95 : index
    %463 = memref.load %arg2[%c95] : memref<98xf32, #tpu.memory_space<smem>>
    %464 = arith.subf %462, %463 : f32
    %465 = vector.broadcast %464 : f32 to vector<4x1xf32>
    %466 = arith.mulf %465, %82 : vector<4x1xf32>
    %467 = vector.broadcast %463 : f32 to vector<4x1xf32>
    %468 = arith.addf %467, %466 : vector<4x1xf32>
    %c271_i32 = arith.constant 271 : i32
    %469 = tpu.dynamic_rotate %8 by %c271_i32 dim 1 : vector<4x384xf32>, i32 -> vector<4x384xf32>
    %470 = vector.broadcast %468 : vector<4x1xf32> to vector<4x384xf32>
    %471 = arith.mulf %470, %469 : vector<4x384xf32>
    %472 = arith.addf %461, %471 : vector<4x384xf32>
    %473 = vector.broadcast %61 : vector<1x384xf32> to vector<4x384xf32>
    %474 = arith.mulf %472, %473 : vector<4x384xf32>
    %475 = arith.addf %396, %474 : vector<4x384xf32>
    %c5 = arith.constant 5 : index
    %476 = memref.load %arg2[%c5] : memref<98xf32, #tpu.memory_space<smem>>
    %c54 = arith.constant 54 : index
    %477 = memref.load %arg2[%c54] : memref<98xf32, #tpu.memory_space<smem>>
    %478 = arith.subf %476, %477 : f32
    %479 = vector.broadcast %478 : f32 to vector<4x1xf32>
    %480 = arith.mulf %479, %82 : vector<4x1xf32>
    %481 = vector.broadcast %477 : f32 to vector<4x1xf32>
    %482 = arith.addf %481, %480 : vector<4x1xf32>
    %c366_i32 = arith.constant 366 : i32
    %483 = tpu.dynamic_rotate %8 by %c366_i32 dim 1 : vector<4x384xf32>, i32 -> vector<4x384xf32>
    %484 = vector.broadcast %482 : vector<4x1xf32> to vector<4x384xf32>
    %485 = arith.mulf %484, %483 : vector<4x384xf32>
    %c12 = arith.constant 12 : index
    %486 = memref.load %arg2[%c12] : memref<98xf32, #tpu.memory_space<smem>>
    %c61 = arith.constant 61 : index
    %487 = memref.load %arg2[%c61] : memref<98xf32, #tpu.memory_space<smem>>
    %488 = arith.subf %486, %487 : f32
    %489 = vector.broadcast %488 : f32 to vector<4x1xf32>
    %490 = arith.mulf %489, %82 : vector<4x1xf32>
    %491 = vector.broadcast %487 : f32 to vector<4x1xf32>
    %492 = arith.addf %491, %490 : vector<4x1xf32>
    %c350_i32 = arith.constant 350 : i32
    %493 = tpu.dynamic_rotate %8 by %c350_i32 dim 1 : vector<4x384xf32>, i32 -> vector<4x384xf32>
    %494 = vector.broadcast %492 : vector<4x1xf32> to vector<4x384xf32>
    %495 = arith.mulf %494, %493 : vector<4x384xf32>
    %496 = arith.addf %485, %495 : vector<4x384xf32>
    %c19 = arith.constant 19 : index
    %497 = memref.load %arg2[%c19] : memref<98xf32, #tpu.memory_space<smem>>
    %c68 = arith.constant 68 : index
    %498 = memref.load %arg2[%c68] : memref<98xf32, #tpu.memory_space<smem>>
    %499 = arith.subf %497, %498 : f32
    %500 = vector.broadcast %499 : f32 to vector<4x1xf32>
    %501 = arith.mulf %500, %82 : vector<4x1xf32>
    %502 = vector.broadcast %498 : f32 to vector<4x1xf32>
    %503 = arith.addf %502, %501 : vector<4x1xf32>
    %c334_i32 = arith.constant 334 : i32
    %504 = tpu.dynamic_rotate %8 by %c334_i32 dim 1 : vector<4x384xf32>, i32 -> vector<4x384xf32>
    %505 = vector.broadcast %503 : vector<4x1xf32> to vector<4x384xf32>
    %506 = arith.mulf %505, %504 : vector<4x384xf32>
    %507 = arith.addf %496, %506 : vector<4x384xf32>
    %c26 = arith.constant 26 : index
    %508 = memref.load %arg2[%c26] : memref<98xf32, #tpu.memory_space<smem>>
    %c75 = arith.constant 75 : index
    %509 = memref.load %arg2[%c75] : memref<98xf32, #tpu.memory_space<smem>>
    %510 = arith.subf %508, %509 : f32
    %511 = vector.broadcast %510 : f32 to vector<4x1xf32>
    %512 = arith.mulf %511, %82 : vector<4x1xf32>
    %513 = vector.broadcast %509 : f32 to vector<4x1xf32>
    %514 = arith.addf %513, %512 : vector<4x1xf32>
    %c318_i32 = arith.constant 318 : i32
    %515 = tpu.dynamic_rotate %8 by %c318_i32 dim 1 : vector<4x384xf32>, i32 -> vector<4x384xf32>
    %516 = vector.broadcast %514 : vector<4x1xf32> to vector<4x384xf32>
    %517 = arith.mulf %516, %515 : vector<4x384xf32>
    %518 = arith.addf %507, %517 : vector<4x384xf32>
    %c33 = arith.constant 33 : index
    %519 = memref.load %arg2[%c33] : memref<98xf32, #tpu.memory_space<smem>>
    %c82 = arith.constant 82 : index
    %520 = memref.load %arg2[%c82] : memref<98xf32, #tpu.memory_space<smem>>
    %521 = arith.subf %519, %520 : f32
    %522 = vector.broadcast %521 : f32 to vector<4x1xf32>
    %523 = arith.mulf %522, %82 : vector<4x1xf32>
    %524 = vector.broadcast %520 : f32 to vector<4x1xf32>
    %525 = arith.addf %524, %523 : vector<4x1xf32>
    %c302_i32 = arith.constant 302 : i32
    %526 = tpu.dynamic_rotate %8 by %c302_i32 dim 1 : vector<4x384xf32>, i32 -> vector<4x384xf32>
    %527 = vector.broadcast %525 : vector<4x1xf32> to vector<4x384xf32>
    %528 = arith.mulf %527, %526 : vector<4x384xf32>
    %529 = arith.addf %518, %528 : vector<4x384xf32>
    %c40 = arith.constant 40 : index
    %530 = memref.load %arg2[%c40] : memref<98xf32, #tpu.memory_space<smem>>
    %c89 = arith.constant 89 : index
    %531 = memref.load %arg2[%c89] : memref<98xf32, #tpu.memory_space<smem>>
    %532 = arith.subf %530, %531 : f32
    %533 = vector.broadcast %532 : f32 to vector<4x1xf32>
    %534 = arith.mulf %533, %82 : vector<4x1xf32>
    %535 = vector.broadcast %531 : f32 to vector<4x1xf32>
    %536 = arith.addf %535, %534 : vector<4x1xf32>
    %c286_i32 = arith.constant 286 : i32
    %537 = tpu.dynamic_rotate %8 by %c286_i32 dim 1 : vector<4x384xf32>, i32 -> vector<4x384xf32>
    %538 = vector.broadcast %536 : vector<4x1xf32> to vector<4x384xf32>
    %539 = arith.mulf %538, %537 : vector<4x384xf32>
    %540 = arith.addf %529, %539 : vector<4x384xf32>
    %c47 = arith.constant 47 : index
    %541 = memref.load %arg2[%c47] : memref<98xf32, #tpu.memory_space<smem>>
    %c96 = arith.constant 96 : index
    %542 = memref.load %arg2[%c96] : memref<98xf32, #tpu.memory_space<smem>>
    %543 = arith.subf %541, %542 : f32
    %544 = vector.broadcast %543 : f32 to vector<4x1xf32>
    %545 = arith.mulf %544, %82 : vector<4x1xf32>
    %546 = vector.broadcast %542 : f32 to vector<4x1xf32>
    %547 = arith.addf %546, %545 : vector<4x1xf32>
    %c270_i32 = arith.constant 270 : i32
    %548 = tpu.dynamic_rotate %8 by %c270_i32 dim 1 : vector<4x384xf32>, i32 -> vector<4x384xf32>
    %549 = vector.broadcast %547 : vector<4x1xf32> to vector<4x384xf32>
    %550 = arith.mulf %549, %548 : vector<4x384xf32>
    %551 = arith.addf %540, %550 : vector<4x384xf32>
    %552 = vector.broadcast %70 : vector<1x384xf32> to vector<4x384xf32>
    %553 = arith.mulf %551, %552 : vector<4x384xf32>
    %554 = arith.addf %475, %553 : vector<4x384xf32>
    %c6 = arith.constant 6 : index
    %555 = memref.load %arg2[%c6] : memref<98xf32, #tpu.memory_space<smem>>
    %c55 = arith.constant 55 : index
    %556 = memref.load %arg2[%c55] : memref<98xf32, #tpu.memory_space<smem>>
    %557 = arith.subf %555, %556 : f32
    %558 = vector.broadcast %557 : f32 to vector<4x1xf32>
    %559 = arith.mulf %558, %82 : vector<4x1xf32>
    %560 = vector.broadcast %556 : f32 to vector<4x1xf32>
    %561 = arith.addf %560, %559 : vector<4x1xf32>
    %c365_i32 = arith.constant 365 : i32
    %562 = tpu.dynamic_rotate %8 by %c365_i32 dim 1 : vector<4x384xf32>, i32 -> vector<4x384xf32>
    %563 = vector.broadcast %561 : vector<4x1xf32> to vector<4x384xf32>
    %564 = arith.mulf %563, %562 : vector<4x384xf32>
    %c13 = arith.constant 13 : index
    %565 = memref.load %arg2[%c13] : memref<98xf32, #tpu.memory_space<smem>>
    %c62 = arith.constant 62 : index
    %566 = memref.load %arg2[%c62] : memref<98xf32, #tpu.memory_space<smem>>
    %567 = arith.subf %565, %566 : f32
    %568 = vector.broadcast %567 : f32 to vector<4x1xf32>
    %569 = arith.mulf %568, %82 : vector<4x1xf32>
    %570 = vector.broadcast %566 : f32 to vector<4x1xf32>
    %571 = arith.addf %570, %569 : vector<4x1xf32>
    %c349_i32 = arith.constant 349 : i32
    %572 = tpu.dynamic_rotate %8 by %c349_i32 dim 1 : vector<4x384xf32>, i32 -> vector<4x384xf32>
    %573 = vector.broadcast %571 : vector<4x1xf32> to vector<4x384xf32>
    %574 = arith.mulf %573, %572 : vector<4x384xf32>
    %575 = arith.addf %564, %574 : vector<4x384xf32>
    %c20 = arith.constant 20 : index
    %576 = memref.load %arg2[%c20] : memref<98xf32, #tpu.memory_space<smem>>
    %c69 = arith.constant 69 : index
    %577 = memref.load %arg2[%c69] : memref<98xf32, #tpu.memory_space<smem>>
    %578 = arith.subf %576, %577 : f32
    %579 = vector.broadcast %578 : f32 to vector<4x1xf32>
    %580 = arith.mulf %579, %82 : vector<4x1xf32>
    %581 = vector.broadcast %577 : f32 to vector<4x1xf32>
    %582 = arith.addf %581, %580 : vector<4x1xf32>
    %c333_i32 = arith.constant 333 : i32
    %583 = tpu.dynamic_rotate %8 by %c333_i32 dim 1 : vector<4x384xf32>, i32 -> vector<4x384xf32>
    %584 = vector.broadcast %582 : vector<4x1xf32> to vector<4x384xf32>
    %585 = arith.mulf %584, %583 : vector<4x384xf32>
    %586 = arith.addf %575, %585 : vector<4x384xf32>
    %c27 = arith.constant 27 : index
    %587 = memref.load %arg2[%c27] : memref<98xf32, #tpu.memory_space<smem>>
    %c76 = arith.constant 76 : index
    %588 = memref.load %arg2[%c76] : memref<98xf32, #tpu.memory_space<smem>>
    %589 = arith.subf %587, %588 : f32
    %590 = vector.broadcast %589 : f32 to vector<4x1xf32>
    %591 = arith.mulf %590, %82 : vector<4x1xf32>
    %592 = vector.broadcast %588 : f32 to vector<4x1xf32>
    %593 = arith.addf %592, %591 : vector<4x1xf32>
    %c317_i32 = arith.constant 317 : i32
    %594 = tpu.dynamic_rotate %8 by %c317_i32 dim 1 : vector<4x384xf32>, i32 -> vector<4x384xf32>
    %595 = vector.broadcast %593 : vector<4x1xf32> to vector<4x384xf32>
    %596 = arith.mulf %595, %594 : vector<4x384xf32>
    %597 = arith.addf %586, %596 : vector<4x384xf32>
    %c34 = arith.constant 34 : index
    %598 = memref.load %arg2[%c34] : memref<98xf32, #tpu.memory_space<smem>>
    %c83 = arith.constant 83 : index
    %599 = memref.load %arg2[%c83] : memref<98xf32, #tpu.memory_space<smem>>
    %600 = arith.subf %598, %599 : f32
    %601 = vector.broadcast %600 : f32 to vector<4x1xf32>
    %602 = arith.mulf %601, %82 : vector<4x1xf32>
    %603 = vector.broadcast %599 : f32 to vector<4x1xf32>
    %604 = arith.addf %603, %602 : vector<4x1xf32>
    %c301_i32 = arith.constant 301 : i32
    %605 = tpu.dynamic_rotate %8 by %c301_i32 dim 1 : vector<4x384xf32>, i32 -> vector<4x384xf32>
    %606 = vector.broadcast %604 : vector<4x1xf32> to vector<4x384xf32>
    %607 = arith.mulf %606, %605 : vector<4x384xf32>
    %608 = arith.addf %597, %607 : vector<4x384xf32>
    %c41 = arith.constant 41 : index
    %609 = memref.load %arg2[%c41] : memref<98xf32, #tpu.memory_space<smem>>
    %c90 = arith.constant 90 : index
    %610 = memref.load %arg2[%c90] : memref<98xf32, #tpu.memory_space<smem>>
    %611 = arith.subf %609, %610 : f32
    %612 = vector.broadcast %611 : f32 to vector<4x1xf32>
    %613 = arith.mulf %612, %82 : vector<4x1xf32>
    %614 = vector.broadcast %610 : f32 to vector<4x1xf32>
    %615 = arith.addf %614, %613 : vector<4x1xf32>
    %c285_i32 = arith.constant 285 : i32
    %616 = tpu.dynamic_rotate %8 by %c285_i32 dim 1 : vector<4x384xf32>, i32 -> vector<4x384xf32>
    %617 = vector.broadcast %615 : vector<4x1xf32> to vector<4x384xf32>
    %618 = arith.mulf %617, %616 : vector<4x384xf32>
    %619 = arith.addf %608, %618 : vector<4x384xf32>
    %c48 = arith.constant 48 : index
    %620 = memref.load %arg2[%c48] : memref<98xf32, #tpu.memory_space<smem>>
    %c97 = arith.constant 97 : index
    %621 = memref.load %arg2[%c97] : memref<98xf32, #tpu.memory_space<smem>>
    %622 = arith.subf %620, %621 : f32
    %623 = vector.broadcast %622 : f32 to vector<4x1xf32>
    %624 = arith.mulf %623, %82 : vector<4x1xf32>
    %625 = vector.broadcast %621 : f32 to vector<4x1xf32>
    %626 = arith.addf %625, %624 : vector<4x1xf32>
    %c269_i32 = arith.constant 269 : i32
    %627 = tpu.dynamic_rotate %8 by %c269_i32 dim 1 : vector<4x384xf32>, i32 -> vector<4x384xf32>
    %628 = vector.broadcast %626 : vector<4x1xf32> to vector<4x384xf32>
    %629 = arith.mulf %628, %627 : vector<4x384xf32>
    %630 = arith.addf %619, %629 : vector<4x384xf32>
    %631 = vector.broadcast %79 : vector<1x384xf32> to vector<4x384xf32>
    %632 = arith.mulf %630, %631 : vector<4x384xf32>
    %633 = arith.addf %554, %632 : vector<4x384xf32>
    %634 = vector.extract_strided_slice %633 {offsets = [0, 0], sizes = [2, 384], strides = [1, 1]} : vector<4x384xf32> to vector<2x384xf32>
    %635 = vector.extract_strided_slice %633 {offsets = [2, 0], sizes = [2, 384], strides = [1, 1]} : vector<4x384xf32> to vector<2x384xf32>
    %636 = arith.addf %634, %635 : vector<2x384xf32>
    %637 = vector.extract_strided_slice %636 {offsets = [0, 0], sizes = [2, 256], strides = [1, 1]} : vector<2x384xf32> to vector<2x256xf32>
    %638 = vector.broadcast %83 : f32 to vector<2x256xf32>
    %639 = arith.addf %637, %638 : vector<2x256xf32>
    %640 = arith.negf %639 : vector<2x256xf32>
    %641 = math.exp %640 : vector<2x256xf32>
    %cst_24 = arith.constant 1.000000e+00 : f32
    %642 = vector.broadcast %cst_24 : f32 to vector<2x256xf32>
    %643 = arith.addf %642, %641 : vector<2x256xf32>
    %644 = arith.divf %642, %643 : vector<2x256xf32>
    %c0_25 = arith.constant 0 : index
    %c0_26 = arith.constant 0 : index
    %c0_27 = arith.constant 0 : index
    %645 = vector.load %arg1[%c0_25, %c0_26, %c0_27] : memref<2x4x256xf32, #tpu.memory_space<vmem>>, vector<2x4x256xf32>
    %646 = vector.shape_cast %644 : vector<2x256xf32> to vector<2x1x256xf32>
    %647 = vector.broadcast %646 : vector<2x1x256xf32> to vector<2x4x256xf32>
    %648 = arith.mulf %645, %647 : vector<2x4x256xf32>
    %c0_28 = arith.constant 0 : index
    %c0_29 = arith.constant 0 : index
    %c0_30 = arith.constant 0 : index
    %649 = vector.load %arg4[%c0_28, %c0_29, %c0_30] : memref<2x4x256xf32, #tpu.memory_space<vmem>>, vector<2x4x256xf32>
    tpu.vector_store %arg4[%c0_28, %c0_29, %c0_30], %648 {strides = array<i32>} : memref<2x4x256xf32, #tpu.memory_space<vmem>>, vector<2x4x256xf32>,
    return
  }
  func.func @transform_0(%arg0: i32) -> (i32, i32, i32) {
    %c0_i32 = arith.constant 0 : i32
    %c0_i32_0 = arith.constant 0 : i32
    %c0_i32_1 = arith.constant 0 : i32
    return %arg0, %c0_i32, %c0_i32_0 : i32, i32, i32
  }
  func.func @transform_1(%arg0: i32) -> i32 {
    %c0_i32 = arith.constant 0 : i32
    %c0_i32_0 = arith.constant 0 : i32
    return %c0_i32 : i32
  }
  func.func @transform_2(%arg0: i32) -> i32 {
    %c0_i32 = arith.constant 0 : i32
    %c0_i32_0 = arith.constant 0 : i32
    return %c0_i32 : i32
  }
  func.func @transform_3(%arg0: i32) -> (i32, i32, i32) {
    %c0_i32 = arith.constant 0 : i32
    %c0_i32_0 = arith.constant 0 : i32
    %c0_i32_1 = arith.constant 0 : i32
    return %arg0, %c0_i32, %c0_i32_0 : i32, i32, i32
  }
}

</mosaic_0001>

<bundles_post_ra>
// kernel: tpu_custom_call.1
= control target key start
LH: loop header
LB: loop body
LE: loop exit
PB: predicated region body
PF: predicated region fallthrough
CT: control target
= control target key end

     0   :  { %9 = vsyncpa [#allocation4], 0  ;;  %s3283_s0 = inlined_call_operand.hbm [shape: f32[2,4,256], index: 0, kind: input, shape index: {}]   ;;  %s3284_s1 = inlined_call_operand.hbm [shape: f32[98], index: 1, kind: input, shape index: {}]   ;;  %s3285_s2 = inlined_call_operand.<no memory space> [shape: f32[1], index: 2, kind: input, shape index: {}]   ;;  %s3286_s3 = inlined_call_operand.hbm [shape: f32[2,4,256], index: 3, kind: output, shape index: {}]  }
   0x1   :  { %10 = vsyncpa [#allocation6], 0 }
   0x2   :  { %11 = vsyncpa [#allocation5], 0  ;;  %s1808_s12 = smov [#allocation3]   ;;  %s1748_s16 = scalar_lea.hbm %s3283_s0, 256 }
   0x3   :  { %s17_s13 = sshll.u32 %s1808_s12, 4  ;;  %p1749_p0 = scmp.ne.s32.totalorder %s3283_s0, %s1748_s16  ;;  %s18_s13 = int_to_ptr.vmem [resolvable:$true] %s17_s13 }
   0x4   :  { %p1752_p1 = scmp.lt.u32.totalorder %s1748_s16, %s3283_s0 }
   0x6   :  { %p1754_p2 = pnand %p1752_p1, %p1749_p0 }
   0x8   :  { %1757 = shalt.err (!%p1754_p2)
}
   0x9   :  { %s1758_s21 = scalar_lea.vmem %s18_s13, 256  ;;  %p1763_p4 = scmp.lt.s32.totalorder %s18_s13, %s18_s13 }
   0xa   :  { %p1759_p3 = scmp.ne.s32.totalorder %s18_s13, %s1758_s21  ;;  %p1764_p5 = scmp.lt.s32.totalorder %s1758_s21, %s1758_s21 }
   0xc   :  { %p1765_p6 = por %p1764_p5, %p1763_p4 }
   0xe   :  { %p1766_p7 = pnand %p1765_p6, %p1759_p3 }
  0x10   :  { %1769 = shalt.err (!%p1766_p7)
}
  0x11   :  { %s1809_s22 = smov 128   ;;  %s1810_s23 = smov 8  }
  0x12   :  { %23 = dma.hbm_to_vmem [thread:$0]  %s3283_s0, 256, %s18_s13, [#allocation4], %s1809_s22, %s1809_s22, %s1810_s23  }
  0x13   :  { %s1770_s28 = scalar_lea.hbm %s3284_s1, 16 }
  0x14   :  { %p1771_p8 = scmp.ne.s32.totalorder %s3284_s1, %s1770_s28  ;;  %p1774_p9 = scmp.lt.u32.totalorder %s1770_s28, %s3284_s1 }
  0x16   :  { %p1776_p10 = pnand %p1774_p9, %p1771_p8 }
  0x18   :  { %1779 = shalt.err (!%p1776_p10)
}
  0x19   :  { %s1811_s6 = smov [#allocation7]  }
  0x1a   :  { %31 = dma.hbm_to_smem %s3284_s1, 16, %s1811_s6, [#allocation6]  }
  0x1b   :  { %1802 = dma.done.wait [#allocation4], 256  }
  0x1c   :  { %1803 = vsyncadd [#allocation4], 4294967040 }
  0x1d   :  { %1804 = dma.done.wait [#allocation6], 16  }
  0x1e   :  { %1805 = vsyncadd [#allocation6], 4294967280 }
  0x1f   :  { %40 = sfence }
  0x20   :  { %v41_v0 = vld [vmem:[#allocation3] sm:$0xff]  ;;  %v42_v1 = vld [vmem:[#allocation3 + $0x8] sm:$0xff]  ;;  %vm49_vm0 = vcmask 1043456   ;;  %vm124_vm1 = vcmask 1041408   ;;  %s1916_s0 = sld [smem:[#allocation7]]  ;;  %vm110_vm2 = vcmask 1041409  }
  0x21   :  { %v50_v2 = vsel %vm49_vm0, %v41_v0, 0.0  ;;  %v64_v3 = vsel %vm49_vm0, %v42_v1, 0.0  ;;  %v78_v4 = vsel %vm49_vm0, %v41_v0, -inf  ;;  %v92_v5 = vsel %vm49_vm0, %v42_v1, -inf  ;;  %s1918_s1 = sld [smem:[#allocation7 + $0x31]]  ;;  %s1920_s9 = sld [smem:[#allocation7 + $0x7]] }
  0x22   :  { %v51_v6 = vrot.slane %v50_v2, 4  ;;  %v65_v7 = vrot.slane %v64_v3, 4  ;;  %v79_v8 = vrot.slane %v78_v4, 4  ;;  %v93_v9 = vrot.slane %v92_v5, 4  ;;  %s1922_s10 = sld [smem:[#allocation7 + $0x38]]  ;;  %s1931_s11 = sld [smem:[#allocation7 + $0xe]] }
  0x23   :  { %vm119_vm3 = vcmask 1043459   ;;  %v45_v10 = vcombine.high %v41_v0, %v41_v0  ;;  %v46_v11 = vcombine.high %v42_v1, %v42_v1  ;;  %v1812_v16 = vmov 0   ;;  %s1933_s12 = sld [smem:[#allocation7 + $0x3f]]  ;;  %s1936_s13 = sld [smem:[#allocation7 + $0x15]] }
  0x24   :  { %v52_v12 = vadd.f32 %v51_v6, %v50_v2  ;;  %v66_v13 = vadd.f32 %v65_v7, %v64_v3  ;;  %v80_v14 = vmax.f32 %v78_v4, %v79_v8  ;;  %v94_v15 = vmax.f32 %v92_v5, %v93_v9  ;;  %1734 = vset.pattern.permute.xlu1 %v1812_v16  ;;  %s1938_s14 = sld [smem:[#allocation7 + $0x46]]  ;;  %s1944_s17 = sld [smem:[#allocation7 + $0x1c]] }
  0x25   :  { %v3287_v17 = vmov 0.0   ;;  %v57_v19 = vsel %vm49_vm0, %v45_v10, 0.0  ;;  %v71_v20 = vsel %vm49_vm0, %v46_v11, 0.0  ;;  %v85_v21 = vsel %vm49_vm0, %v45_v10, -inf  ;;  %1735 = vset.pattern.permute.xlu0 %v1812_v16  ;;  %s1946_s18 = sld [smem:[#allocation7 + $0x4d]]  ;;  %s1814_s20 = smov 64  }
  0x26   :  { %v1926_v18 = vsel %vm124_vm1, 1.0, %v3287_v17  ;;  %v53_v22 = vrot.slane %v52_v12, 2  ;;  %v67_v23 = vrot.slane %v66_v13, 2  ;;  %v81_v24 = vrot.slane %v80_v14, 2  ;;  %s1956_s21 = sld [smem:[#allocation7 + $0x23]]  ;;  %s1962_s25 = sld [smem:[#allocation7 + $0x54]] }
  0x27   :  { %v95_v25 = vrot.slane %v94_v15, 2  ;;  %v58_v26 = vrot.slane %v57_v19, 4  ;;  %v72_v27 = vrot.slane %v71_v20, 4  ;;  %v86_v28 = vrot.slane %v85_v21, 4  ;;  %s243_s15 = ssub.f32 %s1916_s0, %s1918_s1  ;;  %s1966_s26 = sld [smem:[#allocation7 + $0x2a]] }
  0x28   :  { %v99_v29 = vsel %vm49_vm0, %v46_v11, -inf  ;;  %v54_v30 = vadd.f32 %v53_v22, %v52_v12  ;;  %v68_v31 = vadd.f32 %v67_v23, %v66_v13  ;;  %v82_v32 = vmax.f32 %v80_v14, %v81_v24  ;;  %s266_s16 = ssub.f32 %s1920_s9, %s1922_s10  ;;  %s1971_s28 = sld [smem:[#allocation7 + $0x5b]] }
  0x29   :  { %v96_v33 = vmax.f32 %v94_v15, %v95_v25  ;;  %v59_v34 = vadd.f32 %v58_v26, %v57_v19  ;;  %v73_v35 = vadd.f32 %v72_v27, %v71_v20  ;;  %v87_v36 = vmax.f32 %v85_v21, %v86_v28  ;;  %s291_s19 = ssub.f32 %s1931_s11, %s1933_s12  ;;  %s1591_s29 = sld [smem:[#allocation7 + $0x1]] }
  0x2a   :  { %v100_v37 = vrot.slane %v99_v29, 4  ;;  %v55_v38 = vrot.slane %v54_v30, 1  ;;  %v69_v39 = vrot.slane %v68_v31, 1  ;;  %v83_v40 = vrot.slane %v82_v32, 1  ;;  %s316_s24 = ssub.f32 %s1936_s13, %s1938_s14  ;;  %s1980_s4 = sld [smem:[#allocation7 + $0x32]] }
  0x2b   :  { %v97_v41 = vrot.slane %v96_v33, 1  ;;  %v60_v42 = vrot.slane %v59_v34, 2  ;;  %v74_v43 = vrot.slane %v73_v35, 2  ;;  %v88_v44 = vrot.slane %v87_v36, 2  ;;  %s341_s27 = ssub.f32 %s1944_s17, %s1946_s18  ;;  %s1593_s5 = sld [smem:[#allocation7 + $0x8]] }
  0x2c   :  { %v101_v45 = vmax.f32 %v99_v29, %v100_v37  ;;  %v56_v46 = vadd.f32 %v55_v38, %v54_v30  ;;  %v70_v47 = vadd.f32 %v69_v39, %v68_v31  ;;  %v84_v48 = vmax.f32 %v82_v32, %v83_v40  ;;  %s366_s30 = ssub.f32 %s1956_s21, %s1962_s25  ;;  %s1986_s7 = sld [smem:[#allocation7 + $0x39]] }
  0x2d   :  { %v98_v49 = vmax.f32 %v96_v33, %v97_v41  ;;  %v61_v50 = vadd.f32 %v60_v42, %v59_v34  ;;  %v75_v51 = vadd.f32 %v74_v43, %v73_v35  ;;  %v89_v52 = vmax.f32 %v87_v36, %v88_v44  ;;  %s1595_s8 = sld [smem:[#allocation7 + $0xf]]  ;;  %s1597_s9 = sld [smem:[#allocation7 + $0x16]] }
  0x2e   :  { %v102_v53 = vrot.slane %v101_v45, 2  ;;  %v111_v54 = vsel %vm110_vm2, %v70_v47, %v56_v46  ;;  %v244_v56 = vstv %s243_s15  ;;  %v246_v57 = vstv %s1918_s1  ;;  %s391_s6 = ssub.f32 %s1966_s26, %s1971_s28  ;;  %s1991_s1 = sld [smem:[#allocation7 + $0x40]] }
  0x2f   :  { %v120_v55 = vsel %vm119_vm3, %v98_v49, %v84_v48  ;;  %v62_v59 = vrot.slane %v61_v50, 1  ;;  %v76_v60 = vrot.slane %v75_v51, 1  ;;  %v90_v61 = vrot.slane %v89_v52, 1  ;;  %s1996_s11 = sld [smem:[#allocation7 + $0x47]]  ;;  %s1601_s15 = sld [smem:[#allocation7 + $0x24]] }
  0x30   :  { %v125_v58 = vsel %vm124_vm1, %v111_v54, %v120_v55  ;;  %v103_v62 = vmax.f32 %v101_v45, %v102_v53  ;;  %v245_v63 = vmul.f32 %v244_v56, %v1926_v18  ;;  %v267_v0 = vstv %s266_s16  ;;  %s418_s0 = ssub.f32 %s1591_s29, %s1980_s4  ;;  %s2006_s17 = sld [smem:[#allocation7 + $0x55]] }
  0x31   :  { %129 = vrot.lane.b32.xlu0 %v125_v58, %s1814_s20  ;;  %v63_v1 = vadd.f32 %v62_v59, %v61_v50  ;;  %v77_v2 = vadd.f32 %v76_v60, %v75_v51  ;;  %v268_v3 = vmul.f32 %v267_v0, %v1926_v18  ;;  %v269_v4 = vstv %s1922_s10  ;;  %s2011_s21 = sld [smem:[#allocation7 + $0x5c]]  ;;  %s1606_s26 = sld [smem:[#allocation7 + $0x33]] }
  0x32   :  { %v91_v5 = vmax.f32 %v89_v52, %v90_v61  ;;  %v104_v6 = vrot.slane %v103_v62, 1  ;;  %v247_v7 = vadd.f32 %v246_v57, %v245_v63  ;;  %v292_v8 = vstv %s291_s19  ;;  %s441_s10 = ssub.f32 %s1593_s5, %s1986_s7  ;;  %s1608_s29 = sld [smem:[#allocation7 + $0x3a]] }
  0x33   :  { %v112_v10 = vsel %vm110_vm2, %v77_v2, %v63_v1  ;;  %v270_v11 = vadd.f32 %v269_v4, %v268_v3  ;;  %v293_v12 = vmul.f32 %v292_v8, %v1926_v18  ;;  %v294_v13 = vstv %s1933_s12  ;;  %s1599_s12 = sld [smem:[#allocation7 + $0x1d]]  ;;  %s1815_s5 = smov 115  }
  0x34   :  { %v105_v9 = vmax.f32 %v103_v62, %v104_v6  ;;  %259 = vperm.xlu1 %1734, %v247_v7   ;;  %v317_v14 = vstv %s316_s24  ;;  %v319_v21 = vstv %s1938_s14  ;;  %v342_v22 = vstv %s341_s27  ;;  %s466_s13 = ssub.f32 %s1595_s8, %s1991_s1  ;;  %s2001_s14 = sld [smem:[#allocation7 + $0x4e]] }
  0x35   :  { %v295_v19 = vadd.f32 %v294_v13, %v293_v12  ;;  %v318_v20 = vmul.f32 %v317_v14, %v1926_v18  ;;  %v343_v24 = vmul.f32 %v342_v22, %v1926_v18  ;;  %v344_v25 = vstv %s1946_s18  ;;  %s491_s16 = ssub.f32 %s1597_s9, %s1996_s11  ;;  %s1603_s18 = sld [smem:[#allocation7 + $0x2b]] }
  0x36   :  { %v121_v15 = vsel %vm119_vm3, %v105_v9, %v91_v5  ;;  %v367_v26 = vstv %s366_s30  ;;  %v369_v29 = vstv %s1962_s25  ;;  %v392_v30 = vstv %s391_s6  ;;  %s1605_s24 = sld [smem:[#allocation7 + $0x2]]  ;;  %s541_s25 = ssub.f32 %s1601_s15, %s2006_s17 }
  0x37   :  { %v126_v16 = vsel %vm124_vm1, %v112_v10, %v121_v15  ;;  %v320_v23 = vadd.f32 %v319_v21, %v318_v20  ;;  %v345_v27 = vadd.f32 %v344_v25, %v343_v24  ;;  %v368_v28 = vmul.f32 %v367_v26, %v1926_v18  ;;  %s1607_s27 = sld [smem:[#allocation7 + $0x9]]  ;;  %s1816_s6 = smov 99  }
  0x38   :  { %131 = vrot.lane.b32.xlu0 %v126_v16, %s1814_s20  ;;  %282 = vperm.xlu1 %1734, %v270_v11   ;;  %v393_v32 = vmul.f32 %v392_v30, %v1926_v18  ;;  %v394_v33 = vstv %s1971_s28  ;;  %v419_v34 = vstv %s418_s0  ;;  %v421_v37 = vstv %s1980_s4  ;;  %s1818_s8 = smov 67   ;;  %s1819_s0 = smov 51  }
  0x39   :  { %v370_v31 = vadd.f32 %v369_v29, %v368_v28  ;;  %v420_v36 = vmul.f32 %v419_v34, %v1926_v18  ;;  %v442_v38 = vstv %s441_s10  ;;  %v444_v41 = vstv %s1986_s7  ;;  %s1817_s7 = smov 83   ;;  %s1821_s9 = smov 19  }
  0x3a   :  { %v395_v35 = vadd.f32 %v394_v33, %v393_v32  ;;  %v443_v40 = vmul.f32 %v442_v38, %v1926_v18  ;;  %v467_v42 = vstv %s466_s13  ;;  %v469_v45 = vstv %s1991_s1  ;;  %s516_s19 = ssub.f32 %s1599_s12, %s2001_s14  ;;  %s1820_s1 = smov 35  }
  0x3b   :  { %v422_v39 = vadd.f32 %v421_v37, %v420_v36  ;;  %v468_v44 = vmul.f32 %v467_v42, %v1926_v18  ;;  %v492_v46 = vstv %s491_s16  ;;  %v494_v49 = vstv %s1996_s11  ;;  %s566_s28 = ssub.f32 %s1603_s18, %s2011_s21  ;;  %s1822_s10 = smov 114  }
  0x3c   :  { %307 = vperm.xlu1 %1734, %v295_v19   ;;  %v445_v43 = vadd.f32 %v444_v41, %v443_v40  ;;  %v493_v48 = vmul.f32 %v492_v46, %v1926_v18  ;;  %v517_v50 = vstv %s516_s19  ;;  %v519_v53 = vstv %s2001_s14  ;;  %s595_s30 = ssub.f32 %s1605_s24, %s1606_s26  ;;  %s1823_s11 = smov 98  }
  0x3d   :  { %v470_v47 = vadd.f32 %v469_v45, %v468_v44  ;;  %v518_v52 = vmul.f32 %v517_v50, %v1926_v18  ;;  %v542_v54 = vstv %s541_s25  ;;  %v544_v57 = vstv %s2006_s17  ;;  %s618_s4 = ssub.f32 %s1607_s27, %s1608_s29  ;;  %s1824_s12 = smov 82  }
  0x3e   :  { %v495_v51 = vadd.f32 %v494_v49, %v493_v48  ;;  %v543_v56 = vmul.f32 %v542_v54, %v1926_v18  ;;  %v567_v58 = vstv %s566_s28  ;;  %v569_v61 = vstv %s2011_s21  ;;  %s1825_s13 = smov 66   ;;  %s1826_s14 = smov 50  }
  0x3f   :  { %v520_v55 = vadd.f32 %v519_v53, %v518_v52  ;;  %v568_v60 = vmul.f32 %v567_v58, %v1926_v18  ;;  %v596_v62 = vstv %s595_s30  ;;  %v598_v1 = vstv %s1606_s26  ;;  %s1827_s15 = smov 34   ;;  %s1828_s16 = smov 18  }
  0x40   :  { %332 = vperm.xlu1 %1734, %v320_v23   ;;  %v545_v59 = vadd.f32 %v544_v57, %v543_v56  ;;  %v597_v0 = vmul.f32 %v596_v62, %v1926_v18  ;;  %v619_v2 = vstv %s618_s4  ;;  %v621_v5 = vstv %s1608_s29  ;;  %s1829_s17 = smov 113   ;;  %s1609_s18 = sld [smem:[#allocation7 + $0x10]] }
  0x41   :  { %v570_v63 = vadd.f32 %v569_v61, %v568_v60  ;;  %v620_v4 = vmul.f32 %v619_v2, %v1926_v18  ;;  %vm133_vm4 = vcmask 523264   ;;  %s1610_s19 = sld [smem:[#allocation7 + $0x41]]  ;;  %s1830_s21 = smov 97  }
  0x42   :  { %v599_v3 = vadd.f32 %v598_v1, %v597_v0  ;;  %s1831_s24 = smov 81   ;;  %s1611_s25 = sld [smem:[#allocation7 + $0x17]] }
  0x43   :  { %v622_v6 = vadd.f32 %v621_v5, %v620_v4  ;;  %s2107_s26 = sld [smem:[#allocation7 + $0x48]]  ;;  %s1613_s29 = sld [smem:[#allocation7 + $0x1e]] }
  0x44   :  { %357 = vperm.xlu1 %1734, %v345_v27   ;;  %s2126_s30 = sld [smem:[#allocation7 + $0x4f]]  ;;  %s1615_s4 = sld [smem:[#allocation7 + $0x25]] }
  0x47   :  { %s643_s27 = ssub.f32 %s1609_s18, %s1610_s19  ;;  %v646_v25 = vstv %s1610_s19  ;;  %s1832_s18 = smov 65  }
  0x48   :  { %382 = vperm.xlu1 %1734, %v370_v31   ;;  %s2152_s19 = sld [smem:[#allocation7 + $0x5d]] }
  0x49   :  { %v644_v22 = vstv %s643_s27  ;;  %s668_s28 = ssub.f32 %s1611_s25, %s2107_s26  ;;  %v671_v30 = vstv %s2107_s26  ;;  %s2165_s25 = sld [smem:[#allocation7 + $0x34]] }
  0x4a   :  { %v645_v23 = vmul.f32 %v644_v22, %v1926_v18  ;;  %s1834_s27 = smov 33  }
  0x4b   :  { %v669_v27 = vstv %s668_s28  ;;  %s2180_s28 = sld [smem:[#allocation7 + $0x3b]] }
  0x4c   :  { %407 = vperm.xlu1 %1734, %v395_v35   ;;  %v647_v26 = vadd.f32 %v646_v25, %v645_v23  ;;  %v670_v29 = vmul.f32 %v669_v27, %v1926_v18  ;;  %v696_v35 = vstv %s2126_s30 }
  0x4e   :  { %v672_v31 = vadd.f32 %v671_v30, %v670_v29  ;;  %v746_v46 = vstv %s2152_s19 }
  0x50   :  { %434 = vperm.xlu1 %1734, %v422_v39  }
  0x51   :  { %v798_v58 = vstv %s2180_s28 }
  0x54   :  { %457 = vperm.xlu1 %1734, %v445_v43  }
  0x58   :  { %482 = vperm.xlu1 %1734, %v470_v47  }
  0x5c   :  { %507 = vperm.xlu1 %1734, %v495_v51   ;;  %v775_v51 = vstv %s2165_s25 }
  0x60   :  { %532 = vperm.xlu1 %1734, %v520_v55  }
  0x64   :  { %557 = vperm.xlu1 %1734, %v545_v59  }
  0x68   :  { %582 = vperm.xlu1 %1734, %v570_v63  }
  0x6c   :  { %611 = vperm.xlu1 %1734, %v599_v3  }
  0x70   :  { %634 = vperm.xlu1 %1734, %v622_v6  }
  0xa3   :  { %v130_v7 = vpop.permute.xlu0 %129 }
  0xa4   :  { %v2026_v8 = vsel %vm133_vm4, 0.0, %v130_v7 }
  0xa5   :  { %248 = vrot.lane.b32.xlu1 %v2026_v8, %s1815_s5  ;;  %271 = vrot.lane.b32.xlu0 %v2026_v8, %s1816_s6 }
  0xa9   :  { %296 = vrot.lane.b32.xlu0 %v2026_v8, %s1817_s7 }
  0xaa   :  { %v132_v9 = vpop.permute.xlu0 %131 }
  0xab   :  { %v2035_v10 = vsel %vm133_vm4, %v130_v7, %v132_v9  ;;  %v2112_v21 = vsel %vm133_vm4, %v132_v9, 0.0 }
  0xac   :  { %250 = vrot.lane.b32.xlu1 %v2035_v10, %s1815_s5 }
  0xad   :  { %321 = vrot.lane.b32.xlu0 %v2026_v8, %s1818_s8 }
  0xb0   :  { %273 = vrot.lane.b32.xlu1 %v2035_v10, %s1816_s6 }
  0xb1   :  { %346 = vrot.lane.b32.xlu0 %v2026_v8, %s1819_s0 }
  0xb3   :  { %v2053_v11 = vpop.permute.xlu1 %259 }
  0xb4   :  { %298 = vrot.lane.b32.xlu1 %v2035_v10, %s1817_s7 }
  0xb5   :  { %371 = vrot.lane.b32.xlu0 %v2026_v8, %s1820_s1 }
  0xb7   :  { %v2059_v12 = vpop.permute.xlu1 %282 }
  0xb8   :  { %323 = vrot.lane.b32.xlu1 %v2035_v10, %s1818_s8 }
  0xb9   :  { %396 = vrot.lane.b32.xlu0 %v2026_v8, %s1821_s9 }
  0xbb   :  { %v2069_v13 = vpop.permute.xlu1 %307 }
  0xbc   :  { %348 = vrot.lane.b32.xlu1 %v2035_v10, %s1819_s0 }
  0xbd   :  { %423 = vrot.lane.b32.xlu0 %v2026_v8, %s1822_s10 }
  0xbf   :  { %v2075_v14 = vpop.permute.xlu1 %332 }
  0xc0   :  { %373 = vrot.lane.b32.xlu1 %v2035_v10, %s1820_s1 }
  0xc1   :  { %446 = vrot.lane.b32.xlu0 %v2026_v8, %s1823_s11 }
  0xc3   :  { %v2085_v15 = vpop.permute.xlu1 %357 }
  0xc4   :  { %398 = vrot.lane.b32.xlu1 %v2035_v10, %s1821_s9 }
  0xc5   :  { %471 = vrot.lane.b32.xlu0 %v2026_v8, %s1824_s12 }
  0xc7   :  { %v2091_v16 = vpop.permute.xlu1 %382 }
  0xc8   :  { %425 = vrot.lane.b32.xlu1 %v2035_v10, %s1822_s10 }
  0xc9   :  { %496 = vrot.lane.b32.xlu0 %v2026_v8, %s1825_s13 }
  0xcb   :  { %v2101_v19 = vpop.permute.xlu1 %407 }
  0xcc   :  { %448 = vrot.lane.b32.xlu1 %v2035_v10, %s1823_s11  ;;  %3325 = vst [vmem:[#allocation12_spill] sm:$0xff] %v2101_v19 }
  0xcd   :  { %521 = vrot.lane.b32.xlu0 %v2026_v8, %s1826_s14 }
  0xcf   :  { %v2109_v20 = vpop.permute.xlu1 %434 }
  0xd0   :  { %473 = vrot.lane.b32.xlu1 %v2035_v10, %s1824_s12  ;;  %3326 = vst [vmem:[#allocation13_spill] sm:$0xff] %v2109_v20 }
  0xd1   :  { %546 = vrot.lane.b32.xlu0 %v2026_v8, %s1827_s15 }
  0xd3   :  { %v2124_v24 = vpop.permute.xlu1 %457 }
  0xd4   :  { %498 = vrot.lane.b32.xlu1 %v2035_v10, %s1825_s13 }
  0xd5   :  { %571 = vrot.lane.b32.xlu0 %v2026_v8, %s1828_s16 }
  0xd7   :  { %v2132_v28 = vpop.permute.xlu1 %482 }
  0xd8   :  { %523 = vrot.lane.b32.xlu1 %v2035_v10, %s1826_s14  ;;  %3327 = vst [vmem:[#allocation14_spill] sm:$0xff] %v2132_v28 }
  0xd9   :  { %600 = vrot.lane.b32.xlu0 %v2026_v8, %s1829_s17 }
  0xdb   :  { %v2145_v32 = vpop.permute.xlu1 %507 }
  0xdc   :  { %548 = vrot.lane.b32.xlu1 %v2035_v10, %s1827_s15  ;;  %3328 = vst [vmem:[#allocation15_spill] sm:$0xff] %v2145_v32 }
  0xdd   :  { %623 = vrot.lane.b32.xlu0 %v2026_v8, %s1830_s21 }
  0xdf   :  { %v2154_v36 = vpop.permute.xlu1 %532 }
  0xe0   :  { %573 = vrot.lane.b32.xlu1 %v2035_v10, %s1828_s16  ;;  %3329 = vst [vmem:[#allocation16_spill] sm:$0xff] %v2154_v36 }
  0xe1   :  { %648 = vrot.lane.b32.xlu0 %v2026_v8, %s1831_s24 }
  0xe3   :  { %v2163_v40 = vpop.permute.xlu1 %557 }
  0xe4   :  { %602 = vrot.lane.b32.xlu1 %v2035_v10, %s1829_s17  ;;  %3330 = vst [vmem:[#allocation17_spill] sm:$0xff] %v2163_v40 }
  0xe5   :  { %252 = vrot.lane.b32.xlu0 %v2112_v21, %s1815_s5  ;;  %s2137_s5 = sld [smem:[#allocation7 + $0x56]] }
  0xe7   :  { %v2173_v44 = vpop.permute.xlu1 %582 }
  0xe8   :  { %625 = vrot.lane.b32.xlu1 %v2035_v10, %s1830_s21  ;;  %3331 = vst [vmem:[#allocation18_spill] sm:$0xff] %v2173_v44 }
  0xe9   :  { %275 = vrot.lane.b32.xlu0 %v2112_v21, %s1816_s6  ;;  %s693_s6 = ssub.f32 %s1613_s29, %s2126_s30  ;;  %s1835_s29 = smov 17  }
  0xeb   :  { %v694_v33 = vstv %s693_s6  ;;  %v721_v41 = vstv %s2137_s5  ;;  %v2186_v48 = vpop.permute.xlu1 %611  ;;  %s2225_s6 = sld [smem:[#allocation7 + $0x50]] }
  0xec   :  { %650 = vrot.lane.b32.xlu1 %v2035_v10, %s1831_s24  ;;  %v695_v34 = vmul.f32 %v694_v33, %v1926_v18  ;;  %3332 = vst [vmem:[#allocation19_spill] sm:$0xff] %v2186_v48 }
  0xed   :  { %300 = vrot.lane.b32.xlu0 %v2112_v21, %s1817_s7  ;;  %s718_s7 = ssub.f32 %s1615_s4, %s2137_s5  ;;  %s1625_s4 = sld [smem:[#allocation7 + $0x18]] }
  0xee   :  { %v697_v37 = vadd.f32 %v696_v35, %v695_v34  ;;  %s2210_s5 = sld [smem:[#allocation7 + $0x49]] }
  0xef   :  { %v719_v38 = vstv %s718_s7  ;;  %v2195_v52 = vpop.permute.xlu1 %634 }
  0xf0   :  { %659 = vperm.xlu1 %1734, %v647_v26   ;;  %v720_v39 = vmul.f32 %v719_v38, %v1926_v18  ;;  %3333 = vst [vmem:[#allocation20_spill] sm:$0xff] %v2195_v52 }
  0xf1   :  { %325 = vrot.lane.b32.xlu0 %v2112_v21, %s1818_s8  ;;  %s1617_s8 = sld [smem:[#allocation7 + $0x2c]]  ;;  %v873_v33 = vstv %s2225_s6 }
  0xf2   :  { %v722_v42 = vadd.f32 %v721_v41, %v720_v39 }
  0xf4   :  { %675 = vrot.lane.b32.xlu1 %v2035_v10, %s1832_s18  ;;  %s845_s7 = ssub.f32 %s1625_s4, %s2210_s5  ;;  %v848_v22 = vstv %s2210_s5  ;;  %s2322_s4 = sld [smem:[#allocation7 + $0x43]] }
  0xf5   :  { %350 = vrot.lane.b32.xlu0 %v2112_v21, %s1819_s0  ;;  %s1833_s0 = smov 49   ;;  %s1639_s5 = sld [smem:[#allocation7 + $0x19]] }
  0xf6   :  { %v846_v5 = vstv %s845_s7 }
  0xf7   :  { %s743_s26 = ssub.f32 %s1617_s8, %s2152_s19  ;;  %v847_v9 = vmul.f32 %v846_v5, %v1926_v18  ;;  %s1629_s8 = sld [smem:[#allocation7 + $0x26]] }
  0xf8   :  { %684 = vperm.xlu1 %1734, %v672_v31   ;;  %s2246_s19 = sld [smem:[#allocation7 + $0x57]] }
  0xf9   :  { %375 = vrot.lane.b32.xlu0 %v2112_v21, %s1820_s1  ;;  %s1619_s1 = sld [smem:[#allocation7 + $0x3]]  ;;  %v744_v43 = vstv %s743_s26  ;;  %v849_v26 = vadd.f32 %v848_v22, %v847_v9 }
  0xfa   :  { %v745_v45 = vmul.f32 %v744_v43, %v1926_v18 }
  0xfc   :  { %700 = vrot.lane.b32.xlu1 %v2035_v10, %s1833_s0  ;;  %v747_v47 = vadd.f32 %v746_v46, %v745_v45 }
  0xfd   :  { %400 = vrot.lane.b32.xlu0 %v2112_v21, %s1821_s9 }
  0xfe   :  { %v898_v43 = vstv %s2246_s19 }
  0xff   :  { %s772_s9 = ssub.f32 %s1619_s1, %s2165_s25  ;;  %s2263_s1 = sld [smem:[#allocation7 + $0x5e]] }
 0x100   :  { %709 = vperm.xlu1 %1734, %v697_v37   ;;  %s895_s25 = ssub.f32 %s1629_s8, %s2246_s19  ;;  %s2358_s8 = sld [smem:[#allocation7 + $0x51]] }
 0x101   :  { %427 = vrot.lane.b32.xlu0 %v2112_v21, %s1822_s10  ;;  %s1621_s10 = sld [smem:[#allocation7 + $0xa]]  ;;  %v773_v49 = vstv %s772_s9  ;;  %s1633_s9 = sld [smem:[#allocation7 + $0x4]] }
 0x102   :  { %v774_v50 = vmul.f32 %v773_v49, %v1926_v18  ;;  %v896_v38 = vstv %s895_s25  ;;  %s1643_s19 = sld [smem:[#allocation7 + $0x27]] }
 0x104   :  { %725 = vrot.lane.b32.xlu1 %v2035_v10, %s1834_s27  ;;  %v776_v53 = vadd.f32 %v775_v51, %v774_v50 }
 0x105   :  { %450 = vrot.lane.b32.xlu0 %v2112_v21, %s1823_s11  ;;  %s1623_s11 = sld [smem:[#allocation7 + $0x11]] }
 0x106   :  { %v1048_v17 = vstv %s2358_s8 }
 0x107   :  { %s795_s30 = ssub.f32 %s1621_s10, %s2180_s28  ;;  %s2284_s10 = sld [smem:[#allocation7 + $0x35]] }
 0x108   :  { %734 = vperm.xlu1 %1734, %v722_v42   ;;  %v897_v42 = vmul.f32 %v896_v38, %v1926_v18  ;;  %s1635_s28 = sld [smem:[#allocation7 + $0xb]] }
 0x109   :  { %475 = vrot.lane.b32.xlu0 %v2112_v21, %s1824_s12  ;;  %s2191_s12 = sld [smem:[#allocation7 + $0x42]]  ;;  %v796_v54 = vstv %s795_s30 }
 0x10a   :  { %v797_v57 = vmul.f32 %v796_v54, %v1926_v18  ;;  %v923_v54 = vstv %s2263_s1 }
 0x10c   :  { %750 = vrot.lane.b32.xlu1 %v2035_v10, %s1835_s29  ;;  %v799_v60 = vadd.f32 %v798_v58, %v797_v57 }
 0x10d   :  { %500 = vrot.lane.b32.xlu0 %v2112_v21, %s1825_s13  ;;  %s1836_s13 = smov 112   ;;  %v950_v5 = vstv %s2284_s10 }
 0x10f   :  { %v823_v1 = vstv %s2191_s12 }
 0x110   :  { %759 = vperm.xlu1 %1734, %v747_v47   ;;  %v899_v47 = vadd.f32 %v898_v43, %v897_v42 }
 0x111   :  { %525 = vrot.lane.b32.xlu0 %v2112_v21, %s1826_s14  ;;  %s820_s14 = ssub.f32 %s1623_s11, %s2191_s12  ;;  %s2301_s11 = sld [smem:[#allocation7 + $0x3c]] }
 0x112   :  { %s947_s12 = ssub.f32 %s1633_s9, %s2284_s10  ;;  %s2392_s9 = sld [smem:[#allocation7 + $0x5f]] }
 0x113   :  { %v821_v61 = vstv %s820_s14  ;;  %s1637_s14 = sld [smem:[#allocation7 + $0x12]]  ;;  %s2409_s10 = sld [smem:[#allocation7 + $0x5]] }
 0x114   :  { %779 = vrot.lane.b32.xlu1 %v2035_v10, %s1836_s13  ;;  %v822_v0 = vmul.f32 %v821_v61, %v1926_v18  ;;  %v948_v61 = vstv %s947_s12  ;;  %s1651_s12 = sld [smem:[#allocation7 + $0x13]] }
 0x115   :  { %550 = vrot.lane.b32.xlu0 %v2112_v21, %s1827_s15  ;;  %s1837_s15 = smov 96  }
 0x116   :  { %v824_v4 = vadd.f32 %v823_v1, %v822_v0 }
 0x117   :  { %v2201_v55 = vpop.permute.xlu0 %271  ;;  %v2203_v56 = vpop.permute.xlu1 %248  ;;  %s970_s30 = ssub.f32 %s1635_s28, %s2301_s11  ;;  %s2411_s28 = sld [smem:[#allocation7 + $0x36]] }
 0x118   :  { %788 = vperm.xlu1 %1734, %v776_v53  }
 0x119   :  { %575 = vrot.lane.b32.xlu0 %v2112_v21, %s1828_s16  ;;  %s1627_s16 = sld [smem:[#allocation7 + $0x1f]] }
 0x11b   :  { %v2212_v59 = vpop.permute.xlu0 %296 }
 0x11c   :  { %802 = vrot.lane.b32.xlu1 %v2035_v10, %s1837_s15 }
 0x11d   :  { %604 = vrot.lane.b32.xlu0 %v2112_v21, %s1829_s17  ;;  %s1838_s17 = smov 80  }
 0x11e   :  { %v2218_v62 = vpop.permute.xlu1 %250 }
 0x11f   :  { %v2220_v63 = vpop.permute.xlu0 %321 }
 0x120   :  { %811 = vperm.xlu1 %1734, %v799_v60  }
 0x121   :  { %627 = vrot.lane.b32.xlu0 %v2112_v21, %s1830_s21  ;;  %s870_s21 = ssub.f32 %s1627_s16, %s2225_s6  ;;  %s2337_s16 = sld [smem:[#allocation7 + $0x4a]] }
 0x122   :  { %v2229_v2 = vpop.permute.xlu1 %273  ;;  %s995_s6 = ssub.f32 %s1637_s14, %s2322_s4 }
 0x123   :  { %v2231_v3 = vpop.permute.xlu0 %346  ;;  %v871_v27 = vstv %s870_s21  ;;  %s1641_s21 = sld [smem:[#allocation7 + $0x20]]  ;;  %s1124_s14 = ssub.f32 %s2409_s10, %s2411_s28 }
 0x124   :  { %827 = vrot.lane.b32.xlu1 %v2035_v10, %s1838_s17  ;;  %v872_v31 = vmul.f32 %v871_v27, %v1926_v18  ;;  %v971_v27 = vstv %s970_s30  ;;  %s2423_s30 = sld [smem:[#allocation7 + $0x44]]  ;;  %s1852_s10 = smov 109  }
 0x125   :  { %652 = vrot.lane.b32.xlu0 %v2112_v21, %s1831_s24  ;;  %s1631_s24 = sld [smem:[#allocation7 + $0x2d]] }
 0x126   :  { %v2237_v6 = vpop.permute.xlu1 %298  ;;  %v874_v37 = vadd.f32 %v873_v33, %v872_v31  ;;  %v972_v33 = vmul.f32 %v971_v27, %v1926_v18 }
 0x127   :  { %v2239_v7 = vpop.permute.xlu0 %371  ;;  %s1020_s7 = ssub.f32 %s1639_s5, %s2337_s16  ;;  %s2435_s5 = sld [smem:[#allocation7 + $0x37]] }
 0x128   :  { %836 = vperm.xlu1 %1734, %v824_v4   ;;  %v949_v4 = vmul.f32 %v948_v61, %v1926_v18 }
 0x129   :  { %673 = vrot.lane.b32.xlu0 %v2026_v8, %s1832_s18 }
 0x12a   :  { %v2248_v23 = vpop.permute.xlu1 %323  ;;  %v951_v22 = vadd.f32 %v950_v5, %v949_v4  ;;  %v1021_v5 = vstv %s1020_s7  ;;  %s2448_s7 = sld [smem:[#allocation7 + $0x4b]] }
 0x12b   :  { %v2250_v25 = vpop.permute.xlu0 %396  ;;  %s920_s26 = ssub.f32 %s1631_s24, %s2263_s1  ;;  %s2373_s24 = sld [smem:[#allocation7 + $0x58]] }
 0x12c   :  { %3334 = vst [vmem:[#allocation21_spill] sm:$0xff] %v2250_v25  ;;  %852 = vrot.lane.b32.xlu1 %v2035_v10, %s1814_s20  ;;  %s1045_s1 = ssub.f32 %s1641_s21, %s2358_s8  ;;  %s1849_s21 = smov 110  }
 0x12d   :  { %677 = vrot.lane.b32.xlu0 %v2112_v21, %s1832_s18  ;;  %s1839_s18 = smov 48   ;;  %v921_v49 = vstv %s920_s26  ;;  %s1645_s26 = sld [smem:[#allocation7 + $0x2e]] }
 0x12e   :  { %v2256_v29 = vpop.permute.xlu1 %348  ;;  %v922_v53 = vmul.f32 %v921_v49, %v1926_v18 }
 0x12f   :  { %v2258_v30 = vpop.permute.xlu0 %423 }
 0x130   :  { %861 = vperm.xlu1 %1734, %v849_v26   ;;  %v924_v60 = vadd.f32 %v923_v54, %v922_v53 }
 0x131   :  { %698 = vrot.lane.b32.xlu0 %v2026_v8, %s1833_s0  ;;  %s1070_s25 = ssub.f32 %s1643_s19, %s2373_s24  ;;  %s1667_s19 = sld [smem:[#allocation7 + $0x1b]] }
 0x132   :  { %v2267_v34 = vpop.permute.xlu1 %373 }
 0x133   :  { %v2269_v35 = vpop.permute.xlu0 %446 }
 0x134   :  { %877 = vrot.lane.b32.xlu1 %v2035_v10, %s1839_s18 }
 0x135   :  { %702 = vrot.lane.b32.xlu0 %v2112_v21, %s1833_s0  ;;  %s1840_s0 = smov 32  }
 0x136   :  { %v2275_v39 = vpop.permute.xlu1 %398 }
 0x137   :  { %3335 = vst [vmem:[#allocation22_spill] sm:$0xff] %v2275_v39  ;;  %v2277_v41 = vpop.permute.xlu0 %471 }
 0x138   :  { %886 = vperm.xlu1 %1734, %v874_v37   ;;  %v973_v37 = vstv %s2301_s11  ;;  %s1095_s11 = ssub.f32 %s1645_s26, %s2392_s9 }
 0x139   :  { %723 = vrot.lane.b32.xlu0 %v2026_v8, %s1834_s27  ;;  %v974_v43 = vadd.f32 %v973_v37, %v972_v33  ;;  %v1022_v33 = vmul.f32 %v1021_v5, %v1926_v18  ;;  %v1023_v37 = vstv %s2337_s16  ;;  %s1172_s16 = ssub.f32 %s1651_s12, %s2423_s30  ;;  %s1665_s12 = sld [smem:[#allocation7 + $0x14]] }
 0x13a   :  { %v2286_v45 = vpop.permute.xlu1 %425 }
 0x13b   :  { %v2288_v46 = vpop.permute.xlu0 %496 }
 0x13c   :  { %902 = vrot.lane.b32.xlu1 %v2035_v10, %s1840_s0 }
 0x13d   :  { %727 = vrot.lane.b32.xlu0 %v2112_v21, %s1834_s27  ;;  %s1841_s27 = smov 16  }
 0x13e   :  { %v2294_v50 = vpop.permute.xlu1 %448 }
 0x13f   :  { %v2296_v51 = vpop.permute.xlu0 %521 }
 0x140   :  { %3336 = vst [vmem:[#allocation23_spill] sm:$0xff] %v2296_v51  ;;  %911 = vperm.xlu1 %1734, %v899_v47   ;;  %v996_v47 = vstv %s995_s6  ;;  %s2446_s6 = sld [smem:[#allocation7 + $0x1a]]  ;;  %v3311_v51 = vlaneseq }
 0x141   :  { %748 = vrot.lane.b32.xlu0 %v2026_v8, %s1835_s29  ;;  %v997_v53 = vmul.f32 %v996_v47, %v1926_v18  ;;  %v1024_v47 = vadd.f32 %v1023_v37, %v1022_v33 }
 0x142   :  { %v2305_v57 = vpop.permute.xlu1 %473 }
 0x143   :  { %v2307_v58 = vpop.permute.xlu0 %546 }
 0x144   :  { %3337 = vst [vmem:[#allocation24_spill] sm:$0xff] %v2307_v58  ;;  %927 = vrot.lane.b32.xlu1 %v2035_v10, %s1841_s27 }
 0x145   :  { %752 = vrot.lane.b32.xlu0 %v2112_v21, %s1835_s29  ;;  %s1842_s29 = smov 111  }
 0x146   :  { %v2315_v1 = vpop.permute.xlu1 %498  ;;  %s1197_s8 = ssub.f32 %s2446_s6, %s2448_s7  ;;  %s1673_s6 = sld [smem:[#allocation7 + $0x30]] }
 0x147   :  { %v2313_v0 = vpop.permute.xlu0 %571 }
 0x148   :  { %3338 = vst [vmem:[#allocation25_spill] sm:$0xff] %v2313_v0  ;;  %936 = vperm.xlu1 %1734, %v924_v60   ;;  %v998_v60 = vstv %s2322_s4  ;;  %s1661_s4 = sld [smem:[#allocation7 + $0x6]] }
 0x149   :  { %777 = vrot.lane.b32.xlu0 %v2026_v8, %s1836_s13  ;;  %v999_v4 = vadd.f32 %v998_v60, %v997_v53  ;;  %v1046_v60 = vstv %s1045_s1  ;;  %s1657_s1 = sld [smem:[#allocation7 + $0x28]] }
 0x14a   :  { %v2330_v26 = vpop.permute.xlu1 %523  ;;  %v1047_v5 = vmul.f32 %v1046_v60, %v1926_v18 }
 0x14b   :  { %v2324_v9 = vpop.permute.xlu0 %600  ;;  %3340 = vst [vmem:[#allocation27_spill] sm:$0xff] %v2330_v26 }
 0x14c   :  { %3339 = vst [vmem:[#allocation26_spill] sm:$0xff] %v2324_v9  ;;  %954 = vrot.lane.b32.xlu1 %v2035_v10, %s1842_s29  ;;  %v1049_v37 = vadd.f32 %v1048_v17, %v1047_v5 }
 0x14d   :  { %781 = vrot.lane.b32.xlu0 %v2112_v21, %s1836_s13  ;;  %s1843_s13 = smov 95  }
 0x14e   :  { %v2343_v42 = vpop.permute.xlu1 %548 }
 0x14f   :  { %v2332_v31 = vpop.permute.xlu0 %623  ;;  %3343 = vst [vmem:[#allocation30_spill] sm:$0xff] %v2343_v42 }
 0x150   :  { %3341 = vst [vmem:[#allocation28_spill] sm:$0xff] %v2332_v31  ;;  %963 = vperm.xlu1 %1734, %v951_v22  }
 0x151   :  { %800 = vrot.lane.b32.xlu0 %v2026_v8, %s1837_s15 }
 0x152   :  { %v2355_v54 = vpop.permute.xlu1 %573 }
 0x153   :  { %v2341_v38 = vpop.permute.xlu0 %648  ;;  %3345 = vst [vmem:[#allocation32_spill] sm:$0xff] %v2355_v54 }
 0x154   :  { %3342 = vst [vmem:[#allocation29_spill] sm:$0xff] %v2341_v38  ;;  %977 = vrot.lane.b32.xlu1 %v2035_v10, %s1843_s13 }
 0x155   :  { %804 = vrot.lane.b32.xlu0 %v2112_v21, %s1837_s15  ;;  %s1844_s15 = smov 79  }
 0x156   :  { %v2368_v27 = vpop.permute.xlu1 %602 }
 0x157   :  { %v2349_v49 = vpop.permute.xlu0 %252  ;;  %3348 = vst [vmem:[#allocation35_spill] sm:$0xff] %v2368_v27 }
 0x158   :  { %3344 = vst [vmem:[#allocation31_spill] sm:$0xff] %v2349_v49  ;;  %986 = vperm.xlu1 %1734, %v974_v43  }
 0x159   :  { %825 = vrot.lane.b32.xlu0 %v2026_v8, %s1838_s17 }
 0x15a   :  { %v2383_v53 = vpop.permute.xlu1 %625 }
 0x15b   :  { %v2360_v61 = vpop.permute.xlu0 %275  ;;  %3350 = vst [vmem:[#allocation37_spill] sm:$0xff] %v2383_v53 }
 0x15c   :  { %3346 = vst [vmem:[#allocation33_spill] sm:$0xff] %v2360_v61  ;;  %1002 = vrot.lane.b32.xlu1 %v2035_v10, %s1844_s15 }
 0x15d   :  { %829 = vrot.lane.b32.xlu0 %v2112_v21, %s1838_s17  ;;  %s1845_s17 = smov 63  }
 0x15e   :  { %v2396_v33 = vpop.permute.xlu1 %650 }
 0x15f   :  { %v2366_v22 = vpop.permute.xlu0 %300  ;;  %3353 = vst [vmem:[#allocation40_spill] sm:$0xff] %v2396_v33  ;;  %v1073_v33 = vstv %s2373_s24  ;;  %s2478_s24 = sld [smem:[#allocation7 + $0x4c]] }
 0x160   :  { %3347 = vst [vmem:[#allocation34_spill] sm:$0xff] %v2366_v22  ;;  %1011 = vperm.xlu1 %1734, %v999_v4  }
 0x161   :  { %850 = vrot.lane.b32.xlu0 %v2026_v8, %s1814_s20 }
 0x163   :  { %v2377_v43 = vpop.permute.xlu0 %325 }
 0x164   :  { %3349 = vst [vmem:[#allocation36_spill] sm:$0xff] %v2377_v43  ;;  %1027 = vrot.lane.b32.xlu1 %v2035_v10, %s1845_s17 }
 0x165   :  { %854 = vrot.lane.b32.xlu0 %v2112_v21, %s1814_s20  ;;  %s1846_s20 = smov 47  }
 0x167   :  { %v2385_v4 = vpop.permute.xlu0 %350 }
 0x168   :  { %3351 = vst [vmem:[#allocation38_spill] sm:$0xff] %v2385_v4  ;;  %1036 = vperm.xlu1 %1734, %v1024_v47   ;;  %v1071_v47 = vstv %s1070_s25  ;;  %s2496_s25 = sld [smem:[#allocation7 + $0x59]] }
 0x169   :  { %875 = vrot.lane.b32.xlu0 %v2026_v8, %s1839_s18 }
 0x16b   :  { %v2394_v38 = vpop.permute.xlu0 %375 }
 0x16c   :  { %3352 = vst [vmem:[#allocation39_spill] sm:$0xff] %v2394_v38  ;;  %1052 = vrot.lane.b32.xlu1 %v2035_v10, %s1846_s20  ;;  %v1072_v38 = vmul.f32 %v1071_v47, %v1926_v18  ;;  %v1096_v47 = vstv %s1095_s11  ;;  %s1853_s11 = smov 93  }
 0x16d   :  { %879 = vrot.lane.b32.xlu0 %v2112_v21, %s1839_s18  ;;  %s1847_s18 = smov 31  }
 0x16e   :  { %s1247_s26 = ssub.f32 %s1657_s1, %s2496_s25  ;;  %s2641_s1 = sld [smem:[#allocation7 + $0x53]] }
 0x16f   :  { %v2402_v60 = vpop.permute.xlu0 %400  ;;  %v2404_v4 = vpop.permute.xlu1 %659 }
 0x170   :  { %3354 = vst [vmem:[#allocation41_spill] sm:$0xff] %v2402_v60  ;;  %3355 = vst [vmem:[#allocation42_spill] sm:$0xff] %v2404_v4  ;;  %1061 = vperm.xlu1 %1734, %v1049_v37   ;;  %v1074_v37 = vadd.f32 %v1073_v33, %v1072_v38  ;;  %v1098_v38 = vstv %s2392_s9  ;;  %s2545_s9 = sld [smem:[#allocation7 + $0x3d]] }
 0x171   :  { %900 = vrot.lane.b32.xlu0 %v2026_v8, %s1840_s0 }
 0x173   :  { %v2415_v17 = vpop.permute.xlu0 %427  ;;  %v2417_v5 = vpop.permute.xlu1 %675 }
 0x174   :  { %3356 = vst [vmem:[#allocation43_spill] sm:$0xff] %v2415_v17  ;;  %3357 = vst [vmem:[#allocation44_spill] sm:$0xff] %v2417_v5  ;;  %1077 = vrot.lane.b32.xlu1 %v2035_v10, %s1847_s18  ;;  %v1097_v5 = vmul.f32 %v1096_v47, %v1926_v18  ;;  %v1125_v47 = vstv %s1124_s14 }
 0x175   :  { %904 = vrot.lane.b32.xlu0 %v2112_v21, %s1840_s0  ;;  %s1848_s0 = smov 15  }
 0x176   :  { %v1150_v43 = vstv %s2545_s9 }
 0x177   :  { %v2425_v60 = vpop.permute.xlu0 %450  ;;  %v2427_v4 = vpop.permute.xlu1 %684 }
 0x178   :  { %3358 = vst [vmem:[#allocation45_spill] sm:$0xff] %v2425_v60  ;;  %3359 = vst [vmem:[#allocation46_spill] sm:$0xff] %v2427_v4  ;;  %1086 = vperm.xlu1 %1734, %v1074_v37   ;;  %v1099_v37 = vadd.f32 %v1098_v38, %v1097_v5  ;;  %v1126_v5 = vmul.f32 %v1125_v47, %v1926_v18  ;;  %v1127_v38 = vstv %s2411_s28  ;;  %s2555_s28 = sld [smem:[#allocation7 + $0x3e]] }
 0x179   :  { %925 = vrot.lane.b32.xlu0 %v2026_v8, %s1841_s27 }
 0x17b   :  { %v2437_v33 = vpop.permute.xlu0 %475  ;;  %v2439_v17 = vpop.permute.xlu1 %700 }
 0x17c   :  { %3360 = vst [vmem:[#allocation47_spill] sm:$0xff] %v2437_v33  ;;  %3361 = vst [vmem:[#allocation48_spill] sm:$0xff] %v2439_v17  ;;  %1102 = vrot.lane.b32.xlu1 %v2035_v10, %s1848_s0  ;;  %v1173_v17 = vstv %s1172_s16  ;;  %s2588_s16 = sld [smem:[#allocation7 + $0x52]] }
 0x17d   :  { %929 = vrot.lane.b32.xlu0 %v2112_v21, %s1841_s27  ;;  %s1301_s27 = ssub.f32 %s1661_s4, %s2435_s5  ;;  %s1854_s4 = smov 62  }
 0x17e   :  { %v1327_v0 = vstv %s2555_s28 }
 0x17f   :  { %v2450_v4 = vpop.permute.xlu0 %500  ;;  %v2452_v33 = vpop.permute.xlu1 %709  ;;  %v1302_v47 = vstv %s1301_s27  ;;  %s1855_s27 = smov 77  }
 0x180   :  { %3362 = vst [vmem:[#allocation49_spill] sm:$0xff] %v2450_v4  ;;  %3363 = vst [vmem:[#allocation50_spill] sm:$0xff] %v2452_v33  ;;  %1111 = vperm.xlu1 %1734, %v1099_v37   ;;  %v1128_v33 = vadd.f32 %v1127_v38, %v1126_v5  ;;  %v1174_v37 = vmul.f32 %v1173_v17, %v1926_v18  ;;  %v1175_v4 = vstv %s2423_s30  ;;  %v1304_v17 = vstv %s2435_s5  ;;  %s2565_s30 = sld [smem:[#allocation7 + $0x45]] }
 0x181   :  { %952 = vrot.lane.b32.xlu0 %v2026_v8, %s1842_s29  ;;  %v1303_v5 = vmul.f32 %v1302_v47, %v1926_v18  ;;  %v1198_v38 = vstv %s1197_s8 }
 0x183   :  { %v2459_v60 = vpop.permute.xlu0 %525  ;;  %v2461_v48 = vpop.permute.xlu1 %725 }
 0x184   :  { %3364 = vst [vmem:[#allocation51_spill] sm:$0xff] %v2459_v60  ;;  %3365 = vst [vmem:[#allocation52_spill] sm:$0xff] %v2461_v48  ;;  %1131 = vrot.lane.b32.xlu1 %v2035_v10, %s1849_s21  ;;  %v1176_v48 = vadd.f32 %v1175_v4, %v1174_v37  ;;  %v1199_v4 = vmul.f32 %v1198_v38, %v1926_v18 }
 0x185   :  { %956 = vrot.lane.b32.xlu0 %v2112_v21, %s1842_s29  ;;  %s1374_s29 = ssub.f32 %s1667_s19, %s2478_s24  ;;  %s1856_s19 = smov 46  }
 0x186   :  { %s1349_s5 = ssub.f32 %s1665_s12, %s2565_s30  ;;  %s1860_s12 = smov 14  }
 0x187   :  { %v2471_v52 = vpop.permute.xlu0 %550  ;;  %v2473_v60 = vpop.permute.xlu1 %734 }
 0x188   :  { %3366 = vst [vmem:[#allocation53_spill] sm:$0xff] %v2471_v52  ;;  %3367 = vst [vmem:[#allocation54_spill] sm:$0xff] %v2473_v60  ;;  %1140 = vperm.xlu1 %1734, %v1128_v33   ;;  %v1305_v52 = vadd.f32 %v1304_v17, %v1303_v5  ;;  %v1200_v33 = vstv %s2448_s7  ;;  %v1375_v17 = vstv %s1374_s29  ;;  %v1350_v54 = vstv %s1349_s5  ;;  %s2598_s7 = sld [smem:[#allocation7 + $0x61]]  ;;  %s2639_s29 = sld [smem:[#allocation7 + $0x22]] }
 0x189   :  { %975 = vrot.lane.b32.xlu0 %v2026_v8, %s1843_s13  ;;  %v1201_v60 = vadd.f32 %v1200_v33, %v1199_v4  ;;  %v1376_v4 = vmul.f32 %v1375_v17, %v1926_v18  ;;  %v1377_v33 = vstv %s2478_s24  ;;  %v1351_v58 = vmul.f32 %v1350_v54, %v1926_v18  ;;  %s1857_s24 = smov 61  }
 0x18b   :  { %v2481_v44 = vpop.permute.xlu0 %575  ;;  %v2483_v9 = vpop.permute.xlu1 %750 }
 0x18c   :  { %3368 = vst [vmem:[#allocation55_spill] sm:$0xff] %v2481_v44  ;;  %3369 = vst [vmem:[#allocation56_spill] sm:$0xff] %v2483_v9  ;;  %1188 = vperm.xlu1 %1734, %v1176_v48   ;;  %v1378_v9 = vadd.f32 %v1377_v33, %v1376_v4  ;;  %v1248_v44 = vstv %s1247_s26  ;;  %s2684_s26 = sld [smem:[#allocation7 + $0x60]] }
 0x18d   :  { %979 = vrot.lane.b32.xlu0 %v2112_v21, %s1843_s13  ;;  %s1850_s13 = smov 94   ;;  %v1249_v17 = vmul.f32 %v1248_v44, %v1926_v18 }
 0x18e   :  { %s1449_s8 = ssub.f32 %s1673_s6, %s2598_s7 }
 0x18f   :  { %v2489_v37 = vpop.permute.xlu0 %604  ;;  %v2491_v47 = vpop.permute.xlu1 %759 }
 0x190   :  { %3370 = vst [vmem:[#allocation57_spill] sm:$0xff] %v2489_v37  ;;  %3371 = vst [vmem:[#allocation58_spill] sm:$0xff] %v2491_v47  ;;  %1317 = vperm.xlu1 %1734, %v1305_v52   ;;  %v1450_v54 = vstv %s1449_s8 }
 0x191   :  { %1000 = vrot.lane.b32.xlu0 %v2026_v8, %s1844_s15 }
 0x193   :  { %v2498_v48 = vpop.permute.xlu0 %627  ;;  %v2500_v5 = vpop.permute.xlu1 %779 }
 0x194   :  { %3372 = vst [vmem:[#allocation59_spill] sm:$0xff] %v2498_v48  ;;  %1213 = vperm.xlu1 %1734, %v1201_v60  }
 0x195   :  { %1004 = vrot.lane.b32.xlu0 %v2112_v21, %s1844_s15  ;;  %s1851_s15 = smov 78  }
 0x197   :  { %v2504_v52 = vpop.permute.xlu0 %652  ;;  %v2506_v38 = vpop.permute.xlu1 %788 }
 0x198   :  { %3373 = vst [vmem:[#allocation60_spill] sm:$0xff] %v2504_v52  ;;  %1152 = vrot.lane.b32.xlu1 %v2026_v8, %s1850_s13 }
 0x199   :  { %1025 = vrot.lane.b32.xlu0 %v2026_v8, %s1845_s17 }
 0x19b   :  { %v2515_v60 = vpop.permute.xlu0 %673  ;;  %v2517_v47 = vpop.permute.xlu1 %802 }
 0x19c   :  { %3374 = vst [vmem:[#allocation61_spill] sm:$0xff] %v2515_v60  ;;  %1156 = vrot.lane.b32.xlu1 %v2112_v21, %s1850_s13  ;;  %v1250_v60 = vstv %s2496_s25  ;;  %s1858_s25 = smov 30  }
 0x19d   :  { %1029 = vrot.lane.b32.xlu0 %v2112_v21, %s1845_s17  ;;  %v1251_v4 = vadd.f32 %v1250_v60, %v1249_v17  ;;  %s1649_s17 = sld [smem:[#allocation7 + $0xc]] }
 0x19f   :  { %v2523_v52 = vpop.permute.xlu0 %677  ;;  %v2525_v37 = vpop.permute.xlu1 %811 }
 0x1a0   :  { %3375 = vst [vmem:[#allocation62_spill] sm:$0xff] %v2523_v52  ;;  %1390 = vperm.xlu1 %1734, %v1378_v9  }
 0x1a1   :  { %1050 = vrot.lane.b32.xlu0 %v2026_v8, %s1846_s20 }
 0x1a3   :  { %v2531_v48 = vpop.permute.xlu0 %698  ;;  %v2533_v27 = vpop.permute.xlu1 %827 }
 0x1a4   :  { %3376 = vst [vmem:[#allocation63_spill] sm:$0xff] %v2531_v48  ;;  %1179 = vrot.lane.b32.xlu1 %v2035_v10, %s1851_s15 }
 0x1a5   :  { %1054 = vrot.lane.b32.xlu0 %v2112_v21, %s1846_s20  ;;  %s1663_s20 = sld [smem:[#allocation7 + $0xd]] }
 0x1a7   :  { %v2539_v33 = vpop.permute.xlu0 %702  ;;  %v2541_v9 = vpop.permute.xlu1 %836 }
 0x1a8   :  { %3377 = vst [vmem:[#allocation64_spill] sm:$0xff] %v2539_v33  ;;  %1263 = vperm.xlu1 %1734, %v1251_v4  }
 0x1a9   :  { %1075 = vrot.lane.b32.xlu0 %v2026_v8, %s1847_s18 }
 0x1ab   :  { %v2547_v44 = vpop.permute.xlu0 %723  ;;  %v2549_v52 = vpop.permute.xlu1 %852  ;;  %s1324_s14 = ssub.f32 %s1663_s20, %s2555_s28  ;;  %s2715_s20 = sld [smem:[#allocation7 + $0x29]] }
 0x1ac   :  { %3378 = vst [vmem:[#allocation65_spill] sm:$0xff] %v2547_v44  ;;  %1308 = vrot.lane.b32.xlu1 %v2035_v10, %s1852_s10  ;;  %s2717_s28 = sld [smem:[#allocation7 + $0x5a]] }
 0x1ad   :  { %1079 = vrot.lane.b32.xlu0 %v2112_v21, %s1847_s18  ;;  %s1147_s18 = ssub.f32 %s1649_s17, %s2545_s9  ;;  %v1325_v31 = vstv %s1324_s14 }
 0x1ae   :  { %s1399_s17 = ssub.f32 %s2639_s29, %s2641_s1 }
 0x1af   :  { %v2557_v60 = vpop.permute.xlu0 %727  ;;  %v2559_v17 = vpop.permute.xlu1 %861 }
 0x1b0   :  { %3379 = vst [vmem:[#allocation66_spill] sm:$0xff] %v2557_v60  ;;  %1329 = vrot.lane.b32.xlu1 %v2026_v8, %s1853_s11  ;;  %v1148_v60 = vstv %s1147_s18 }
 0x1b1   :  { %1100 = vrot.lane.b32.xlu0 %v2026_v8, %s1848_s0 }
 0x1b3   :  { %v2568_v4 = vpop.permute.xlu0 %748  ;;  %v2570_v33 = vpop.permute.xlu1 %877 }
 0x1b4   :  { %3380 = vst [vmem:[#allocation67_spill] sm:$0xff] %v2568_v4  ;;  %1333 = vrot.lane.b32.xlu1 %v2112_v21, %s1853_s11  ;;  %v1149_v4 = vmul.f32 %v1148_v60, %v1926_v18  ;;  %v1326_v60 = vmul.f32 %v1325_v31, %v1926_v18 }
 0x1b5   :  { %1104 = vrot.lane.b32.xlu0 %v2112_v21, %s1848_s0  ;;  %s1655_s0 = sld [smem:[#allocation7 + $0x21]] }
 0x1b6   :  { %v1151_v40 = vadd.f32 %v1150_v43, %v1149_v4  ;;  %v1328_v36 = vadd.f32 %v1327_v0, %v1326_v60  ;;  %v1352_v43 = vstv %s2565_s30  ;;  %v1225_v60 = vstv %s2588_s16  ;;  %s1862_s30 = smov 13  }
 0x1b7   :  { %v2577_v44 = vpop.permute.xlu0 %752  ;;  %v2579_v48 = vpop.permute.xlu1 %886  ;;  %v1353_v42 = vadd.f32 %v1352_v43, %v1351_v58  ;;  %v1451_v43 = vmul.f32 %v1450_v54, %v1926_v18 }
 0x1b8   :  { %3381 = vst [vmem:[#allocation68_spill] sm:$0xff] %v2577_v44  ;;  %1202 = vrot.lane.b32.xlu1 %v2026_v8, %s1854_s4 }
 0x1b9   :  { %1129 = vrot.lane.b32.xlu0 %v2026_v8, %s1849_s21 }
 0x1bb   :  { %v778_v53 = vpop.permute.xlu0 %777  ;;  %v2590_v44 = vpop.permute.xlu1 %902 }
 0x1bc   :  { %1206 = vrot.lane.b32.xlu1 %v2112_v21, %s1854_s4 }
 0x1bd   :  { %1133 = vrot.lane.b32.xlu0 %v2112_v21, %s1849_s21  ;;  %s1222_s21 = ssub.f32 %s1655_s0, %s2588_s16 }
 0x1bf   :  { %v782_v22 = vpop.permute.xlu0 %781  ;;  %v2600_v49 = vpop.permute.xlu1 %911  ;;  %v1223_v19 = vstv %s1222_s21 }
 0x1c0   :  { %1354 = vrot.lane.b32.xlu1 %v2026_v8, %s1855_s27  ;;  %v1224_v0 = vmul.f32 %v1223_v19, %v1926_v18  ;;  %v1452_v19 = vstv %s2598_s7 }
 0x1c1   :  { %1163 = vperm.xlu0 %1735, %v1151_v40   ;;  %v1453_v54 = vadd.f32 %v1452_v19, %v1451_v43 }
 0x1c2   :  { %v1226_v32 = vadd.f32 %v1225_v60, %v1224_v0 }
 0x1c3   :  { %v801_v31 = vpop.permute.xlu0 %800  ;;  %v2607_v4 = vpop.permute.xlu1 %927 }
 0x1c4   :  { %1358 = vrot.lane.b32.xlu1 %v2112_v21, %s1855_s27 }
 0x1c5   :  { %1340 = vperm.xlu0 %1735, %v1328_v36   ;;  %v2619_v36 = vand.u32 127, %v3311_v51 }
 0x1c7   :  { %v805_v61 = vpop.permute.xlu0 %804  ;;  %v2612_v40 = vpop.permute.xlu1 %936  ;;  %vm806_vm5 = vcmp.lt.s32.totalorder %v2619_v36, 96  ;;  %vm783_vm6 = vcmp.lt.s32.totalorder %v2619_v36, 112  ;;  %vm831_vm7 = vcmp.lt.s32.totalorder %v2619_v36, 80  ;;  %vm856_vm8 = vcmp.lt.s32.totalorder %v2619_v36, 64 }
 0x1c8   :  { %1227 = vrot.lane.b32.xlu1 %v2026_v8, %s1856_s19  ;;  %v808_v51 = vsel %vm806_vm5, %v801_v31, %v2517_v47  ;;  %v785_v0 = vsel %vm783_vm6, %v778_v53, %v2500_v5  ;;  %v807_v53 = vsel %vm806_vm5, %v2517_v47, %v805_v61  ;;  %v784_v19 = vsel %vm783_vm6, %v2500_v5, %v782_v22 }
 0x1c9   :  { %1365 = vperm.xlu0 %1735, %v1353_v42   ;;  %v814_v31 = vmul.f32 %v2525_v37, %v808_v51  ;;  %vm881_vm9 = vcmp.lt.s32.totalorder %v2619_v36, 48  ;;  %vm906_vm10 = vcmp.lt.s32.totalorder %v2619_v36, 32  ;;  %vm931_vm11 = vcmp.lt.s32.totalorder %v2619_v36, 16 }
 0x1ca   :  { %vm277_vm12 = vcmp.lt.s32.totalorder %v2619_v36, 99  ;;  %vm958_vm13 = vcmp.lt.s32.totalorder %v2619_v36, 111  ;;  %vm254_vm14 = vcmp.lt.s32.totalorder %v2619_v36, 115  ;;  %vm302_vm15 = vcmp.lt.s32.totalorder %v2619_v36, 83 }
 0x1cb   :  { %v826_v26 = vpop.permute.xlu0 %825  ;;  %v2621_v58 = vpop.permute.xlu1 %954  ;;  %vm327_vm1 = vcmp.lt.s32.totalorder %v2619_v36, 67  ;;  %vm352_vm2 = vcmp.lt.s32.totalorder %v2619_v36, 51  ;;  %vm3315_vm3 = vcmp.lt.s32.totalorder %v2619_v36, 35  ;;  %vm402_vm4 = vcmp.lt.s32.totalorder %v2619_v36, 19 }
 0x1cc   :  { %1231 = vrot.lane.b32.xlu1 %v2112_v21, %s1856_s19  ;;  %v833_v39 = vsel %vm831_vm7, %v826_v26, %v2533_v27  ;;  %vm3316_vm5 = vcmp.lt.s32.totalorder %v2619_v36, 114  ;;  %vm452_vm6 = vcmp.lt.s32.totalorder %v2619_v36, 98 }
 0x1cd   :  { %1154 = vrot.lane.b32.xlu0 %v2035_v10, %s1850_s13  ;;  %v839_v43 = vmul.f32 %v2541_v9, %v833_v39  ;;  %v815_v39 = vmul.f32 %v2525_v37, %v807_v53  ;;  %s2682_s13 = sld [smem:[#allocation7 + $0x2f]] }
 0x1cf   :  { %v830_v42 = vpop.permute.xlu0 %829  ;;  %v2631_v25 = vpop.permute.xlu1 %963 }
 0x1d0   :  { %1381 = vrot.lane.b32.xlu1 %v2035_v10, %s1857_s24 }
 0x1d1   :  { %1238 = vperm.xlu0 %1735, %v1226_v32   ;;  %v791_v32 = vmul.f32 %v2506_v38, %v785_v0  ;;  %v832_v0 = vsel %vm831_vm7, %v2533_v27, %v830_v42  ;;  %v792_v27 = vmul.f32 %v2506_v38, %v784_v19  ;;  %vm3317_vm7 = vcmp.lt.s32.totalorder %v2619_v36, 82 }
 0x1d2   :  { %v840_v5 = vmul.f32 %v2541_v9, %v832_v0  ;;  %v1400_v9 = vstv %s1399_s17 }
 0x1d3   :  { %v851_v60 = vpop.permute.xlu0 %850  ;;  %v2651_v28 = vpop.permute.xlu1 %977  ;;  %v1401_v0 = vmul.f32 %v1400_v9, %v1926_v18  ;;  %s1272_s9 = ssub.f32 %s2682_s13, %s2684_s26  ;;  %v2740_v9 = vand.u32 15, %v2619_v36 }
 0x1d4   :  { %1465 = vperm.xlu1 %1734, %v1453_v54   ;;  %v858_v51 = vsel %vm856_vm8, %v851_v60, %v2549_v52  ;;  %v816_v54 = vadd.f32 %v814_v31, %v791_v32  ;;  %v817_v60 = vadd.f32 %v815_v39, %v792_v27 }
 0x1d5   :  { %1177 = vrot.lane.b32.xlu0 %v2026_v8, %s1851_s15  ;;  %v864_v47 = vmul.f32 %v2559_v17, %v858_v51 }
 0x1d6   :  { %v841_v37 = vadd.f32 %v839_v43, %v816_v54  ;;  %v842_v32 = vadd.f32 %v840_v5, %v817_v60 }
 0x1d7   :  { %v855_v26 = vpop.permute.xlu0 %854  ;;  %v2669_v20 = vpop.permute.xlu1 %986 }
 0x1d8   :  { %v857_v61 = vsel %vm856_vm8, %v2549_v52, %v855_v26  ;;  %1254 = vrot.lane.b32.xlu1 %v2035_v10, %s1858_s25  ;;  %v866_v31 = vadd.f32 %v864_v47, %v841_v37  ;;  %v1273_v37 = vstv %s1272_s9 }
 0x1d9   :  { %v865_v22 = vmul.f32 %v2559_v17, %v857_v61  ;;  %1181 = vrot.lane.b32.xlu0 %v2112_v21, %s1851_s15  ;;  %s1859_s15 = smov 45   ;;  %v1402_v61 = vstv %s2641_s1 }
 0x1da   :  { %v1403_v27 = vadd.f32 %v1402_v61, %v1401_v0 }
 0x1db   :  { %v876_v52 = vpop.permute.xlu0 %875  ;;  %v2690_v42 = vpop.permute.xlu1 %1002  ;;  %v867_v19 = vadd.f32 %v865_v22, %v842_v32  ;;  %v1275_v32 = vstv %s2684_s26 }
 0x1dc   :  { %v883_v17 = vsel %vm881_vm9, %v876_v52, %v2570_v33  ;;  %1404 = vrot.lane.b32.xlu1 %v2026_v8, %s1859_s15 }
 0x1dd   :  { %v889_v38 = vmul.f32 %v2579_v48, %v883_v17  ;;  %1306 = vrot.lane.b32.xlu0 %v2026_v8, %s1852_s10 }
 0x1df   :  { %v891_v53 = vadd.f32 %v889_v38, %v866_v31  ;;  %v880_v51 = vpop.permute.xlu0 %879  ;;  %v2700_v43 = vpop.permute.xlu1 %1011  ;;  %v1274_v38 = vmul.f32 %v1273_v37, %v1926_v18  ;;  %v1427_v37 = vstv %s2717_s28 }
 0x1e0   :  { %v882_v26 = vsel %vm881_vm9, %v2570_v33, %v880_v51  ;;  %1408 = vrot.lane.b32.xlu1 %v2112_v21, %s1859_s15  ;;  %vm3318_vm9 = vcmp.lt.s32.totalorder %v2619_v36, 66 }
 0x1e1   :  { %v890_v54 = vmul.f32 %v2579_v48, %v882_v26  ;;  %1310 = vrot.lane.b32.xlu0 %v2112_v21, %s1852_s10  ;;  %s1861_s10 = smov 29  }
 0x1e3   :  { %v892_v33 = vadd.f32 %v890_v54, %v867_v19  ;;  %v901_v39 = vpop.permute.xlu0 %900  ;;  %v2719_v47 = vpop.permute.xlu1 %1027  ;;  %v1276_v19 = vadd.f32 %v1275_v32, %v1274_v38  ;;  %v167_v54 = vadd.s32 4294967293, %v2740_v9  ;;  %v304_v38 = vsel %vm302_vm15, %v2212_v59, %v2237_v6 }
 0x1e4   :  { %v908_v48 = vsel %vm906_vm10, %v901_v39, %v2590_v44  ;;  %1279 = vrot.lane.b32.xlu1 %v2035_v10, %s1860_s12 }
 0x1e5   :  { %v914_v22 = vmul.f32 %v2600_v49, %v908_v48  ;;  %1331 = vrot.lane.b32.xlu0 %v2035_v10, %s1853_s11  ;;  %s1424_s11 = ssub.f32 %s2715_s20, %s2717_s28  ;;  %vm169_vm0 = vcmp.ge.s32.totalorder %v167_v54, 0  ;;  %v329_v54 = vsel %vm327_vm1, %v2220_v63, %v2248_v23  ;;  %v354_v63 = vsel %vm352_vm2, %v2231_v3, %v2256_v29 }
 0x1e6   :  { %v379_v3 = vsel %vm3315_vm3, %v2239_v7, %v2267_v34  ;;  %v479_v7 = vsel %vm3317_vm7, %v2277_v41, %v2305_v57  ;;  %vm629_vm3 = vcmp.lt.s32.totalorder %v2619_v36, 97  ;;  %v504_v41 = vsel %vm3318_vm9, %v2288_v46, %v2315_v1 }
 0x1e7   :  { %v916_v5 = vadd.f32 %v914_v22, %v891_v53  ;;  %v905_v52 = vpop.permute.xlu0 %904  ;;  %v2729_v17 = vpop.permute.xlu1 %1036  ;;  %v1425_v0 = vstv %s1424_s11  ;;  %vm1006_vm9 = vcmp.lt.s32.totalorder %v2619_v36, 79 }
 0x1e8   :  { %v907_v60 = vsel %vm906_vm10, %v2590_v44, %v905_v52  ;;  %1429 = vrot.lane.b32.xlu1 %v2026_v8, %s1861_s10  ;;  %vm527_vm10 = vcmp.lt.s32.totalorder %v2619_v36, 50 }
 0x1e9   :  { %v915_v31 = vmul.f32 %v2600_v49, %v907_v60  ;;  %1415 = vperm.xlu0 %1735, %v1403_v27   ;;  %v1426_v27 = vmul.f32 %v1425_v0, %v1926_v18  ;;  %v310_v0 = vmul.f32 %v2069_v13, %v304_v38  ;;  %v431_v38 = vsel %vm3316_vm5, %v2258_v30, %v2286_v45 }
 0x1eb   :  { %v917_v53 = vadd.f32 %v915_v31, %v892_v33  ;;  %v926_v51 = vpop.permute.xlu0 %925  ;;  %v2745_v26 = vpop.permute.xlu1 %1052 }
 0x1ec   :  { %v933_v44 = vsel %vm931_vm11, %v926_v51, %v2607_v4  ;;  %1433 = vrot.lane.b32.xlu1 %v2112_v21, %s1861_s10 }
 0x1ed   :  { %v939_v49 = vmul.f32 %v2612_v40, %v933_v44  ;;  %1204 = vrot.lane.b32.xlu0 %v2035_v10, %s1854_s4  ;;  %v3384_v44 = vmov 0.0  }
 0x1ef   :  { %v2756_v61 = vadd.f32 %v939_v49, %v916_v5  ;;  %v930_v33 = vpop.permute.xlu0 %929  ;;  %v2759_v39 = vpop.permute.xlu1 %1061  ;;  %v179_v5 = vadd.s32 4294967294, %v2740_v9  ;;  %v2802_v49 = vsel %vm169_vm0, 1.0, %v3384_v44  ;;  %vm552_vm0 = vcmp.lt.s32.totalorder %v2619_v36, 34 }
 0x1f0   :  { %v932_v48 = vsel %vm931_vm11, %v2607_v4, %v930_v33  ;;  %1456 = vrot.lane.b32.xlu1 %v2035_v10, %s1862_s30  ;;  %v279_v4 = vsel %vm277_vm12, %v2201_v55, %v2229_v2  ;;  %v256_v55 = vsel %vm254_vm14, %v2203_v56, %v2218_v62  ;;  %3385 = vst [vmem:[#allocation71_spill] sm:$0xff] %v2802_v49  ;;  %vm981_vm11 = vcmp.lt.s32.totalorder %v2619_v36, 95 }
 0x1f1   :  { %3382 = vst [vmem:[#allocation69_spill] sm:$0xff] %v2756_v61  ;;  %v940_v22 = vmul.f32 %v2612_v40, %v932_v48  ;;  %1288 = vperm.xlu0 %1735, %v1276_v19   ;;  %v142_v40 = vadd.s32 128, %v2619_v36  ;;  %v285_v51 = vmul.f32 %v2059_v12, %v279_v4  ;;  %vm181_vm8 = vcmp.ge.s32.totalorder %v179_v5, 0  ;;  %v3401_v61 = vld [vmem:[#allocation30_spill] sm:$0xff] }
 0x1f2   :  { %v262_v19 = vmul.f32 %v2053_v11, %v256_v55  ;;  %v2838_v4 = vsel %vm181_vm8, 1.0, %v3384_v44  ;;  %v360_v5 = vmul.f32 %v2085_v15, %v354_v63  ;;  %vm606_vm8 = vcmp.lt.s32.totalorder %v2619_v36, 113  ;;  %v3390_v63 = vld [vmem:[#allocation14_spill] sm:$0xff] }
 0x1f3   :  { %v2778_v52 = vadd.f32 %v940_v22, %v917_v53  ;;  %v953_v60 = vpop.permute.xlu0 %952  ;;  %v2783_v18 = vpop.permute.xlu1 %1077  ;;  %v1428_v53 = vadd.f32 %v1427_v37, %v1426_v27  ;;  %v2808_v56 = vand.u32 15, %v142_v40  ;;  %3387 = vst [vmem:[#allocation73_spill] sm:$0xff] %v2838_v4 }
 0x1f4   :  { %v960_v31 = vsel %vm958_vm13, %v953_v60, %v2621_v58  ;;  %v287_v27 = vadd.f32 %v285_v51, %v262_v19  ;;  %v385_v19 = vmul.f32 %v2091_v16, %v379_v3  ;;  %v3392_v3 = vld [vmem:[#allocation22_spill] sm:$0xff] }
 0x1f5   :  { %3383 = vst [vmem:[#allocation70_spill] sm:$0xff] %v2778_v52  ;;  %v966_v32 = vmul.f32 %v2631_v25, %v960_v31  ;;  %1356 = vrot.lane.b32.xlu0 %v2035_v10, %s1855_s27  ;;  %3386 = vst [vmem:[#allocation72_spill] sm:$0xff] %v2808_v56  ;;  %v180_v37 = vadd.s32 4294967294, %v2808_v56  ;;  %v191_v31 = vadd.s32 4294967295, %v2740_v9 }
 0x1f6   :  { %v312_v60 = vadd.f32 %v310_v0, %v287_v27 }
 0x1f7   :  { %v957_v59 = vpop.permute.xlu0 %956  ;;  %v2816_v33 = vpop.permute.xlu1 %1086  ;;  %vm182_vm5 = vcmp.ge.s32.totalorder %v180_v37, 0  ;;  %vm193_vm7 = vcmp.ge.s32.totalorder %v191_v31, 0  ;;  %v3394_v31 = vld [vmem:[#allocation15_spill] sm:$0xff]  ;;  %v3402_v37 = vld [vmem:[#allocation24_spill] sm:$0xff] }
 0x1f8   :  { %v959_v48 = vsel %vm958_vm13, %v2621_v58, %v957_v59  ;;  %v335_v58 = vmul.f32 %v2075_v14, %v329_v54  ;;  %vm577_vm13 = vcmp.lt.s32.totalorder %v2619_v36, 18  ;;  %v2867_v59 = vadd.s32 4294967293, %v2808_v56 }
 0x1f9   :  { %v967_v22 = vmul.f32 %v2631_v25, %v959_v48  ;;  %1440 = vperm.xlu0 %1735, %v1428_v53   ;;  %v454_v25 = vsel %vm452_vm6, %v2269_v35, %v2294_v50  ;;  %v3389_v48 = vld [vmem:[#allocation13_spill] sm:$0xff] }
 0x1fa   :  { %v460_v51 = vmul.f32 %v2124_v24, %v454_v25  ;;  %v337_v30 = vadd.f32 %v335_v58, %v312_v60  ;;  %v437_v27 = vmul.f32 %v3389_v48, %v431_v38  ;;  %v485_v25 = vmul.f32 %v3390_v63, %v479_v7  ;;  %v3395_v7 = vld [vmem:[#allocation27_spill] sm:$0xff] }
 0x1fb   :  { %v976_v40 = vpop.permute.xlu0 %975  ;;  %v2846_v55 = vpop.permute.xlu1 %1102  ;;  %v510_v38 = vmul.f32 %v3394_v31, %v504_v41 }
 0x1fc   :  { %3388 = vst [vmem:[#allocation74_spill] sm:$0xff] %v2846_v55  ;;  %v983_v35 = vsel %vm981_vm11, %v976_v40, %v2651_v28  ;;  %v362_v60 = vadd.f32 %v360_v5, %v337_v30  ;;  %v2896_v5 = vsel %vm182_vm5, 1.0, %v3384_v44  ;;  %v3405_v55 = vld [vmem:[#allocation31_spill] sm:$0xff]  ;;  %vm3421_vm5 = vcmp.lt.s32.totalorder %v2619_v36, 35 }
 0x1fd   :  { %v989_v53 = vmul.f32 %v2669_v20, %v983_v35  ;;  %1229 = vrot.lane.b32.xlu0 %v2035_v10, %s1856_s19  ;;  %v3393_v35 = vld [vmem:[#allocation21_spill] sm:$0xff]  ;;  %3397 = vst [vmem:[#allocation14_spill] sm:$0xff] %v2896_v5 }
 0x1fe   :  { %v404_v52 = vsel %vm402_vm4, %v3393_v35, %v3392_v3  ;;  %v387_v30 = vadd.f32 %v385_v19, %v362_v60  ;;  %v554_v19 = vsel %vm552_vm0, %v3402_v37, %v3401_v61  ;;  %v3407_v37 = vld [vmem:[#allocation32_spill] sm:$0xff] }
 0x1ff   :  { %v991_v0 = vadd.f32 %v989_v53, %v966_v32  ;;  %v980_v54 = vpop.permute.xlu0 %979  ;;  %v2876_v40 = vpop.permute.xlu1 %1111  ;;  %v462_v32 = vadd.f32 %v460_v51, %v437_v27  ;;  %v3396_v53 = vld [vmem:[#allocation23_spill] sm:$0xff]  ;;  %v2904_v51 = vsel %vm193_vm7, 1.0, %v3384_v44  ;;  %vm754_vm7 = vcmp.lt.s32.totalorder %v2619_v36, 17 }
 0x200   :  { %3391 = vst [vmem:[#allocation13_spill] sm:$0xff] %v2876_v40  ;;  %v982_v58 = vsel %vm981_vm11, %v2651_v28, %v980_v54  ;;  %v529_v28 = vsel %vm527_vm10, %v3396_v53, %v3395_v7  ;;  %vm654_vm11 = vcmp.lt.s32.totalorder %v2619_v36, 81  ;;  %3399 = vst [vmem:[#allocation22_spill] sm:$0xff] %v2904_v51  ;;  %v3410_v51 = vld [vmem:[#allocation37_spill] sm:$0xff] }
 0x201   :  { %v990_v46 = vmul.f32 %v2669_v20, %v982_v58  ;;  %1379 = vrot.lane.b32.xlu0 %v2026_v8, %s1857_s24  ;;  %v3398_v20 = vld [vmem:[#allocation33_spill] sm:$0xff]  ;;  %v3400_v58 = vld [vmem:[#allocation12_spill] sm:$0xff]  ;;  %v487_v53 = vadd.f32 %v485_v25, %v462_v32 }
 0x202   :  { %v278_v54 = vsel %vm277_vm12, %v2229_v2, %v3398_v20  ;;  %v410_v35 = vmul.f32 %v3400_v58, %v404_v52  ;;  %v3404_v2 = vld [vmem:[#allocation16_spill] sm:$0xff]  ;;  %v3406_v52 = vld [vmem:[#allocation34_spill] sm:$0xff]  ;;  %vm679_vm12 = vcmp.lt.s32.totalorder %v2619_v36, 65 }
 0x203   :  { %v992_v41 = vadd.f32 %v990_v46, %v967_v22  ;;  %v1001_v27 = vpop.permute.xlu0 %1000  ;;  %v2911_v60 = vpop.permute.xlu1 %1131  ;;  %v535_v20 = vmul.f32 %v3404_v2, %v529_v28  ;;  %v255_v22 = vsel %vm254_vm14, %v2218_v62, %v3405_v55  ;;  %v303_v25 = vsel %vm302_vm15, %v2237_v6, %v3406_v52  ;;  %v3409_v55 = vld [vmem:[#allocation17_spill] sm:$0xff]  ;;  %v3411_v6 = vld [vmem:[#allocation28_spill] sm:$0xff] }
 0x204   :  { %3403 = vst [vmem:[#allocation21_spill] sm:$0xff] %v2911_v60  ;;  %v1008_v40 = vsel %vm1006_vm9, %v1001_v27, %v2690_v42  ;;  %v512_v32 = vadd.f32 %v510_v38, %v487_v53  ;;  %v3408_v27 = vld [vmem:[#allocation25_spill] sm:$0xff]  ;;  %v286_v60 = vmul.f32 %v2059_v12, %v278_v54  ;;  %v2934_v62 = vadd.s32 4294967295, %v2808_v56  ;;  %v3412_v52 = vld [vmem:[#allocation36_spill] sm:$0xff]  ;;  %v3413_v12 = vld [vmem:[#allocation35_spill] sm:$0xff] }
 0x205   :  { %v1014_v46 = vmul.f32 %v2700_v43, %v1008_v40  ;;  %1383 = vrot.lane.b32.xlu0 %v2112_v21, %s1857_s24  ;;  %v579_v28 = vsel %vm577_vm13, %v3408_v27, %v3407_v37  ;;  %v560_v5 = vmul.f32 %v3409_v55, %v554_v19  ;;  %v631_v40 = vsel %vm629_vm3, %v3411_v6, %v3410_v51  ;;  %v3414_v54 = vld [vmem:[#allocation26_spill] sm:$0xff] }
 0x206   :  { %v328_v38 = vsel %vm327_vm1, %v2248_v23, %v3412_v52  ;;  %v608_v56 = vsel %vm606_vm8, %v3414_v54, %v3413_v12  ;;  %v263_v19 = vmul.f32 %v2053_v11, %v255_v22  ;;  %v311_v44 = vmul.f32 %v2069_v13, %v303_v25  ;;  %v3415_v52 = vld [vmem:[#allocation18_spill] sm:$0xff]  ;;  %v3416_v13 = vld [vmem:[#allocation20_spill] sm:$0xff] }
 0x207   :  { %v1016_v53 = vadd.f32 %v1014_v46, %v991_v0  ;;  %v1005_v27 = vpop.permute.xlu0 %1004  ;;  %v2952_v49 = vpop.permute.xlu1 %1140  ;;  %v537_v23 = vadd.f32 %v535_v20, %v512_v32  ;;  %v585_v4 = vmul.f32 %v3415_v52, %v579_v28  ;;  %vm704_vm14 = vcmp.lt.s32.totalorder %v2619_v36, 49  ;;  %v3417_v20 = vld [vmem:[#allocation19_spill] sm:$0xff]  ;;  %v3418_v28 = vld [vmem:[#allocation45_spill] sm:$0xff] }
 0x208   :  { %v1007_v6 = vsel %vm1006_vm9, %v2690_v42, %v1005_v27  ;;  %vm1031_vm15 = vcmp.lt.s32.totalorder %v2619_v36, 63  ;;  %v2963_v11 = vadd.f32 %v410_v35, %v387_v30  ;;  %v637_v22 = vmul.f32 %v3416_v13, %v631_v40  ;;  %v3419_v30 = vld [vmem:[#allocation38_spill] sm:$0xff]  ;;  %v3424_v40 = vld [vmem:[#allocation47_spill] sm:$0xff] }
 0x209   :  { %v1015_v0 = vmul.f32 %v2700_v43, %v1007_v6  ;;  %1252 = vrot.lane.b32.xlu0 %v2026_v8, %s1858_s25  ;;  %v288_v25 = vadd.f32 %v286_v60, %v263_v19  ;;  %v336_v46 = vmul.f32 %v2075_v14, %v328_v38  ;;  %v562_v42 = vadd.f32 %v560_v5, %v537_v23  ;;  %v3420_v60 = vld [vmem:[#allocation39_spill] sm:$0xff]  ;;  %v3427_v19 = vld [vmem:[#allocation29_spill] sm:$0xff] }
 0x20a   :  { %v614_v32 = vmul.f32 %v3417_v20, %v608_v56  ;;  %v453_v43 = vsel %vm452_vm6, %v2294_v50, %v3418_v28  ;;  %vm729_vm1 = vcmp.lt.s32.totalorder %v2619_v36, 33  ;;  %v353_v35 = vsel %vm352_vm2, %v2256_v29, %v3419_v30 }
 0x20b   :  { %v1017_v27 = vadd.f32 %v1015_v0, %v992_v41  ;;  %v1026_v54 = vpop.permute.xlu0 %1025  ;;  %v313_v6 = vadd.f32 %v311_v44, %v288_v25  ;;  %v378_v14 = vsel %vm3421_vm5, %v2267_v34, %v3420_v60  ;;  %v2981_v56 = vpop.permute.xlu1 %1188  ;;  %v2986_v5 = vadd.f32 %v585_v4, %v562_v42  ;;  %v3422_v41 = vld [vmem:[#allocation43_spill] sm:$0xff]  ;;  %v3426_v4 = vld [vmem:[#allocation40_spill] sm:$0xff]  ;;  %v3428_v42 = vld [vmem:[#allocation42_spill] sm:$0xff] }
 0x20c   :  { %v1033_v50 = vsel %vm1031_vm15, %v1026_v54, %v2719_v47  ;;  %vm3423_vm6 = vcmp.lt.s32.totalorder %v2619_v36, 114  ;;  %vm3425_vm2 = vcmp.lt.s32.totalorder %v2619_v36, 82  ;;  %v639_v38 = vadd.f32 %v637_v22, %v614_v32  ;;  %v3429_v60 = vld [vmem:[#allocation59_spill] sm:$0xff] }
 0x20d   :  { %v430_v44 = vsel %vm3423_vm6, %v2286_v45, %v3422_v41  ;;  %v478_v29 = vsel %vm3425_vm2, %v2305_v57, %v3424_v40  ;;  %v1039_v34 = vmul.f32 %v2729_v17, %v1033_v50  ;;  %1256 = vrot.lane.b32.xlu0 %v2112_v21, %s1858_s25  ;;  %v656_v23 = vsel %vm654_vm11, %v3427_v19, %v3426_v4 }
 0x20e   :  { %v3004_v0 = vadd.f32 %v336_v46, %v313_v6  ;;  %v461_v45 = vmul.f32 %v2124_v24, %v453_v43  ;;  %v3008_v25 = vmul.f32 %v2085_v15, %v353_v35  ;;  %v3011_v57 = vmul.f32 %v2091_v16, %v378_v14  ;;  %v3430_v16 = vld [vmem:[#allocation41_spill] sm:$0xff]  ;;  %v3435_v14 = vld [vmem:[#allocation44_spill] sm:$0xff] }
 0x20f   :  { %v662_v28 = vmul.f32 %v3428_v42, %v656_v23  ;;  %v1041_v54 = vadd.f32 %v1039_v34, %v1016_v53  ;;  %v1030_v30 = vpop.permute.xlu0 %1029  ;;  %v438_v22 = vmul.f32 %v3389_v48, %v430_v44  ;;  %v486_v32 = vmul.f32 %v3390_v63, %v478_v29  ;;  %v3020_v24 = vpop.permute.xlu1 %1317  ;;  %v3431_v48 = vld [vmem:[#allocation49_spill] sm:$0xff]  ;;  %v3437_v44 = vld [vmem:[#allocation60_spill] sm:$0xff] }
 0x210   :  { %v630_v46 = vsel %vm629_vm3, %v3410_v51, %v3429_v60  ;;  %v1032_v15 = vsel %vm1031_vm15, %v2719_v47, %v1030_v30  ;;  %v3029_v53 = vsel %vm402_vm4, %v3392_v3, %v3430_v16  ;;  %vm3432_vm9 = vcmp.lt.s32.totalorder %v2619_v36, 66  ;;  %v3433_v47 = vld [vmem:[#allocation51_spill] sm:$0xff]  ;;  %v3434_v3 = vld [vmem:[#allocation57_spill] sm:$0xff]  ;;  %v3438_v23 = vld [vmem:[#allocation48_spill] sm:$0xff] }
 0x211   :  { %v503_v63 = vsel %vm3432_vm9, %v2315_v1, %v3431_v48  ;;  %v1040_v43 = vmul.f32 %v2729_v17, %v1032_v15  ;;  %1406 = vrot.lane.b32.xlu0 %v2035_v10, %s1859_s15  ;;  %vm1056_vm3 = vcmp.lt.s32.totalorder %v2619_v36, 47  ;;  %v463_v51 = vadd.f32 %v461_v45, %v438_v22  ;;  %v3436_v1 = vld [vmem:[#allocation61_spill] sm:$0xff]  ;;  %v3440_v30 = vld [vmem:[#allocation46_spill] sm:$0xff]  ;;  %v3445_v48 = vld [vmem:[#allocation55_spill] sm:$0xff] }
 0x212   :  { %v528_v6 = vsel %vm527_vm10, %v3395_v7, %v3433_v47  ;;  %v607_v35 = vsel %vm606_vm8, %v3413_v12, %v3434_v3  ;;  %v681_v17 = vsel %vm679_vm12, %v3436_v1, %v3435_v14  ;;  %v664_v50 = vadd.f32 %v662_v28, %v639_v38  ;;  %v3439_v12 = vld [vmem:[#allocation63_spill] sm:$0xff]  ;;  %v3442_v60 = vld [vmem:[#allocation62_spill] sm:$0xff] }
 0x213   :  { %v638_v41 = vmul.f32 %v3416_v13, %v630_v46  ;;  %v655_v40 = vsel %vm654_vm11, %v3426_v4, %v3437_v44  ;;  %v1042_v29 = vadd.f32 %v1040_v43, %v1017_v27  ;;  %v1051_v7 = vpop.permute.xlu0 %1050  ;;  %v488_v34 = vadd.f32 %v486_v32, %v463_v51  ;;  %v3444_v46 = vld [vmem:[#allocation65_spill] sm:$0xff]  ;;  %v3083_v16 = vpop.permute.xlu1 %1213 }
 0x214   :  { %v511_v19 = vmul.f32 %v3394_v31, %v503_v63  ;;  %v706_v45 = vsel %vm704_vm14, %v3439_v12, %v3438_v23  ;;  %v1058_v38 = vsel %vm1056_vm3, %v1051_v7, %v2745_v26  ;;  %v536_v13 = vmul.f32 %v3404_v2, %v528_v6  ;;  %v3441_v31 = vld [vmem:[#allocation53_spill] sm:$0xff]  ;;  %v3446_v63 = vld [vmem:[#allocation50_spill] sm:$0xff]  ;;  %v3447_v6 = vld [vmem:[#allocation64_spill] sm:$0xff] }
 0x215   :  { %v615_v28 = vmul.f32 %v3417_v20, %v607_v35  ;;  %v687_v4 = vmul.f32 %v3440_v30, %v681_v17  ;;  %v1064_v27 = vmul.f32 %v2759_v39, %v1058_v38  ;;  %1277 = vrot.lane.b32.xlu0 %v2026_v8, %s1860_s12  ;;  %v553_v22 = vsel %vm552_vm0, %v3401_v61, %v3441_v31  ;;  %v3443_v20 = vld [vmem:[#allocation52_spill] sm:$0xff] }
 0x216   :  { %v663_v32 = vmul.f32 %v3428_v42, %v655_v40  ;;  %v680_v2 = vsel %vm679_vm12, %v3435_v14, %v3442_v60  ;;  %v731_v15 = vsel %vm729_vm1, %v3444_v46, %v3443_v20  ;;  %vm170_vm4 = vcmp.ge.s32.totalorder %v2867_v59, 0  ;;  %v3448_v35 = vld [vmem:[#allocation56_spill] sm:$0xff]  ;;  %v3449_v14 = vld [vmem:[#allocation67_spill] sm:$0xff] }
 0x217   :  { %v578_v61 = vsel %vm577_vm13, %v3407_v37, %v3445_v48  ;;  %v640_v42 = vadd.f32 %v638_v41, %v615_v28  ;;  %v712_v43 = vmul.f32 %v3446_v63, %v706_v45  ;;  %v1066_v51 = vadd.f32 %v1064_v27, %v1041_v54  ;;  %v1055_v47 = vpop.permute.xlu0 %1054  ;;  %v3450_v41 = vld [vmem:[#allocation54_spill] sm:$0xff]  ;;  %v3453_v60 = vld [vmem:[#allocation68_spill] sm:$0xff] }
 0x218   :  { %v705_v3 = vsel %vm704_vm14, %v3438_v23, %v3447_v6  ;;  %v756_v1 = vsel %vm754_vm7, %v3449_v14, %v3448_v35  ;;  %v1057_v17 = vsel %vm1056_vm3, %v2745_v26, %v1055_v47  ;;  %vm1081_vm10 = vcmp.lt.s32.totalorder %v2619_v36, 31  ;;  %v3451_v45 = vld [vmem:[#allocation66_spill] sm:$0xff] }
 0x219   :  { %v689_v37 = vadd.f32 %v687_v4, %v664_v50  ;;  %v688_v54 = vmul.f32 %v3440_v30, %v680_v2  ;;  %v737_v44 = vmul.f32 %v3450_v41, %v731_v15  ;;  %v1065_v40 = vmul.f32 %v2759_v39, %v1057_v17  ;;  %1281 = vrot.lane.b32.xlu0 %v2112_v21, %s1860_s12  ;;  %v3452_v28 = vld [vmem:[#allocation58_spill] sm:$0xff] }
 0x21a   :  { %v513_v7 = vadd.f32 %v511_v19, %v488_v34  ;;  %v561_v23 = vmul.f32 %v3409_v55, %v553_v22  ;;  %v665_v12 = vadd.f32 %v663_v32, %v640_v42  ;;  %v730_v26 = vsel %vm729_vm1, %v3443_v20, %v3451_v45  ;;  %v3120_v34 = vpop.permute.xlu1 %1152  ;;  %v3457_v14 = vld [vmem:[#allocation22_spill] sm:$0xff] }
 0x21b   :  { %v714_v38 = vadd.f32 %v712_v43, %v689_v37  ;;  %v713_v50 = vmul.f32 %v3446_v63, %v705_v3  ;;  %v762_v30 = vmul.f32 %v3452_v28, %v756_v1  ;;  %v1067_v4 = vadd.f32 %v1065_v40, %v1042_v29  ;;  %v1076_v27 = vpop.permute.xlu0 %1075  ;;  %v3458_v37 = vld [vmem:[#allocation72_spill] sm:$0xff] }
 0x21c   :  { %v538_v39 = vadd.f32 %v536_v13, %v513_v7  ;;  %v586_v31 = vmul.f32 %v3415_v52, %v578_v61  ;;  %v755_v55 = vsel %vm754_vm7, %v3448_v35, %v3453_v60  ;;  %v1083_v19 = vsel %vm1081_vm10, %v1076_v27, %v2783_v18  ;;  %v3461_v7 = vld [vmem:[#allocation13_spill] sm:$0xff] }
 0x21d   :  { %v690_v22 = vadd.f32 %v688_v54, %v665_v12  ;;  %v739_v32 = vadd.f32 %v737_v44, %v714_v38  ;;  %v738_v2 = vmul.f32 %v3450_v41, %v730_v26  ;;  %v1089_v29 = vmul.f32 %v2816_v33, %v1083_v19  ;;  %1431 = vrot.lane.b32.xlu0 %v2035_v10, %s1861_s10  ;;  %v3460_v44 = vld [vmem:[#allocation74_spill] sm:$0xff]  ;;  %v3462_v27 = vld [vmem:[#allocation69_spill] sm:$0xff] }
 0x21e   :  { %v363_v52 = vadd.f32 %v3008_v25, %v3004_v0  ;;  %v411_v13 = vmul.f32 %v3400_v58, %v3029_v53  ;;  %v563_v20 = vadd.f32 %v561_v23, %v538_v39  ;;  %v203_v46 = vadd.s32 1, %v2740_v9  ;;  %v3454_v58 = vld [vmem:[#allocation73_spill] sm:$0xff] }
 0x21f   :  { %v715_v15 = vadd.f32 %v713_v50, %v690_v22  ;;  %v764_v48 = vadd.f32 %v762_v30, %v739_v32  ;;  %v763_v61 = vmul.f32 %v3452_v28, %v755_v55  ;;  %v1091_v42 = vadd.f32 %v1089_v29, %v1066_v51  ;;  %v1080_v63 = vpop.permute.xlu0 %1079 }
 0x220   :  { %v388_v43 = vadd.f32 %v3011_v57, %v363_v52  ;;  %v588_v47 = vadd.f32 %v586_v31, %v563_v20  ;;  %vm194_vm0 = vcmp.ge.s32.totalorder %v2934_v62, 0  ;;  %v1082_v10 = vsel %vm1081_vm10, %v2783_v18, %v1080_v63  ;;  %v3455_v57 = vld [vmem:[#allocation71_spill] sm:$0xff]  ;;  %v1157_v18 = vpop.permute.xlu1 %1156  ;;  %v3464_v52 = vld [vmem:[#allocation70_spill] sm:$0xff] }
 0x221   :  { %v589_v0 = vmul.f32 %v3454_v58, %v2986_v5  ;;  %v740_v25 = vadd.f32 %v738_v2, %v715_v15  ;;  %v1090_v53 = vmul.f32 %v2816_v33, %v1082_v10  ;;  %1454 = vrot.lane.b32.xlu0 %v2026_v8, %s1862_s30  ;;  %vm1106_vm13 = vcmp.lt.s32.totalorder %v2619_v36, 15  ;;  %v3459_v8 = vld [vmem:[#allocation14_spill] sm:$0xff]  ;;  %v3463_v2 = vld [vmem:[#allocation21_spill] sm:$0xff] }
 0x222   :  { %v414_v51 = vmul.f32 %v3455_v57, %v2963_v11  ;;  %v3456_v6 = vmov 0.0   ;;  %v413_v35 = vadd.f32 %v411_v13, %v388_v43  ;;  %vm207_vm8 = vcmp.lt.s32.totalorder %v203_v46, 16 }
 0x223   :  { %v1567_v3 = vsel %vm170_vm4, 1.0, %v3456_v6  ;;  %v766_v5 = vmul.f32 %v3457_v14, %v764_v48  ;;  %v765_v1 = vadd.f32 %v763_v61, %v740_v25  ;;  %v1092_v17 = vadd.f32 %v1090_v53, %v1067_v4  ;;  %v1101_v33 = vpop.permute.xlu0 %1100 }
 0x224   :  { %v204_v54 = vadd.s32 1, %v3458_v37  ;;  %v590_v41 = vmul.f32 %v3459_v8, %v588_v47  ;;  %v1571_v11 = vsel %vm194_vm0, 1.0, %v3456_v6  ;;  %v1108_v59 = vsel %vm1106_vm13, %v1101_v33, %v3460_v44  ;;  %v3164_v30 = vpop.permute.xlu1 %1390 }
 0x225   :  { %v591_v40 = vadd.f32 %v589_v0, %v414_v51  ;;  %v1114_v23 = vmul.f32 %v3461_v7, %v1108_v59  ;;  %1458 = vrot.lane.b32.xlu0 %v2112_v21, %s1862_s30  ;;  %v415_v12 = vmul.f32 %v1567_v3, %v413_v35  ;;  %v1572_v45 = vsel %vm207_vm8, 1.0, %v3456_v6 }
 0x226   :  { %v767_v26 = vmul.f32 %v1571_v11, %v765_v1  ;;  %vm208_vm11 = vcmp.lt.s32.totalorder %v204_v54, 16  ;;  %vm1135_vm12 = vcmp.lt.s32.totalorder %v2619_v36, 110  ;;  %vm1158_vm14 = vcmp.lt.s32.totalorder %v2619_v36, 94 }
 0x227   :  { %v768_v38 = vadd.f32 %v766_v5, %v591_v40  ;;  %v1116_v50 = vadd.f32 %v1114_v23, %v1091_v42  ;;  %v1105_v28 = vpop.permute.xlu0 %1104  ;;  %v592_v62 = vadd.f32 %v590_v41, %v415_v12  ;;  %v1573_v60 = vsel %vm208_vm11, 1.0, %v3456_v6 }
 0x228   :  { %v1107_v4 = vsel %vm1106_vm13, %v3460_v44, %v1105_v28  ;;  %v1180_v15 = vpop.permute.xlu1 %1179  ;;  %vm1183_vm15 = vcmp.lt.s32.totalorder %v2619_v36, 78  ;;  %vm1335_vm1 = vcmp.lt.s32.totalorder %v2619_v36, 93  ;;  %vm1312_vm5 = vcmp.lt.s32.totalorder %v2619_v36, 109 }
 0x229   :  { %v943_v39 = vadd.f32 %v3462_v27, %v768_v38  ;;  %v1118_v31 = vmul.f32 %v1572_v45, %v1116_v50  ;;  %v1115_v21 = vmul.f32 %v3461_v7, %v1107_v4  ;;  %v769_v55 = vadd.f32 %v767_v26, %v592_v62 }
 0x22a   :  { %vm1360_vm6 = vcmp.lt.s32.totalorder %v2619_v36, 77  ;;  %vm1208_vm2 = vcmp.lt.s32.totalorder %v2619_v36, 62  ;;  %vm1233_vm7 = vcmp.lt.s32.totalorder %v2619_v36, 46  ;;  %vm1258_vm9 = vcmp.lt.s32.totalorder %v2619_v36, 30 }
 0x22b   :  { %v3173_v19 = vadd.f32 %v1118_v31, %v943_v39  ;;  %v1117_v22 = vadd.f32 %v1115_v21, %v1092_v17  ;;  %v1130_v32 = vpop.permute.xlu0 %1129  ;;  %v944_v13 = vadd.f32 %v3464_v52, %v769_v55  ;;  %vm1283_vm3 = vcmp.lt.s32.totalorder %v2619_v36, 14 }
 0x22c   :  { %v1137_v29 = vsel %vm1135_vm12, %v1130_v32, %v3463_v2  ;;  %v3182_v43 = vpop.permute.xlu1 %1263  ;;  %vm1385_vm4 = vcmp.lt.s32.totalorder %v2619_v36, 61  ;;  %vm1410_vm0 = vcmp.lt.s32.totalorder %v2619_v36, 45  ;;  %vm1435_vm8 = vcmp.lt.s32.totalorder %v2619_v36, 29 }
 0x22d   :  { %v1119_v20 = vmul.f32 %v1573_v60, %v1117_v22  ;;  %v1143_v46 = vmul.f32 %v2952_v49, %v1137_v29  ;;  %vm1460_vm11 = vcmp.lt.s32.totalorder %v2619_v36, 13 }
 0x22f   :  { %v3178_v48 = vadd.f32 %v1119_v20, %v944_v13  ;;  %v1134_v61 = vpop.permute.xlu0 %1133 }
 0x230   :  { %v1136_v42 = vsel %vm1135_vm12, %v3463_v2, %v1134_v61  ;;  %v1309_v47 = vpop.permute.xlu1 %1308 }
 0x231   :  { %v1144_v63 = vmul.f32 %v2952_v49, %v1136_v42 }
 0x234   :  { %v1330_v10 = vpop.permute.xlu1 %1329 }
 0x238   :  { %v1334_v25 = vpop.permute.xlu1 %1333 }
 0x23c   :  { %v1203_v57 = vpop.permute.xlu1 %1202 }
 0x240   :  { %v1164_v58 = vpop.permute.xlu0 %1163  ;;  %v1207_v33 = vpop.permute.xlu1 %1206 }
 0x244   :  { %v1341_v0 = vpop.permute.xlu0 %1340  ;;  %v1355_v11 = vpop.permute.xlu1 %1354 }
 0x248   :  { %v1366_v53 = vpop.permute.xlu0 %1365  ;;  %v1359_v23 = vpop.permute.xlu1 %1358 }
 0x24c   :  { %v1155_v51 = vpop.permute.xlu0 %1154  ;;  %v1228_v45 = vpop.permute.xlu1 %1227 }
 0x24d   :  { %v1159_v3 = vsel %vm1158_vm14, %v1155_v51, %v1157_v18  ;;  %v1160_v35 = vsel %vm1158_vm14, %v3120_v34, %v1155_v51 }
 0x24e   :  { %v1166_v14 = vmul.f32 %v1164_v58, %v1160_v35  ;;  %v1167_v5 = vmul.f32 %v1164_v58, %v1159_v3 }
 0x250   :  { %v1168_v1 = vadd.f32 %v1166_v14, %v1143_v46  ;;  %v1169_v17 = vadd.f32 %v1167_v5, %v1144_v63  ;;  %v1239_v49 = vpop.permute.xlu0 %1238  ;;  %v1232_v50 = vpop.permute.xlu1 %1231 }
 0x254   :  { %v1178_v54 = vpop.permute.xlu0 %1177  ;;  %v3193_v27 = vpop.permute.xlu1 %1381 }
 0x255   :  { %v1185_v8 = vsel %vm1183_vm15, %v1178_v54, %v1180_v15 }
 0x256   :  { %v1191_v41 = vmul.f32 %v2981_v56, %v1185_v8 }
 0x258   :  { %v1193_v44 = vadd.f32 %v1191_v41, %v1168_v1  ;;  %v1182_v59 = vpop.permute.xlu0 %1181  ;;  %v3201_v52 = vpop.permute.xlu1 %1465 }
 0x259   :  { %v1184_v40 = vsel %vm1183_vm15, %v1180_v15, %v1182_v59 }
 0x25a   :  { %v1192_v18 = vmul.f32 %v2981_v56, %v1184_v40 }
 0x25c   :  { %v1194_v7 = vadd.f32 %v1192_v18, %v1169_v17  ;;  %v1307_v34 = vpop.permute.xlu0 %1306  ;;  %v215_v18 = vadd.s32 2, %v2740_v9 }
 0x25d   :  { %v1314_v56 = vsel %vm1312_vm5, %v1307_v34, %v1309_v47 }
 0x25e   :  { %v1320_v55 = vmul.f32 %v3020_v24, %v1314_v56  ;;  %vm219_vm10 = vcmp.lt.s32.totalorder %v215_v18, 16 }
 0x260   :  { %v1311_v12 = vpop.permute.xlu0 %1310 }
 0x261   :  { %v1313_v31 = vsel %vm1312_vm5, %v1309_v47, %v1311_v12 }
 0x262   :  { %v1321_v22 = vmul.f32 %v3020_v24, %v1313_v31 }
 0x264   :  { %v1332_v26 = vpop.permute.xlu0 %1331 }
 0x265   :  { %v1336_v62 = vsel %vm1335_vm1, %v1332_v26, %v1334_v25  ;;  %v1337_v4 = vsel %vm1335_vm1, %v1330_v10, %v1332_v26 }
 0x266   :  { %v1343_v21 = vmul.f32 %v1341_v0, %v1337_v4  ;;  %v1344_v60 = vmul.f32 %v1341_v0, %v1336_v62  ;;  %v1255_v0 = vpop.permute.xlu1 %1254  ;;  %v1574_v62 = vsel %vm219_vm10, 1.0, %v3456_v6 }
 0x268   :  { %v3189_v38 = vpop.permute.xlu0 %1415  ;;  %v1345_v13 = vadd.f32 %v1343_v21, %v1320_v55  ;;  %v1346_v20 = vadd.f32 %v1344_v60, %v1321_v22 }
 0x26c   :  { %v1205_v28 = vpop.permute.xlu0 %1204 }
 0x26d   :  { %v1209_v61 = vsel %vm1208_vm2, %v1205_v28, %v1207_v33  ;;  %v1210_v42 = vsel %vm1208_vm2, %v1203_v57, %v1205_v28  ;;  %v1405_v33 = vpop.permute.xlu1 %1404 }
 0x26e   :  { %v1216_v24 = vmul.f32 %v3083_v16, %v1210_v42  ;;  %v1217_v58 = vmul.f32 %v3083_v16, %v1209_v61 }
 0x270   :  { %v3195_v39 = vpop.permute.xlu0 %1288  ;;  %v1218_v35 = vadd.f32 %v1216_v24, %v1193_v44 }
 0x271   :  { %v1409_v8 = vpop.permute.xlu1 %1408 }
 0x274   :  { %v1357_v32 = vpop.permute.xlu0 %1356 }
 0x275   :  { %v1361_v2 = vsel %vm1360_vm6, %v1357_v32, %v1359_v23  ;;  %v1362_v29 = vsel %vm1360_vm6, %v1355_v11, %v1357_v32  ;;  %v1280_v11 = vpop.permute.xlu1 %1279  ;;  %v216_v23 = vadd.s32 2, %v3458_v37 }
 0x276   :  { %v1368_v46 = vmul.f32 %v1366_v53, %v1362_v29  ;;  %v1369_v15 = vmul.f32 %v1366_v53, %v1361_v2  ;;  %v1219_v53 = vadd.f32 %v1217_v58, %v1194_v7 }
 0x277   :  { %vm220_vm13 = vcmp.lt.s32.totalorder %v216_v23, 16 }
 0x278   :  { %v3203_v63 = vadd.f32 %v1368_v46, %v1345_v13  ;;  %v3205_v47 = vadd.f32 %v1369_v15, %v1346_v20  ;;  %v3207_v10 = vpop.permute.xlu0 %1440  ;;  %v1575_v29 = vsel %vm220_vm13, 1.0, %v3456_v6  ;;  %v227_v13 = vadd.s32 3, %v2740_v9 }
 0x279   :  { %v1430_v7 = vpop.permute.xlu1 %1429 }
 0x27a   :  { %vm231_vm12 = vcmp.lt.s32.totalorder %v227_v13, 16 }
 0x27c   :  { %v1230_v25 = vpop.permute.xlu0 %1229 }
 0x27d   :  { %v1234_v51 = vsel %vm1233_vm7, %v1230_v25, %v1232_v50  ;;  %v1235_v3 = vsel %vm1233_vm7, %v1228_v45, %v1230_v25 }
 0x27e   :  { %v1241_v14 = vmul.f32 %v1239_v49, %v1235_v3  ;;  %v1242_v57 = vmul.f32 %v1239_v49, %v1234_v51 }
 0x280   :  { %v1243_v5 = vadd.f32 %v1241_v14, %v1218_v35  ;;  %v1244_v1 = vadd.f32 %v1242_v57, %v1219_v53  ;;  %v1380_v17 = vpop.permute.xlu0 %1379  ;;  %v228_v53 = vadd.s32 3, %v3458_v37 }
 0x281   :  { %v1387_v28 = vsel %vm1385_vm4, %v1380_v17, %v3193_v27 }
 0x282   :  { %v1393_v60 = vmul.f32 %v3164_v30, %v1387_v28  ;;  %vm232_vm14 = vcmp.lt.s32.totalorder %v228_v53, 16 }
 0x284   :  { %v1384_v54 = vpop.permute.xlu0 %1383 }
 0x285   :  { %v1386_v2 = vsel %vm1385_vm4, %v3193_v27, %v1384_v54  ;;  %v1395_v27 = vadd.f32 %v1393_v60, %v3203_v63 }
 0x286   :  { %v1394_v24 = vmul.f32 %v3164_v30, %v1386_v2 }
 0x288   :  { %v1253_v41 = vpop.permute.xlu0 %1252  ;;  %v1396_v30 = vadd.f32 %v1394_v24, %v3205_v47  ;;  %v1577_v47 = vsel %vm232_vm14, 1.0, %v3456_v6  ;;  %v1747_v24 = vld [vmem:[#allocation3 + $0x8] sm:$0xff] }
 0x289   :  { %v1260_v59 = vsel %vm1258_vm9, %v1253_v41, %v1255_v0 }
 0x28a   :  { %v1266_v44 = vmul.f32 %v3182_v43, %v1260_v59  ;;  %v1484_v59 = vstv %s3285_s2  ;;  %s1864_s2 = smov [#allocation8]  }
 0x28b   :  { %s1553_s4 = sshll.u32 %s1864_s2, 4  ;;  %s1554_s4 = int_to_ptr.vmem [resolvable:$true] %s1553_s4 }
 0x28c   :  { %v1257_v16 = vpop.permute.xlu0 %1256  ;;  %v1268_v45 = vadd.f32 %v1266_v44, %v1243_v5  ;;  %s1780_s5 = scalar_lea.vmem %s1554_s4, 256  ;;  %p1785_p12 = scmp.lt.s32.totalorder %s1554_s4, %s1554_s4 }
 0x28d   :  { %v1259_v49 = vsel %vm1258_vm9, %v1255_v0, %v1257_v16  ;;  %p1781_p11 = scmp.ne.s32.totalorder %s1554_s4, %s1780_s5  ;;  %p1786_p13 = scmp.lt.s32.totalorder %s1780_s5, %s1780_s5 }
 0x28e   :  { %v1267_v26 = vmul.f32 %v3182_v43, %v1259_v49  ;;  %v1434_v43 = vpop.permute.xlu1 %1433 }
 0x28f   :  { %p1787_p0 = por %p1786_p13, %p1785_p12 }
 0x290   :  { %v1407_v40 = vpop.permute.xlu0 %1406  ;;  %v1269_v55 = vadd.f32 %v1267_v26, %v1244_v1  ;;  %v1576_v1 = vsel %vm231_vm12, 1.0, %v3456_v6  ;;  %v1863_v26 = vmov 1966171168  }
 0x291   :  { %v1412_v31 = vsel %vm1410_vm0, %v1405_v33, %v1407_v40  ;;  %v1411_v42 = vsel %vm1410_vm0, %v1407_v40, %v1409_v8  ;;  %p1788_p1 = pnand %p1787_p0, %p1781_p11 }
 0x292   :  { %v1418_v20 = vmul.f32 %v3189_v38, %v1412_v31  ;;  %v1457_v0 = vpop.permute.xlu1 %1456  ;;  %v1419_v25 = vmul.f32 %v3189_v38, %v1411_v42 }
 0x294   :  { %v1278_v34 = vpop.permute.xlu0 %1277  ;;  %v1420_v51 = vadd.f32 %v1418_v20, %v1395_v27  ;;  %v1421_v17 = vadd.f32 %v1419_v25, %v1396_v30 }
 0x295   :  { %v1285_v12 = vsel %vm1283_vm3, %v1278_v34, %v1280_v11 }
 0x296   :  { %v1291_v50 = vmul.f32 %v3195_v39, %v1285_v12 }
 0x298   :  { %v1293_v4 = vadd.f32 %v1291_v50, %v1268_v45  ;;  %v1282_v56 = vpop.permute.xlu0 %1281  ;;  %v1503_v50 = vunpack.c.l.s4 %v1863_v26 }
 0x299   :  { %v1284_v21 = vsel %vm1283_vm3, %v1280_v11, %v1282_v56 }
 0x29a   :  { %v1295_v22 = vmul.f32 %v1574_v62, %v1293_v4  ;;  %v1292_v32 = vmul.f32 %v3195_v39, %v1284_v21  ;;  %v1504_v28 = vunpack.c.0.s8 %v1503_v50  ;;  %v3465_v62 = vlaneseq }
 0x29c   :  { %v1297_v46 = vadd.f32 %v1295_v22, %v3173_v19  ;;  %v1294_v15 = vadd.f32 %v1292_v32, %v1269_v55  ;;  %v1432_v61 = vpop.permute.xlu0 %1431  ;;  %v1506_v4 = vshrl.u32 %v3465_v62, 7 }
 0x29d   :  { %v1437_v39 = vsel %vm1435_vm8, %v1430_v7, %v1432_v61  ;;  %v1436_v19 = vsel %vm1435_vm8, %v1432_v61, %v1434_v43 }
 0x29e   :  { %v1296_v58 = vmul.f32 %v1575_v29, %v1294_v15  ;;  %v1443_v9 = vmul.f32 %v3207_v10, %v1437_v39  ;;  %v1444_v14 = vmul.f32 %v3207_v10, %v1436_v19  ;;  %v1507_v31 = vsub.s32 %v1504_v28, %v1506_v4  ;;  %v1746_v39 = vld [vmem:[#allocation3] sm:$0xff] }
 0x29f   :  { %v1526_v55 = vsub.s32 0, %v1506_v4  ;;  %v1530_v22 = vsub.s32 1, %v1506_v4 }
 0x2a0   :  { %v1298_v3 = vadd.f32 %v1296_v58, %v3178_v48  ;;  %v1455_v35 = vpop.permute.xlu0 %1454  ;;  %v1445_v57 = vadd.f32 %v1443_v9, %v1420_v51  ;;  %v1446_v37 = vadd.f32 %v1444_v14, %v1421_v17 }
 0x2a1   :  { %v1462_v63 = vsel %vm1460_vm11, %v1455_v35, %v1457_v0 }
 0x2a2   :  { %v1468_v5 = vmul.f32 %v3201_v52, %v1462_v63 }
 0x2a4   :  { %v1470_v38 = vadd.f32 %v1468_v5, %v1445_v57  ;;  %v1459_v33 = vpop.permute.xlu0 %1458 }
 0x2a5   :  { %v1461_v48 = vsel %vm1460_vm11, %v1457_v0, %v1459_v33 }
 0x2a6   :  { %v1472_v54 = vmul.f32 %v1576_v1, %v1470_v38  ;;  %v1469_v8 = vmul.f32 %v3201_v52, %v1461_v48 }
 0x2a8   :  { %v1474_v41 = vadd.f32 %v1472_v54, %v1297_v46  ;;  %v1471_v10 = vadd.f32 %v1469_v8, %v1446_v37 }
 0x2aa   :  { %v1478_v16 = vrot.slane %v1474_v41, 2  ;;  %v1473_v11 = vmul.f32 %v1577_v47, %v1471_v10 }
 0x2ac   :  { %v1482_v40 = vadd.f32 %v1478_v16, %v1474_v41  ;;  %v1475_v18 = vadd.f32 %v1473_v11, %v1298_v3 }
 0x2ae   :  { %v1485_v44 = vadd.f32 %v1484_v59, %v1482_v40  ;;  %v1479_v49 = vrot.slane %v1475_v18, 2 }
 0x2b0   :  { %v1675_v36 = vmul.f32 -1.442695, %v1485_v44  ;;  %v1483_v7 = vadd.f32 %v1479_v49, %v1475_v18 }
 0x2b2   :  { %1738 = vpow2.f32 %v1675_v36  ;;  %v1486_v34 = vadd.f32 %v1484_v59, %v1483_v7 }
 0x2b4   :  { %v1676_v23 = vmul.f32 -1.442695, %v1486_v34 }
 0x2b6   :  { %1740 = vpow2.f32 %v1676_v23 }
 0x2bc   :  { %v1739_v52 = vpop.eup %1738 }
 0x2bd   :  { %v1493_v6 = vadd.f32 1.0, %v1739_v52 }
 0x2bf   :  { %1742 = vrcp.f32 %v1493_v6 }
 0x2c0   :  { %v1741_v12 = vpop.eup %1740 }
 0x2c1   :  { %v1494_v45 = vadd.f32 1.0, %v1741_v12 }
 0x2c3   :  { %1744 = vrcp.f32 %v1494_v45 }
 0x2c9   :  { %v1743_v56 = vpop.eup %1742 }
 0x2cd   :  { %v1745_v21 = vpop.eup %1744 }
 0x2ce   :  { %v1501_v43 = vcombine.low %v1743_v56, %v1745_v21 }
 0x2d0   :  { %v1508_v60 = vrot.slane %v1501_v43, %v1507_v31 }
 0x2d2   :  { %v1509_v32 = vcombine.high %v1508_v60, %v1508_v60  ;;  %v1516_v2 = vrot.slane %v1508_v60, %v1507_v31 }
 0x2d4   :  { %v1523_v29 = vrot.slane %v1509_v32, %v1507_v31  ;;  %v1527_v13 = vrot.slane %v1516_v2, %v1526_v55  ;;  %v1531_v20 = vrot.slane %v1516_v2, %v1530_v22 }
 0x2d6   :  { %v1535_v46 = vrot.slane %v1523_v29, %v1526_v55  ;;  %v1539_v15 = vrot.slane %v1523_v29, %v1530_v22  ;;  %v1540_v61 = vcombine.low %v1527_v13, %v1531_v20 }
 0x2d8   :  { %v1541_v42 = vcombine.low %v1535_v46, %v1539_v15  ;;  %v1544_v27 = vmul.f32 %v1746_v39, %v1540_v61 }
 0x2da   :  { %v1545_v58 = vmul.f32 %v1747_v24, %v1541_v42  ;;  %1546 = vst [vmem:[#allocation8] sm:$0xff] %v1544_v27 }
 0x2dc   :  { %1547 = vst [vmem:[#allocation8 + $0x8] sm:$0xff] %v1545_v58 }
 0x2dd   :  { %1791 = shalt.err (!%p1788_p1)
}
 0x2de   :  { %s1792_s6 = scalar_lea.hbm %s3286_s3, 256 }
 0x2df   :  { %p1793_p2 = scmp.ne.s32.totalorder %s3286_s3, %s1792_s6  ;;  %p1796_p3 = scmp.lt.u32.totalorder %s1792_s6, %s3286_s3 }
 0x2e1   :  { %p1798_p4 = pnand %p1796_p3, %p1793_p2 }
 0x2e3   :  { %1801 = shalt.err (!%p1798_p4)
}
 0x2e4   :  { %1559 = dma.vmem_to_hbm [thread:$0]  %s1554_s4, 256, %s3286_s3, [#allocation5], %s1809_s22, %s1809_s22, %s1810_s23  }
 0x2e5   :  { %1806 = dma.done.wait [#allocation5], 256  }
 0x2e6   :  { %1807 = vsyncadd [#allocation5], 4294967040 }
 0x2e7   :  { %1563 = vsyncpa [#allocation4], 1 }
 0x2e8   :  { %1564 = vsyncpa [#allocation5], 1 }
 0x2e9   :  { %1565 = vsyncpa [#allocation6], 1 }

</bundles_post_ra>
